<compile_context>
chip_gen: v7x
topology: tpu7x:2x2x1
jax: 0.10.0
libtpu: 0.0.40
codegen_flags: <defaults>
</compile_context>

<pallas_src>
import functools

import jax
import jax.numpy as jnp
from jax.experimental import pallas as pl
from jax.experimental.pallas import tpu as pltpu


# ---------------------------------------------------------------------------
# In-kernel helpers
# ---------------------------------------------------------------------------
def _conv3x3_same(a, w_ref, b_ref, h, w):
    """'same' 3x3 conv + folded-BN bias + ReLU on a [H*W, Cin] activation.

    a      : [H*W, Cin] f32 value (channels-last, VMEM-resident)
    w_ref  : [9, Cin, Cout] bf16 ref (BN scale already folded in)
    b_ref  : [1, Cout]  f32 ref (folded BN bias)
    Patches are built in VMEM (zero concat + shifted windows); each of the
    9 taps is a small MXU matmul accumulated in f32.
    """
    cin = a.shape[-1]
    cout = w_ref.shape[-1]
    a3 = a.reshape(h, w, cin)
    zrow = jnp.zeros((1, w, cin), jnp.float32)
    ap = jnp.concatenate([zrow, a3, zrow], axis=0)            # (h+2, w,   cin)
    zcol = jnp.zeros((h + 2, 1, cin), jnp.float32)
    ap = jnp.concatenate([zcol, ap, zcol], axis=1)            # (h+2, w+2, cin)
    acc = jnp.zeros((h * w, cout), jnp.float32)
    for dh in range(3):
        for dw in range(3):
            patch = ap[dh:dh + h, dw:dw + w, :].reshape(h * w, cin)
            acc = acc + jnp.dot(patch.astype(jnp.bfloat16),
                                w_ref[dh * 3 + dw],
                                preferred_element_type=jnp.float32)
    return jnp.maximum(acc + b_ref[...], 0.0)


# ---------------------------------------------------------------------------
# Pallas kernels
# ---------------------------------------------------------------------------
def _pre_chain_max_kernel(h, w,
                          p1_ref, w1_ref, b1_ref, w2_ref, b2_ref,
                          w3_ref, b3_ref, o_ref):
    """conv1 + pre_module (two 3x3 convs) for one (batch, split) pair, with
    torch.max over splits accumulated into the resident output block."""
    s = pl.program_id(1)

    # conv1 (Cin=1): its im2col patches arrive pre-built -> single matmul.
    p1 = p1_ref[0, 0].astype(jnp.bfloat16)                    # (H*W, 9)
    a1 = jnp.dot(p1, w1_ref[...], preferred_element_type=jnp.float32)
    a1 = jnp.maximum(a1 + b1_ref[...], 0.0)                   # (H*W, 3)

    a2 = _conv3x3_same(a1, w2_ref, b2_ref, h, w)              # (H*W, 32)
    a3 = _conv3x3_same(a2, w3_ref, b3_ref, h, w)              # (H*W, 64)

    @pl.when(s == 0)
    def _():
        o_ref[0] = a3

    @pl.when(s != 0)
    def _():
        o_ref[0] = jnp.maximum(o_ref[0], a3)


def _post_gap_fc_kernel(x_ref, w_ref, b_ref, fcw_ref, fcb_ref, o_ref):
    """1x1 conv (64 -> channel tile) + ReLU + GAP + fc partial product,
    accumulated over channel tiles into the resident logits block."""
    j = pl.program_id(0)
    bsz, hw, cin = x_ref.shape
    x2 = x_ref[...].reshape(bsz * hw, cin).astype(jnp.bfloat16)
    hmat = jnp.dot(x2, w_ref[...], preferred_element_type=jnp.float32)
    hmat = jnp.maximum(hmat + b_ref[...], 0.0)                # (B*HW, tn)
    # GAP: sum over HW (the 1/HW factor is folded into fc_w by the wrapper).
    pooled = jnp.sum(hmat.reshape(bsz, hw, hmat.shape[-1]), axis=1)   # (B, tn)
    part = jnp.dot(pooled, fcw_ref[...], preferred_element_type=jnp.float32)

    @pl.when(j == 0)
    def _():
        o_ref[...] = part + fcb_ref[...]

    @pl.when(j != 0)
    def _():
        o_ref[...] = o_ref[...] + part


# ---------------------------------------------------------------------------
# Pallas wrappers
# ---------------------------------------------------------------------------
def pre_chain_max(p1, w1, b1, w2, b2, w3, b3, h, w):
    bsz, splits, hw, ktaps = p1.shape
    cout = w3.shape[-1]
    kernel = functools.partial(_pre_chain_max_kernel, h, w)
    return pl.pallas_call(
        kernel,
        out_shape=jax.ShapeDtypeStruct((bsz, hw, cout), jnp.float32),
        grid=(bsz, splits),
        in_specs=[
            pl.BlockSpec((1, 1, hw, ktaps), lambda b, s: (b, s, 0, 0)),
            pl.BlockSpec(w1.shape, lambda b, s: (0, 0)),
            pl.BlockSpec(b1.shape, lambda b, s: (0, 0)),
            pl.BlockSpec(w2.shape, lambda b, s: (0, 0, 0)),
            pl.BlockSpec(b2.shape, lambda b, s: (0, 0)),
            pl.BlockSpec(w3.shape, lambda b, s: (0, 0, 0)),
            pl.BlockSpec(b3.shape, lambda b, s: (0, 0)),
        ],
        out_specs=pl.BlockSpec((1, hw, cout), lambda b, s: (b, 0, 0)),
        compiler_params=pltpu.CompilerParams(
            dimension_semantics=("parallel", "arbitrary")),
    )(p1, w1, b1, w2, b2, w3, b3)


def post_gap_fc(feat, w_post, b_post, fc_w, fc_b, *, tn=512):
    bsz, hw, cin = feat.shape
    nch = w_post.shape[-1]
    nc = fc_w.shape[-1]
    assert nch % tn == 0
    return pl.pallas_call(
        _post_gap_fc_kernel,
        out_shape=jax.ShapeDtypeStruct((bsz, nc), jnp.float32),
        grid=(nch // tn,),
        in_specs=[
            pl.BlockSpec((bsz, hw, cin), lambda j: (0, 0, 0)),
            pl.BlockSpec((cin, tn), lambda j: (0, j)),
            pl.BlockSpec((1, tn), lambda j: (0, j)),
            pl.BlockSpec((tn, nc), lambda j: (j, 0)),
            pl.BlockSpec((1, nc), lambda j: (0, 0)),
        ],
        out_specs=pl.BlockSpec((bsz, nc), lambda j: (0, 0)),
        compiler_params=pltpu.CompilerParams(
            dimension_semantics=("arbitrary",)),
    )(feat, w_post, b_post, fc_w, fc_b)


# ---------------------------------------------------------------------------
# Glue (plain JAX): input im2col, BN folding, parameter construction
# ---------------------------------------------------------------------------
def _im2col_input(x):
    """[B, S, H, W] (1-channel) -> [B, S, H*W, 9] patches, tap order (kh, kw)."""
    b, s, h, w = x.shape
    xp = jnp.pad(x, ((0, 0), (0, 0), (1, 1), (1, 1)))
    cols = [xp[:, :, dh:dh + h, dw:dw + w].reshape(b, s, h * w, 1)
            for dh in range(3) for dw in range(3)]
    return jnp.concatenate(cols, axis=-1)


def _fold_conv_bn(p):
    """Fold BN into the conv (scale into weights, bias kept) in kernel layout.

    Returns (w, bias): 3x3 conv -> w [9, Cin, Cout] bf16; 1x1 -> w [Cin, Cout].
    """
    bn = p["bn"]
    scale = bn["gamma"] / jnp.sqrt(bn["var"] + p["eps"])
    bias = (bn["beta"] - bn["mean"] * scale).astype(jnp.float32)
    w = p["w"]                                   # [Cout, Cin, kh, kw] (PyTorch)
    cout, cin, kh, kw = w.shape
    wk = jnp.transpose(w, (2, 3, 1, 0)).reshape(kh * kw, cin, cout) * scale
    wk = wk.astype(jnp.bfloat16)
    if kh == 1:
        wk = wk.reshape(cin, cout)
    return wk, bias.reshape(1, cout)


def _make_bn(key, c):
    k1, k2, k3, k4 = jax.random.split(key, 4)
    return {
        "gamma": 1.0 + 0.1 * jax.random.normal(k1, (c,), jnp.float32),
        "beta": 0.1 * jax.random.normal(k2, (c,), jnp.float32),
        "mean": 0.1 * jax.random.normal(k3, (c,), jnp.float32),
        "var": 1.0 + 0.1 * jnp.abs(jax.random.normal(k4, (c,), jnp.float32)),
    }


def _make_conv_bn(key, cout, cin, k, eps):
    wkey, bkey = jax.random.split(key)
    fan_in = cin * k * k
    w = jax.random.normal(wkey, (cout, cin, k, k), jnp.float32) * (2.0 / fan_in) ** 0.5
    return {"w": w, "bn": _make_bn(bkey, cout), "eps": eps}


def make_params(key, num_classes=2):
    keys = jax.random.split(key, 6)
    return {
        # conv1: nn.Conv2d(1, 3, 3, 1, 1, bias=False) + BatchNorm2d(3) (eps=1e-5) + ReLU
        "conv1": _make_conv_bn(keys[0], 3, 1, 3, eps=1e-5),
        # pre_module stand-in (inception stem): 3->32, 32->64 BasicConv2d (eps=1e-3)
        "pre": [
            _make_conv_bn(keys[1], 32, 3, 3, eps=1e-3),
            _make_conv_bn(keys[2], 64, 32, 3, eps=1e-3),
        ],
        # post_module stand-in: 1x1 BasicConv2d producing the 2048-channel features
        "post": _make_conv_bn(keys[3], 2048, 64, 1, eps=1e-3),
        # fc: nn.Linear(2048, num_classes)
        "fc_w": 0.02 * jax.random.normal(keys[4], (2048, num_classes), jnp.float32),
        "fc_b": 0.02 * jax.random.normal(keys[5], (1, num_classes), jnp.float32),
    }


# ---------------------------------------------------------------------------
# Forward (mirrors InceptionV3.forward)
# ---------------------------------------------------------------------------
def inception_v3_forward(x, params):
    # x: [B, split_num, H, W]  (== PyTorch `input` before unsqueeze(2))
    b, s, h, w = x.shape
    hw = h * w

    w1, b1 = _fold_conv_bn(params["conv1"])
    w1 = w1.reshape(9, w1.shape[-1])             # Cin == 1 -> [9, 3]
    w2, b2 = _fold_conv_bn(params["pre"][0])     # [9, 3, 32]
    w3, b3 = _fold_conv_bn(params["pre"][1])     # [9, 32, 64]
    wp, bp = _fold_conv_bn(params["post"])       # [64, 2048]

    # conv1 patches (1-channel raw input only; deeper patches built in-kernel)
    p1 = _im2col_input(x)                        # [B, S, H*W, 9]

    # conv1 + pre_module + torch.max over the split dim, fully fused
    feat = pre_chain_max(p1, w1, b1, w2, b2, w3, b3, h, w)    # [B, H*W, 64]

    # post_module (1x1 conv) + gap + fc, fused; GAP's mean folded into fc_w
    fc_w = params["fc_w"] * (1.0 / hw)
    return post_gap_fc(feat, wp, bp, fc_w, params["fc_b"])    # [B, num_classes]


# ---------------------------------------------------------------------------
if __name__ == "__main__":
    key = jax.random.PRNGKey(0)
    pkey, xkey = jax.random.split(key)

    params = make_params(pkey, num_classes=2)

    # small shapes: batch=2, split_num=4, spatial=16x16 (feature_size=16)
    x = jax.random.normal(xkey, (2, 4, 16, 16), jnp.float32)

    fwd = jax.jit(inception_v3_forward)
    logits = fwd(x, params)
    jax.block_until_ready(logits)

    assert logits.shape == (2, 2), logits.shape
    assert logits.dtype == jnp.float32
    print("KERNEL_OK")
</pallas_src>

<mosaic_0001>
module attributes {stable_mosaic.version = 11 : i64} {
  func.func @_pre_chain_max_kernel(%arg0: i32, %arg1: i32, %arg2: memref<1x1x256x9xf32, #tpu.memory_space<vmem>>, %arg3: memref<9x3xbf16, #tpu.memory_space<vmem>>, %arg4: memref<1x3xf32, #tpu.memory_space<vmem>>, %arg5: memref<9x3x32xbf16, #tpu.memory_space<vmem>>, %arg6: memref<1x32xf32, #tpu.memory_space<vmem>>, %arg7: memref<9x32x64xbf16, #tpu.memory_space<vmem>>, %arg8: memref<1x64xf32, #tpu.memory_space<vmem>>, %arg9: memref<1x256x64xf32, #tpu.memory_space<vmem>>) attributes {dimension_semantics = [#tpu.dimension_semantics<parallel>, #tpu.dimension_semantics<arbitrary>], iteration_bounds = array<i64: 2, 4>, scalar_prefetch = 0 : i64, scratch_operands = 0 : i64, tpu.core_type = #tpu.core_type<tc>, window_params = [{transform_indices = @transform_0, window_bounds = array<i64: 1, 1, 256, 9>}, {pipeline_mode = #tpu.pipeline_mode<synchronous>, transform_indices = @transform_1, window_bounds = array<i64: 9, 3>}, {pipeline_mode = #tpu.pipeline_mode<synchronous>, transform_indices = @transform_2, window_bounds = array<i64: 1, 3>}, {pipeline_mode = #tpu.pipeline_mode<synchronous>, transform_indices = @transform_3, window_bounds = array<i64: 9, 3, 32>}, {pipeline_mode = #tpu.pipeline_mode<synchronous>, transform_indices = @transform_4, window_bounds = array<i64: 1, 32>}, {pipeline_mode = #tpu.pipeline_mode<synchronous>, transform_indices = @transform_5, window_bounds = array<i64: 9, 32, 64>}, {pipeline_mode = #tpu.pipeline_mode<synchronous>, transform_indices = @transform_6, window_bounds = array<i64: 1, 64>}, {transform_indices = @transform_7, window_bounds = array<i64: 1, 256, 64>}]} {
    %c0 = arith.constant 0 : index
    %c0_0 = arith.constant 0 : index
    %c0_1 = arith.constant 0 : index
    %c0_2 = arith.constant 0 : index
    %0 = vector.load %arg2[%c0, %c0_0, %c0_1, %c0_2] : memref<1x1x256x9xf32, #tpu.memory_space<vmem>>, vector<1x1x256x9xf32>
    %1 = vector.shape_cast %0 : vector<1x1x256x9xf32> to vector<256x9xf32>
    %2 = arith.truncf %1 : vector<256x9xf32> to vector<256x9xbf16>
    %c0_3 = arith.constant 0 : index
    %c0_4 = arith.constant 0 : index
    %3 = vector.load %arg3[%c0_3, %c0_4] : memref<9x3xbf16, #tpu.memory_space<vmem>>, vector<9x3xbf16>
    %cst = arith.constant dense<0.000000e+00> : vector<256x3xf32>
    %4 = tpu.matmul %2, %3, %cst {dimension_numbers = #tpu.dot_dimension_numbers<[1], [0], [0], [1], [0, 0, 1, 1], [], []>} : vector<256x9xbf16>, vector<9x3xbf16>, vector<256x3xf32> -> vector<256x3xf32>
    %c0_5 = arith.constant 0 : index
    %c0_6 = arith.constant 0 : index
    %5 = vector.load %arg4[%c0_5, %c0_6] : memref<1x3xf32, #tpu.memory_space<vmem>>, vector<1x3xf32>
    %6 = vector.broadcast %5 : vector<1x3xf32> to vector<256x3xf32>
    %7 = arith.addf %4, %6 : vector<256x3xf32>
    %cst_7 = arith.constant 0.000000e+00 : f32
    %8 = vector.broadcast %cst_7 : f32 to vector<256x3xf32>
    %9 = arith.maximumf %7, %8 : vector<256x3xf32>
    %10 = vector.shape_cast %9 : vector<256x3xf32> to vector<16x16x3xf32>
    %cst_8 = arith.constant 0.000000e+00 : f32
    %11 = vector.broadcast %cst_8 : f32 to vector<1x16x3xf32>
    %12 = tpu.concatenate %11, %10, %11 in 0 : vector<1x16x3xf32>, vector<16x16x3xf32>, vector<1x16x3xf32> -> vector<18x16x3xf32>
    %cst_9 = arith.constant 0.000000e+00 : f32
    %13 = vector.broadcast %cst_9 : f32 to vector<18x1x3xf32>
    %14 = tpu.concatenate %13, %12, %13 in 1 : vector<18x1x3xf32>, vector<18x16x3xf32>, vector<18x1x3xf32> -> vector<18x18x3xf32>
    %cst_10 = arith.constant 0.000000e+00 : f32
    %15 = vector.broadcast %cst_10 : f32 to vector<256x32xf32>
    %16 = vector.extract_strided_slice %14 {offsets = [0, 0, 0], sizes = [16, 16, 3], strides = [1, 1, 1]} : vector<18x18x3xf32> to vector<16x16x3xf32>
    %17 = vector.shape_cast %16 : vector<16x16x3xf32> to vector<256x3xf32>
    %18 = arith.truncf %17 : vector<256x3xf32> to vector<256x3xbf16>
    %c0_11 = arith.constant 0 : index
    %c0_12 = arith.constant 0 : index
    %c0_13 = arith.constant 0 : index
    %19 = vector.load %arg5[%c0_11, %c0_12, %c0_13] : memref<9x3x32xbf16, #tpu.memory_space<vmem>>, vector<1x3x32xbf16>
    %20 = vector.shape_cast %19 : vector<1x3x32xbf16> to vector<3x32xbf16>
    %cst_14 = arith.constant dense<0.000000e+00> : vector<256x32xf32>
    %21 = tpu.matmul %18, %20, %cst_14 {dimension_numbers = #tpu.dot_dimension_numbers<[1], [0], [0], [1], [0, 0, 1, 1], [], []>} : vector<256x3xbf16>, vector<3x32xbf16>, vector<256x32xf32> -> vector<256x32xf32>
    %22 = arith.addf %15, %21 : vector<256x32xf32>
    %23 = vector.extract_strided_slice %14 {offsets = [0, 1, 0], sizes = [16, 16, 3], strides = [1, 1, 1]} : vector<18x18x3xf32> to vector<16x16x3xf32>
    %24 = vector.shape_cast %23 : vector<16x16x3xf32> to vector<256x3xf32>
    %25 = arith.truncf %24 : vector<256x3xf32> to vector<256x3xbf16>
    %c1 = arith.constant 1 : index
    %c0_15 = arith.constant 0 : index
    %c0_16 = arith.constant 0 : index
    %26 = vector.load %arg5[%c1, %c0_15, %c0_16] : memref<9x3x32xbf16, #tpu.memory_space<vmem>>, vector<1x3x32xbf16>
    %27 = vector.shape_cast %26 : vector<1x3x32xbf16> to vector<3x32xbf16>
    %cst_17 = arith.constant dense<0.000000e+00> : vector<256x32xf32>
    %28 = tpu.matmul %25, %27, %cst_17 {dimension_numbers = #tpu.dot_dimension_numbers<[1], [0], [0], [1], [0, 0, 1, 1], [], []>} : vector<256x3xbf16>, vector<3x32xbf16>, vector<256x32xf32> -> vector<256x32xf32>
    %29 = arith.addf %22, %28 : vector<256x32xf32>
    %30 = vector.extract_strided_slice %14 {offsets = [0, 2, 0], sizes = [16, 16, 3], strides = [1, 1, 1]} : vector<18x18x3xf32> to vector<16x16x3xf32>
    %31 = vector.shape_cast %30 : vector<16x16x3xf32> to vector<256x3xf32>
    %32 = arith.truncf %31 : vector<256x3xf32> to vector<256x3xbf16>
    %c2 = arith.constant 2 : index
    %c0_18 = arith.constant 0 : index
    %c0_19 = arith.constant 0 : index
    %33 = vector.load %arg5[%c2, %c0_18, %c0_19] : memref<9x3x32xbf16, #tpu.memory_space<vmem>>, vector<1x3x32xbf16>
    %34 = vector.shape_cast %33 : vector<1x3x32xbf16> to vector<3x32xbf16>
    %cst_20 = arith.constant dense<0.000000e+00> : vector<256x32xf32>
    %35 = tpu.matmul %32, %34, %cst_20 {dimension_numbers = #tpu.dot_dimension_numbers<[1], [0], [0], [1], [0, 0, 1, 1], [], []>} : vector<256x3xbf16>, vector<3x32xbf16>, vector<256x32xf32> -> vector<256x32xf32>
    %36 = arith.addf %29, %35 : vector<256x32xf32>
    %37 = vector.extract_strided_slice %14 {offsets = [1, 0, 0], sizes = [16, 16, 3], strides = [1, 1, 1]} : vector<18x18x3xf32> to vector<16x16x3xf32>
    %38 = vector.shape_cast %37 : vector<16x16x3xf32> to vector<256x3xf32>
    %39 = arith.truncf %38 : vector<256x3xf32> to vector<256x3xbf16>
    %c3 = arith.constant 3 : index
    %c0_21 = arith.constant 0 : index
    %c0_22 = arith.constant 0 : index
    %40 = vector.load %arg5[%c3, %c0_21, %c0_22] : memref<9x3x32xbf16, #tpu.memory_space<vmem>>, vector<1x3x32xbf16>
    %41 = vector.shape_cast %40 : vector<1x3x32xbf16> to vector<3x32xbf16>
    %cst_23 = arith.constant dense<0.000000e+00> : vector<256x32xf32>
    %42 = tpu.matmul %39, %41, %cst_23 {dimension_numbers = #tpu.dot_dimension_numbers<[1], [0], [0], [1], [0, 0, 1, 1], [], []>} : vector<256x3xbf16>, vector<3x32xbf16>, vector<256x32xf32> -> vector<256x32xf32>
    %43 = arith.addf %36, %42 : vector<256x32xf32>
    %44 = vector.extract_strided_slice %14 {offsets = [1, 1, 0], sizes = [16, 16, 3], strides = [1, 1, 1]} : vector<18x18x3xf32> to vector<16x16x3xf32>
    %45 = vector.shape_cast %44 : vector<16x16x3xf32> to vector<256x3xf32>
    %46 = arith.truncf %45 : vector<256x3xf32> to vector<256x3xbf16>
    %c4 = arith.constant 4 : index
    %c0_24 = arith.constant 0 : index
    %c0_25 = arith.constant 0 : index
    %47 = vector.load %arg5[%c4, %c0_24, %c0_25] : memref<9x3x32xbf16, #tpu.memory_space<vmem>>, vector<1x3x32xbf16>
    %48 = vector.shape_cast %47 : vector<1x3x32xbf16> to vector<3x32xbf16>
    %cst_26 = arith.constant dense<0.000000e+00> : vector<256x32xf32>
    %49 = tpu.matmul %46, %48, %cst_26 {dimension_numbers = #tpu.dot_dimension_numbers<[1], [0], [0], [1], [0, 0, 1, 1], [], []>} : vector<256x3xbf16>, vector<3x32xbf16>, vector<256x32xf32> -> vector<256x32xf32>
    %50 = arith.addf %43, %49 : vector<256x32xf32>
    %51 = vector.extract_strided_slice %14 {offsets = [1, 2, 0], sizes = [16, 16, 3], strides = [1, 1, 1]} : vector<18x18x3xf32> to vector<16x16x3xf32>
    %52 = vector.shape_cast %51 : vector<16x16x3xf32> to vector<256x3xf32>
    %53 = arith.truncf %52 : vector<256x3xf32> to vector<256x3xbf16>
    %c5 = arith.constant 5 : index
    %c0_27 = arith.constant 0 : index
    %c0_28 = arith.constant 0 : index
    %54 = vector.load %arg5[%c5, %c0_27, %c0_28] : memref<9x3x32xbf16, #tpu.memory_space<vmem>>, vector<1x3x32xbf16>
    %55 = vector.shape_cast %54 : vector<1x3x32xbf16> to vector<3x32xbf16>
    %cst_29 = arith.constant dense<0.000000e+00> : vector<256x32xf32>
    %56 = tpu.matmul %53, %55, %cst_29 {dimension_numbers = #tpu.dot_dimension_numbers<[1], [0], [0], [1], [0, 0, 1, 1], [], []>} : vector<256x3xbf16>, vector<3x32xbf16>, vector<256x32xf32> -> vector<256x32xf32>
    %57 = arith.addf %50, %56 : vector<256x32xf32>
    %58 = vector.extract_strided_slice %14 {offsets = [2, 0, 0], sizes = [16, 16, 3], strides = [1, 1, 1]} : vector<18x18x3xf32> to vector<16x16x3xf32>
    %59 = vector.shape_cast %58 : vector<16x16x3xf32> to vector<256x3xf32>
    %60 = arith.truncf %59 : vector<256x3xf32> to vector<256x3xbf16>
    %c6 = arith.constant 6 : index
    %c0_30 = arith.constant 0 : index
    %c0_31 = arith.constant 0 : index
    %61 = vector.load %arg5[%c6, %c0_30, %c0_31] : memref<9x3x32xbf16, #tpu.memory_space<vmem>>, vector<1x3x32xbf16>
    %62 = vector.shape_cast %61 : vector<1x3x32xbf16> to vector<3x32xbf16>
    %cst_32 = arith.constant dense<0.000000e+00> : vector<256x32xf32>
    %63 = tpu.matmul %60, %62, %cst_32 {dimension_numbers = #tpu.dot_dimension_numbers<[1], [0], [0], [1], [0, 0, 1, 1], [], []>} : vector<256x3xbf16>, vector<3x32xbf16>, vector<256x32xf32> -> vector<256x32xf32>
    %64 = arith.addf %57, %63 : vector<256x32xf32>
    %65 = vector.extract_strided_slice %14 {offsets = [2, 1, 0], sizes = [16, 16, 3], strides = [1, 1, 1]} : vector<18x18x3xf32> to vector<16x16x3xf32>
    %66 = vector.shape_cast %65 : vector<16x16x3xf32> to vector<256x3xf32>
    %67 = arith.truncf %66 : vector<256x3xf32> to vector<256x3xbf16>
    %c7 = arith.constant 7 : index
    %c0_33 = arith.constant 0 : index
    %c0_34 = arith.constant 0 : index
    %68 = vector.load %arg5[%c7, %c0_33, %c0_34] : memref<9x3x32xbf16, #tpu.memory_space<vmem>>, vector<1x3x32xbf16>
    %69 = vector.shape_cast %68 : vector<1x3x32xbf16> to vector<3x32xbf16>
    %cst_35 = arith.constant dense<0.000000e+00> : vector<256x32xf32>
    %70 = tpu.matmul %67, %69, %cst_35 {dimension_numbers = #tpu.dot_dimension_numbers<[1], [0], [0], [1], [0, 0, 1, 1], [], []>} : vector<256x3xbf16>, vector<3x32xbf16>, vector<256x32xf32> -> vector<256x32xf32>
    %71 = arith.addf %64, %70 : vector<256x32xf32>
    %72 = vector.extract_strided_slice %14 {offsets = [2, 2, 0], sizes = [16, 16, 3], strides = [1, 1, 1]} : vector<18x18x3xf32> to vector<16x16x3xf32>
    %73 = vector.shape_cast %72 : vector<16x16x3xf32> to vector<256x3xf32>
    %74 = arith.truncf %73 : vector<256x3xf32> to vector<256x3xbf16>
    %c8 = arith.constant 8 : index
    %c0_36 = arith.constant 0 : index
    %c0_37 = arith.constant 0 : index
    %75 = vector.load %arg5[%c8, %c0_36, %c0_37] : memref<9x3x32xbf16, #tpu.memory_space<vmem>>, vector<1x3x32xbf16>
    %76 = vector.shape_cast %75 : vector<1x3x32xbf16> to vector<3x32xbf16>
    %cst_38 = arith.constant dense<0.000000e+00> : vector<256x32xf32>
    %77 = tpu.matmul %74, %76, %cst_38 {dimension_numbers = #tpu.dot_dimension_numbers<[1], [0], [0], [1], [0, 0, 1, 1], [], []>} : vector<256x3xbf16>, vector<3x32xbf16>, vector<256x32xf32> -> vector<256x32xf32>
    %78 = arith.addf %71, %77 : vector<256x32xf32>
    %c0_39 = arith.constant 0 : index
    %c0_40 = arith.constant 0 : index
    %79 = vector.load %arg6[%c0_39, %c0_40] : memref<1x32xf32, #tpu.memory_space<vmem>>, vector<1x32xf32>
    %80 = vector.broadcast %79 : vector<1x32xf32> to vector<256x32xf32>
    %81 = arith.addf %78, %80 : vector<256x32xf32>
    %cst_41 = arith.constant 0.000000e+00 : f32
    %82 = vector.broadcast %cst_41 : f32 to vector<256x32xf32>
    %83 = arith.maximumf %81, %82 : vector<256x32xf32>
    %84 = vector.shape_cast %83 : vector<256x32xf32> to vector<16x16x32xf32>
    %cst_42 = arith.constant 0.000000e+00 : f32
    %85 = vector.broadcast %cst_42 : f32 to vector<1x16x32xf32>
    %86 = tpu.concatenate %85, %84, %85 in 0 : vector<1x16x32xf32>, vector<16x16x32xf32>, vector<1x16x32xf32> -> vector<18x16x32xf32>
    %cst_43 = arith.constant 0.000000e+00 : f32
    %87 = vector.broadcast %cst_43 : f32 to vector<18x1x32xf32>
    %88 = tpu.concatenate %87, %86, %87 in 1 : vector<18x1x32xf32>, vector<18x16x32xf32>, vector<18x1x32xf32> -> vector<18x18x32xf32>
    %cst_44 = arith.constant 0.000000e+00 : f32
    %89 = vector.broadcast %cst_44 : f32 to vector<256x64xf32>
    %90 = vector.extract_strided_slice %88 {offsets = [0, 0, 0], sizes = [16, 16, 32], strides = [1, 1, 1]} : vector<18x18x32xf32> to vector<16x16x32xf32>
    %91 = vector.shape_cast %90 : vector<16x16x32xf32> to vector<256x32xf32>
    %92 = arith.truncf %91 : vector<256x32xf32> to vector<256x32xbf16>
    %c0_45 = arith.constant 0 : index
    %c0_46 = arith.constant 0 : index
    %c0_47 = arith.constant 0 : index
    %93 = vector.load %arg7[%c0_45, %c0_46, %c0_47] : memref<9x32x64xbf16, #tpu.memory_space<vmem>>, vector<1x32x64xbf16>
    %94 = vector.shape_cast %93 : vector<1x32x64xbf16> to vector<32x64xbf16>
    %cst_48 = arith.constant dense<0.000000e+00> : vector<256x64xf32>
    %95 = tpu.matmul %92, %94, %cst_48 {dimension_numbers = #tpu.dot_dimension_numbers<[1], [0], [0], [1], [0, 0, 1, 1], [], []>} : vector<256x32xbf16>, vector<32x64xbf16>, vector<256x64xf32> -> vector<256x64xf32>
    %96 = arith.addf %89, %95 : vector<256x64xf32>
    %97 = vector.extract_strided_slice %88 {offsets = [0, 1, 0], sizes = [16, 16, 32], strides = [1, 1, 1]} : vector<18x18x32xf32> to vector<16x16x32xf32>
    %98 = vector.shape_cast %97 : vector<16x16x32xf32> to vector<256x32xf32>
    %99 = arith.truncf %98 : vector<256x32xf32> to vector<256x32xbf16>
    %c1_49 = arith.constant 1 : index
    %c0_50 = arith.constant 0 : index
    %c0_51 = arith.constant 0 : index
    %100 = vector.load %arg7[%c1_49, %c0_50, %c0_51] : memref<9x32x64xbf16, #tpu.memory_space<vmem>>, vector<1x32x64xbf16>
    %101 = vector.shape_cast %100 : vector<1x32x64xbf16> to vector<32x64xbf16>
    %cst_52 = arith.constant dense<0.000000e+00> : vector<256x64xf32>
    %102 = tpu.matmul %99, %101, %cst_52 {dimension_numbers = #tpu.dot_dimension_numbers<[1], [0], [0], [1], [0, 0, 1, 1], [], []>} : vector<256x32xbf16>, vector<32x64xbf16>, vector<256x64xf32> -> vector<256x64xf32>
    %103 = arith.addf %96, %102 : vector<256x64xf32>
    %104 = vector.extract_strided_slice %88 {offsets = [0, 2, 0], sizes = [16, 16, 32], strides = [1, 1, 1]} : vector<18x18x32xf32> to vector<16x16x32xf32>
    %105 = vector.shape_cast %104 : vector<16x16x32xf32> to vector<256x32xf32>
    %106 = arith.truncf %105 : vector<256x32xf32> to vector<256x32xbf16>
    %c2_53 = arith.constant 2 : index
    %c0_54 = arith.constant 0 : index
    %c0_55 = arith.constant 0 : index
    %107 = vector.load %arg7[%c2_53, %c0_54, %c0_55] : memref<9x32x64xbf16, #tpu.memory_space<vmem>>, vector<1x32x64xbf16>
    %108 = vector.shape_cast %107 : vector<1x32x64xbf16> to vector<32x64xbf16>
    %cst_56 = arith.constant dense<0.000000e+00> : vector<256x64xf32>
    %109 = tpu.matmul %106, %108, %cst_56 {dimension_numbers = #tpu.dot_dimension_numbers<[1], [0], [0], [1], [0, 0, 1, 1], [], []>} : vector<256x32xbf16>, vector<32x64xbf16>, vector<256x64xf32> -> vector<256x64xf32>
    %110 = arith.addf %103, %109 : vector<256x64xf32>
    %111 = vector.extract_strided_slice %88 {offsets = [1, 0, 0], sizes = [16, 16, 32], strides = [1, 1, 1]} : vector<18x18x32xf32> to vector<16x16x32xf32>
    %112 = vector.shape_cast %111 : vector<16x16x32xf32> to vector<256x32xf32>
    %113 = arith.truncf %112 : vector<256x32xf32> to vector<256x32xbf16>
    %c3_57 = arith.constant 3 : index
    %c0_58 = arith.constant 0 : index
    %c0_59 = arith.constant 0 : index
    %114 = vector.load %arg7[%c3_57, %c0_58, %c0_59] : memref<9x32x64xbf16, #tpu.memory_space<vmem>>, vector<1x32x64xbf16>
    %115 = vector.shape_cast %114 : vector<1x32x64xbf16> to vector<32x64xbf16>
    %cst_60 = arith.constant dense<0.000000e+00> : vector<256x64xf32>
    %116 = tpu.matmul %113, %115, %cst_60 {dimension_numbers = #tpu.dot_dimension_numbers<[1], [0], [0], [1], [0, 0, 1, 1], [], []>} : vector<256x32xbf16>, vector<32x64xbf16>, vector<256x64xf32> -> vector<256x64xf32>
    %117 = arith.addf %110, %116 : vector<256x64xf32>
    %118 = vector.extract_strided_slice %88 {offsets = [1, 1, 0], sizes = [16, 16, 32], strides = [1, 1, 1]} : vector<18x18x32xf32> to vector<16x16x32xf32>
    %119 = vector.shape_cast %118 : vector<16x16x32xf32> to vector<256x32xf32>
    %120 = arith.truncf %119 : vector<256x32xf32> to vector<256x32xbf16>
    %c4_61 = arith.constant 4 : index
    %c0_62 = arith.constant 0 : index
    %c0_63 = arith.constant 0 : index
    %121 = vector.load %arg7[%c4_61, %c0_62, %c0_63] : memref<9x32x64xbf16, #tpu.memory_space<vmem>>, vector<1x32x64xbf16>
    %122 = vector.shape_cast %121 : vector<1x32x64xbf16> to vector<32x64xbf16>
    %cst_64 = arith.constant dense<0.000000e+00> : vector<256x64xf32>
    %123 = tpu.matmul %120, %122, %cst_64 {dimension_numbers = #tpu.dot_dimension_numbers<[1], [0], [0], [1], [0, 0, 1, 1], [], []>} : vector<256x32xbf16>, vector<32x64xbf16>, vector<256x64xf32> -> vector<256x64xf32>
    %124 = arith.addf %117, %123 : vector<256x64xf32>
    %125 = vector.extract_strided_slice %88 {offsets = [1, 2, 0], sizes = [16, 16, 32], strides = [1, 1, 1]} : vector<18x18x32xf32> to vector<16x16x32xf32>
    %126 = vector.shape_cast %125 : vector<16x16x32xf32> to vector<256x32xf32>
    %127 = arith.truncf %126 : vector<256x32xf32> to vector<256x32xbf16>
    %c5_65 = arith.constant 5 : index
    %c0_66 = arith.constant 0 : index
    %c0_67 = arith.constant 0 : index
    %128 = vector.load %arg7[%c5_65, %c0_66, %c0_67] : memref<9x32x64xbf16, #tpu.memory_space<vmem>>, vector<1x32x64xbf16>
    %129 = vector.shape_cast %128 : vector<1x32x64xbf16> to vector<32x64xbf16>
    %cst_68 = arith.constant dense<0.000000e+00> : vector<256x64xf32>
    %130 = tpu.matmul %127, %129, %cst_68 {dimension_numbers = #tpu.dot_dimension_numbers<[1], [0], [0], [1], [0, 0, 1, 1], [], []>} : vector<256x32xbf16>, vector<32x64xbf16>, vector<256x64xf32> -> vector<256x64xf32>
    %131 = arith.addf %124, %130 : vector<256x64xf32>
    %132 = vector.extract_strided_slice %88 {offsets = [2, 0, 0], sizes = [16, 16, 32], strides = [1, 1, 1]} : vector<18x18x32xf32> to vector<16x16x32xf32>
    %133 = vector.shape_cast %132 : vector<16x16x32xf32> to vector<256x32xf32>
    %134 = arith.truncf %133 : vector<256x32xf32> to vector<256x32xbf16>
    %c6_69 = arith.constant 6 : index
    %c0_70 = arith.constant 0 : index
    %c0_71 = arith.constant 0 : index
    %135 = vector.load %arg7[%c6_69, %c0_70, %c0_71] : memref<9x32x64xbf16, #tpu.memory_space<vmem>>, vector<1x32x64xbf16>
    %136 = vector.shape_cast %135 : vector<1x32x64xbf16> to vector<32x64xbf16>
    %cst_72 = arith.constant dense<0.000000e+00> : vector<256x64xf32>
    %137 = tpu.matmul %134, %136, %cst_72 {dimension_numbers = #tpu.dot_dimension_numbers<[1], [0], [0], [1], [0, 0, 1, 1], [], []>} : vector<256x32xbf16>, vector<32x64xbf16>, vector<256x64xf32> -> vector<256x64xf32>
    %138 = arith.addf %131, %137 : vector<256x64xf32>
    %139 = vector.extract_strided_slice %88 {offsets = [2, 1, 0], sizes = [16, 16, 32], strides = [1, 1, 1]} : vector<18x18x32xf32> to vector<16x16x32xf32>
    %140 = vector.shape_cast %139 : vector<16x16x32xf32> to vector<256x32xf32>
    %141 = arith.truncf %140 : vector<256x32xf32> to vector<256x32xbf16>
    %c7_73 = arith.constant 7 : index
    %c0_74 = arith.constant 0 : index
    %c0_75 = arith.constant 0 : index
    %142 = vector.load %arg7[%c7_73, %c0_74, %c0_75] : memref<9x32x64xbf16, #tpu.memory_space<vmem>>, vector<1x32x64xbf16>
    %143 = vector.shape_cast %142 : vector<1x32x64xbf16> to vector<32x64xbf16>
    %cst_76 = arith.constant dense<0.000000e+00> : vector<256x64xf32>
    %144 = tpu.matmul %141, %143, %cst_76 {dimension_numbers = #tpu.dot_dimension_numbers<[1], [0], [0], [1], [0, 0, 1, 1], [], []>} : vector<256x32xbf16>, vector<32x64xbf16>, vector<256x64xf32> -> vector<256x64xf32>
    %145 = arith.addf %138, %144 : vector<256x64xf32>
    %146 = vector.extract_strided_slice %88 {offsets = [2, 2, 0], sizes = [16, 16, 32], strides = [1, 1, 1]} : vector<18x18x32xf32> to vector<16x16x32xf32>
    %147 = vector.shape_cast %146 : vector<16x16x32xf32> to vector<256x32xf32>
    %148 = arith.truncf %147 : vector<256x32xf32> to vector<256x32xbf16>
    %c8_77 = arith.constant 8 : index
    %c0_78 = arith.constant 0 : index
    %c0_79 = arith.constant 0 : index
    %149 = vector.load %arg7[%c8_77, %c0_78, %c0_79] : memref<9x32x64xbf16, #tpu.memory_space<vmem>>, vector<1x32x64xbf16>
    %150 = vector.shape_cast %149 : vector<1x32x64xbf16> to vector<32x64xbf16>
    %cst_80 = arith.constant dense<0.000000e+00> : vector<256x64xf32>
    %151 = tpu.matmul %148, %150, %cst_80 {dimension_numbers = #tpu.dot_dimension_numbers<[1], [0], [0], [1], [0, 0, 1, 1], [], []>} : vector<256x32xbf16>, vector<32x64xbf16>, vector<256x64xf32> -> vector<256x64xf32>
    %152 = arith.addf %145, %151 : vector<256x64xf32>
    %c0_81 = arith.constant 0 : index
    %c0_82 = arith.constant 0 : index
    %153 = vector.load %arg8[%c0_81, %c0_82] : memref<1x64xf32, #tpu.memory_space<vmem>>, vector<1x64xf32>
    %154 = vector.broadcast %153 : vector<1x64xf32> to vector<256x64xf32>
    %155 = arith.addf %152, %154 : vector<256x64xf32>
    %cst_83 = arith.constant 0.000000e+00 : f32
    %156 = vector.broadcast %cst_83 : f32 to vector<256x64xf32>
    %157 = arith.maximumf %155, %156 : vector<256x64xf32>
    %c0_i32 = arith.constant 0 : i32
    %158 = arith.cmpi eq, %arg1, %c0_i32 : i32
    %159 = arith.extui %158 : i1 to i32
    %c0_i32_84 = arith.constant 0 : i32
    %160 = arith.cmpi ne, %159, %c0_i32_84 : i32
    scf.if %160 {
      %c0_87 = arith.constant 0 : index
      %c0_88 = arith.constant 0 : index
      %c0_89 = arith.constant 0 : index
      %164 = vector.load %arg9[%c0_87, %c0_88, %c0_89] : memref<1x256x64xf32, #tpu.memory_space<vmem>>, vector<1x256x64xf32>
      %165 = vector.shape_cast %164 : vector<1x256x64xf32> to vector<256x64xf32>
      %166 = vector.shape_cast %157 : vector<256x64xf32> to vector<1x256x64xf32>
      tpu.vector_store %arg9[%c0_87, %c0_88, %c0_89], %166 {strides = array<i32>} : memref<1x256x64xf32, #tpu.memory_space<vmem>>, vector<1x256x64xf32>,
    } else {
    }
    %c0_i32_85 = arith.constant 0 : i32
    %161 = arith.cmpi ne, %arg1, %c0_i32_85 : i32
    %162 = arith.extui %161 : i1 to i32
    %c0_i32_86 = arith.constant 0 : i32
    %163 = arith.cmpi ne, %162, %c0_i32_86 : i32
    scf.if %163 {
      %c0_87 = arith.constant 0 : index
      %c0_88 = arith.constant 0 : index
      %c0_89 = arith.constant 0 : index
      %164 = vector.load %arg9[%c0_87, %c0_88, %c0_89] : memref<1x256x64xf32, #tpu.memory_space<vmem>>, vector<1x256x64xf32>
      %165 = vector.shape_cast %164 : vector<1x256x64xf32> to vector<256x64xf32>
      %166 = arith.maximumf %165, %157 : vector<256x64xf32>
      %c0_90 = arith.constant 0 : index
      %c0_91 = arith.constant 0 : index
      %c0_92 = arith.constant 0 : index
      %167 = vector.load %arg9[%c0_90, %c0_91, %c0_92] : memref<1x256x64xf32, #tpu.memory_space<vmem>>, vector<1x256x64xf32>
      %168 = vector.shape_cast %167 : vector<1x256x64xf32> to vector<256x64xf32>
      %169 = vector.shape_cast %166 : vector<256x64xf32> to vector<1x256x64xf32>
      tpu.vector_store %arg9[%c0_90, %c0_91, %c0_92], %169 {strides = array<i32>} : memref<1x256x64xf32, #tpu.memory_space<vmem>>, vector<1x256x64xf32>,
    } else {
    }
    return
  }
  func.func @transform_0(%arg0: i32, %arg1: i32) -> (i32, i32, i32, i32) {
    %c0_i32 = arith.constant 0 : i32
    %c0_i32_0 = arith.constant 0 : i32
    %c0_i32_1 = arith.constant 0 : i32
    return %arg0, %arg1, %c0_i32, %c0_i32_0 : i32, i32, i32, i32
  }
  func.func @transform_1(%arg0: i32, %arg1: i32) -> (i32, i32) {
    %c0_i32 = arith.constant 0 : i32
    %c0_i32_0 = arith.constant 0 : i32
    %c0_i32_1 = arith.constant 0 : i32
    return %c0_i32, %c0_i32_0 : i32, i32
  }
  func.func @transform_2(%arg0: i32, %arg1: i32) -> (i32, i32) {
    %c0_i32 = arith.constant 0 : i32
    %c0_i32_0 = arith.constant 0 : i32
    %c0_i32_1 = arith.constant 0 : i32
    return %c0_i32, %c0_i32_0 : i32, i32
  }
  func.func @transform_3(%arg0: i32, %arg1: i32) -> (i32, i32, i32) {
    %c0_i32 = arith.constant 0 : i32
    %c0_i32_0 = arith.constant 0 : i32
    %c0_i32_1 = arith.constant 0 : i32
    %c0_i32_2 = arith.constant 0 : i32
    return %c0_i32, %c0_i32_0, %c0_i32_1 : i32, i32, i32
  }
  func.func @transform_4(%arg0: i32, %arg1: i32) -> (i32, i32) {
    %c0_i32 = arith.constant 0 : i32
    %c0_i32_0 = arith.constant 0 : i32
    %c0_i32_1 = arith.constant 0 : i32
    return %c0_i32, %c0_i32_0 : i32, i32
  }
  func.func @transform_5(%arg0: i32, %arg1: i32) -> (i32, i32, i32) {
    %c0_i32 = arith.constant 0 : i32
    %c0_i32_0 = arith.constant 0 : i32
    %c0_i32_1 = arith.constant 0 : i32
    %c0_i32_2 = arith.constant 0 : i32
    return %c0_i32, %c0_i32_0, %c0_i32_1 : i32, i32, i32
  }
  func.func @transform_6(%arg0: i32, %arg1: i32) -> (i32, i32) {
    %c0_i32 = arith.constant 0 : i32
    %c0_i32_0 = arith.constant 0 : i32
    %c0_i32_1 = arith.constant 0 : i32
    return %c0_i32, %c0_i32_0 : i32, i32
  }
  func.func @transform_7(%arg0: i32, %arg1: i32) -> (i32, i32, i32) {
    %c0_i32 = arith.constant 0 : i32
    %c0_i32_0 = arith.constant 0 : i32
    %c0_i32_1 = arith.constant 0 : i32
    return %arg0, %c0_i32, %c0_i32_0 : i32, i32, i32
  }
}

module attributes {stable_mosaic.version = 11 : i64} {
  func.func @_post_gap_fc_kernel(%arg0: i32, %arg1: memref<2x256x64xf32, #tpu.memory_space<vmem>>, %arg2: memref<64x512xbf16, #tpu.memory_space<vmem>>, %arg3: memref<1x512xf32, #tpu.memory_space<vmem>>, %arg4: memref<512x2xf32, #tpu.memory_space<vmem>>, %arg5: memref<1x2xf32, #tpu.memory_space<vmem>>, %arg6: memref<2x2xf32, #tpu.memory_space<vmem>>) attributes {dimension_semantics = [#tpu.dimension_semantics<arbitrary>], iteration_bounds = array<i64: 4>, scalar_prefetch = 0 : i64, scratch_operands = 0 : i64, tpu.core_type = #tpu.core_type<tc>, window_params = [{pipeline_mode = #tpu.pipeline_mode<synchronous>, transform_indices = @transform_0, window_bounds = array<i64: 2, 256, 64>}, {transform_indices = @transform_1, window_bounds = array<i64: 64, 512>}, {transform_indices = @transform_2, window_bounds = array<i64: 1, 512>}, {transform_indices = @transform_3, window_bounds = array<i64: 512, 2>}, {pipeline_mode = #tpu.pipeline_mode<synchronous>, transform_indices = @transform_4, window_bounds = array<i64: 1, 2>}, {pipeline_mode = #tpu.pipeline_mode<synchronous>, transform_indices = @transform_5, window_bounds = array<i64: 2, 2>}]} {
    %c0 = arith.constant 0 : index
    %c0_0 = arith.constant 0 : index
    %c0_1 = arith.constant 0 : index
    %0 = vector.load %arg1[%c0, %c0_0, %c0_1] : memref<2x256x64xf32, #tpu.memory_space<vmem>>, vector<2x256x64xf32>
    %1 = vector.shape_cast %0 : vector<2x256x64xf32> to vector<512x64xf32>
    %2 = arith.truncf %1 : vector<512x64xf32> to vector<512x64xbf16>
    %c0_2 = arith.constant 0 : index
    %c0_3 = arith.constant 0 : index
    %3 = vector.load %arg2[%c0_2, %c0_3] : memref<64x512xbf16, #tpu.memory_space<vmem>>, vector<64x512xbf16>
    %cst = arith.constant dense<0.000000e+00> : vector<512x512xf32>
    %4 = tpu.matmul %2, %3, %cst {dimension_numbers = #tpu.dot_dimension_numbers<[1], [0], [0], [1], [0, 0, 1, 1], [], []>} : vector<512x64xbf16>, vector<64x512xbf16>, vector<512x512xf32> -> vector<512x512xf32>
    %c0_4 = arith.constant 0 : index
    %c0_5 = arith.constant 0 : index
    %5 = vector.load %arg3[%c0_4, %c0_5] : memref<1x512xf32, #tpu.memory_space<vmem>>, vector<1x512xf32>
    %6 = vector.broadcast %5 : vector<1x512xf32> to vector<512x512xf32>
    %7 = arith.addf %4, %6 : vector<512x512xf32>
    %cst_6 = arith.constant 0.000000e+00 : f32
    %8 = vector.broadcast %cst_6 : f32 to vector<512x512xf32>
    %9 = arith.maximumf %7, %8 : vector<512x512xf32>
    %10 = vector.shape_cast %9 : vector<512x512xf32> to vector<2x256x512xf32>
    %cst_7 = arith.constant dense<0.000000e+00> : vector<2x512xf32>
    %11 = vector.multi_reduction <add>, %10, %cst_7 [1] : vector<2x256x512xf32> to vector<2x512xf32>
    %c0_8 = arith.constant 0 : index
    %c0_9 = arith.constant 0 : index
    %12 = vector.load %arg4[%c0_8, %c0_9] : memref<512x2xf32, #tpu.memory_space<vmem>>, vector<512x2xf32>
    %cst_10 = arith.constant dense<0.000000e+00> : vector<2x2xf32>
    %13 = tpu.matmul %11, %12, %cst_10 {dimension_numbers = #tpu.dot_dimension_numbers<[1], [0], [0], [1], [0, 0, 1, 1], [], []>} : vector<2x512xf32>, vector<512x2xf32>, vector<2x2xf32> -> vector<2x2xf32>
    %c0_i32 = arith.constant 0 : i32
    %14 = arith.cmpi eq, %arg0, %c0_i32 : i32
    %15 = arith.extui %14 : i1 to i32
    %c0_i32_11 = arith.constant 0 : i32
    %16 = arith.cmpi ne, %15, %c0_i32_11 : i32
    scf.if %16 {
      %c0_14 = arith.constant 0 : index
      %c0_15 = arith.constant 0 : index
      %20 = vector.load %arg5[%c0_14, %c0_15] : memref<1x2xf32, #tpu.memory_space<vmem>>, vector<1x2xf32>
      %21 = vector.broadcast %20 : vector<1x2xf32> to vector<2x2xf32>
      %22 = arith.addf %13, %21 : vector<2x2xf32>
      %c0_16 = arith.constant 0 : index
      %c0_17 = arith.constant 0 : index
      %23 = vector.load %arg6[%c0_16, %c0_17] : memref<2x2xf32, #tpu.memory_space<vmem>>, vector<2x2xf32>
      tpu.vector_store %arg6[%c0_16, %c0_17], %22 {strides = array<i32>} : memref<2x2xf32, #tpu.memory_space<vmem>>, vector<2x2xf32>,
    } else {
    }
    %c0_i32_12 = arith.constant 0 : i32
    %17 = arith.cmpi ne, %arg0, %c0_i32_12 : i32
    %18 = arith.extui %17 : i1 to i32
    %c0_i32_13 = arith.constant 0 : i32
    %19 = arith.cmpi ne, %18, %c0_i32_13 : i32
    scf.if %19 {
      %c0_14 = arith.constant 0 : index
      %c0_15 = arith.constant 0 : index
      %20 = vector.load %arg6[%c0_14, %c0_15] : memref<2x2xf32, #tpu.memory_space<vmem>>, vector<2x2xf32>
      %21 = arith.addf %20, %13 : vector<2x2xf32>
      %c0_16 = arith.constant 0 : index
      %c0_17 = arith.constant 0 : index
      %22 = vector.load %arg6[%c0_16, %c0_17] : memref<2x2xf32, #tpu.memory_space<vmem>>, vector<2x2xf32>
      tpu.vector_store %arg6[%c0_16, %c0_17], %21 {strides = array<i32>} : memref<2x2xf32, #tpu.memory_space<vmem>>, vector<2x2xf32>,
    } else {
    }
    return
  }
  func.func @transform_0(%arg0: i32) -> (i32, i32, i32) {
    %c0_i32 = arith.constant 0 : i32
    %c0_i32_0 = arith.constant 0 : i32
    %c0_i32_1 = arith.constant 0 : i32
    %c0_i32_2 = arith.constant 0 : i32
    return %c0_i32, %c0_i32_0, %c0_i32_1 : i32, i32, i32
  }
  func.func @transform_1(%arg0: i32) -> (i32, i32) {
    %c0_i32 = arith.constant 0 : i32
    %c0_i32_0 = arith.constant 0 : i32
    return %c0_i32, %arg0 : i32, i32
  }
  func.func @transform_2(%arg0: i32) -> (i32, i32) {
    %c0_i32 = arith.constant 0 : i32
    %c0_i32_0 = arith.constant 0 : i32
    return %c0_i32, %arg0 : i32, i32
  }
  func.func @transform_3(%arg0: i32) -> (i32, i32) {
    %c0_i32 = arith.constant 0 : i32
    %c0_i32_0 = arith.constant 0 : i32
    return %arg0, %c0_i32 : i32, i32
  }
  func.func @transform_4(%arg0: i32) -> (i32, i32) {
    %c0_i32 = arith.constant 0 : i32
    %c0_i32_0 = arith.constant 0 : i32
    %c0_i32_1 = arith.constant 0 : i32
    return %c0_i32, %c0_i32_0 : i32, i32
  }
  func.func @transform_5(%arg0: i32) -> (i32, i32) {
    %c0_i32 = arith.constant 0 : i32
    %c0_i32_0 = arith.constant 0 : i32
    %c0_i32_1 = arith.constant 0 : i32
    return %c0_i32, %c0_i32_0 : i32, i32
  }
}

</mosaic_0001>

<bundles_post_ra>
// kernel: inception_v3_forward.3
= control target key start
LH: loop header
LB: loop body
LE: loop exit
PB: predicated region body
PF: predicated region fallthrough
CT: control target
= control target key end

     0   :  { %10 = vsyncpa [#allocation4], 0  ;;  %s2564_s18 = smov 0   ;;  %s2566_s19 = smov 0   ;;  %s3333_s0 = inlined_call_operand.vmem [shape: f32[2,256,64], index: 0, kind: input, shape index: {}]   ;;  %s3334_s1 = inlined_call_operand.vmem [shape: bf16[64,2048], index: 1, kind: input, shape index: {}]   ;;  %s3335_s2 = inlined_call_operand.vmem [shape: f32[1,2048], index: 2, kind: input, shape index: {}]   ;;  %s3336_s3 = inlined_call_operand.vmem [shape: f32[2048,2], index: 3, kind: input, shape index: {}]   ;;  %s3337_s4 = inlined_call_operand.vmem [shape: f32[1,2], index: 4, kind: input, shape index: {}]   ;;  %s3338_s5 = inlined_call_operand.hbm [shape: f32[2,2], index: 5, kind: output, shape index: {}]  }
   0x1   :  { %s2568_s20 = smov 0  }
   0x2 LB: > { %s2580_s21 = sadd.s32 4294967295, %s2530_s20   ;;  %s2583_s22 = sadd.s32 1, %s2530_s20   ;;  %s2530_s20 = sphi %s2568_s20, %s3341_s20   ;;  %s2526_s19 = sphi %s2566_s19, %s3340_s19   ;;  %s2522_s18 = sphi %s2564_s18, %s3339_s18  }
   0x3   : > { %s41_s23 = ssub.s32 %s2530_s20, %s2583_s22  ;;  %s44_s24 = sadd.s32 1, %s2526_s19 }
   0x4   : > { %p42_p0 = scmp.eq.s32.totalorder %s41_s23, 0  ;;  %p51_p1 = scmp.ne.s32.totalorder %s2526_s19, %s2522_s18 }
   0x5   : > { %p52_p2 = scmp.eq.s32.totalorder %s2530_s20, 0  ;;  %p2191_p4 = scmp.ge.s32.totalorder %s2530_s20, 4 }
   0x6   : > { %s2592_s25 = scalar_select %p42_p0, %s2526_s19, %s44_s24  }
   0x7   : > { %p53_p3 = por %p52_p2, %p51_p1  ;;  %177 = sbr.rel (%p2191_p4) target bundleno = 26 (0x1a), region = 24 }
   0xe   : > { %180 = sbr.rel (!%p53_p3) target bundleno = 26 (0x1a), region = 28  ;;  %s182_s26 = sand.u32 (%p53_p3), 1, %s2526_s19  }
   0xf   : > { %s2287_s27 = sshll.u32 (%p53_p3), %s2530_s20, 4  ;;  %s2192_s28 = sshll.u32 (%p53_p3), %s182_s26, 7 }
  0x10   : > { %s2600_s6 = scalar_lea.vmem (%p53_p3), %s3334_s1, %s2287_s27  ;;  %s184_s7 = scalar_lea.vmem (%p53_p3), [#allocation2], %s2192_s28 }
  0x11   : > { %v200_v0 = vld [vmem:[%s2600_s6] sm:$0xff] (%p53_p3)  ;;  %v202_v1 = vld [vmem:[%s2600_s6 + $0x8] sm:$0xff] (%p53_p3) }
  0x12   : > { %v204_v2 = vld [vmem:[%s2600_s6 + $0x40] sm:$0xff] (%p53_p3)  ;;  %201 = vst [vmem:[%s184_s7] sm:$0xff] (%p53_p3), %v200_v0  ;;  %203 = vst [vmem:[%s184_s7 + $0x8] sm:$0xff] (%p53_p3), %v202_v1  ;;  %v206_v3 = vld [vmem:[%s2600_s6 + $0x48] sm:$0xff] (%p53_p3) }
  0x13   : > { %205 = vst [vmem:[%s184_s7 + $0x10] sm:$0xff] (%p53_p3), %v204_v2  ;;  %v208_v4 = vld [vmem:[%s2600_s6 + $0x80] sm:$0xff] (%p53_p3)  ;;  %v210_v5 = vld [vmem:[%s2600_s6 + $0x88] sm:$0xff] (%p53_p3)  ;;  %207 = vst [vmem:[%s184_s7 + $0x18] sm:$0xff] (%p53_p3), %v206_v3 }
  0x14   : > { %209 = vst [vmem:[%s184_s7 + $0x20] sm:$0xff] (%p53_p3), %v208_v4  ;;  %211 = vst [vmem:[%s184_s7 + $0x28] sm:$0xff] (%p53_p3), %v210_v5  ;;  %v212_v6 = vld [vmem:[%s2600_s6 + $0xc0] sm:$0xff] (%p53_p3)  ;;  %v214_v7 = vld [vmem:[%s2600_s6 + $0xc8] sm:$0xff] (%p53_p3) }
  0x15   : > { %v216_v8 = vld [vmem:[%s2600_s6 + $0x100] sm:$0xff]  ;;  %213 = vst [vmem:[%s184_s7 + $0x30] sm:$0xff] %v212_v6  ;;  %215 = vst [vmem:[%s184_s7 + $0x38] sm:$0xff] %v214_v7  ;;  %v218_v9 = vld [vmem:[%s2600_s6 + $0x108] sm:$0xff] }
  0x16   : > { %217 = vst [vmem:[%s184_s7 + $0x40] sm:$0xff] %v216_v8  ;;  %v220_v10 = vld [vmem:[%s2600_s6 + $0x140] sm:$0xff]  ;;  %v222_v11 = vld [vmem:[%s2600_s6 + $0x148] sm:$0xff]  ;;  %219 = vst [vmem:[%s184_s7 + $0x48] sm:$0xff] %v218_v9 }
  0x17   : > { %221 = vst [vmem:[%s184_s7 + $0x50] sm:$0xff] %v220_v10  ;;  %223 = vst [vmem:[%s184_s7 + $0x58] sm:$0xff] %v222_v11  ;;  %v224_v12 = vld [vmem:[%s2600_s6 + $0x180] sm:$0xff]  ;;  %v226_v13 = vld [vmem:[%s2600_s6 + $0x188] sm:$0xff] }
  0x18   : > { %v228_v14 = vld [vmem:[%s2600_s6 + $0x1c0] sm:$0xff]  ;;  %225 = vst [vmem:[%s184_s7 + $0x60] sm:$0xff] %v224_v12  ;;  %227 = vst [vmem:[%s184_s7 + $0x68] sm:$0xff] %v226_v13  ;;  %v230_v15 = vld [vmem:[%s2600_s6 + $0x1c8] sm:$0xff] }
  0x19   : > { %229 = vst [vmem:[%s184_s7 + $0x70] sm:$0xff] %v228_v14  ;;  %231 = vst [vmem:[%s184_s7 + $0x78] sm:$0xff] %v230_v15 }
  0x1a PF: > { %p2195_p5 = scmp.ge.s32.totalorder %s2530_s20, 1  ;;  %p253_p6 = scmp.lt.s32.totalorder %s2530_s20, 5 }
  0x1c   : > { %p254_p7 = pnand %p2195_p5, %p253_p6 }
  0x1d   : > { %s260_s8 = sand.u32 (!%p254_p7), 1, %s2522_s18   ;;  %v2532_v16 = vmov (!%p254_p7), 0   ;;  %v304_v31 = vld [vmem:[%s3333_s0] sm:$0xff] (!%p254_p7)  ;;  %v305_v34 = vld [vmem:[%s3333_s0 + $0x8] sm:$0xff] (!%p254_p7)  ;;  %vm518_vm0 = vcmask (!%p254_p7), 523264   ;;  %v306_v36 = vld [vmem:[%s3333_s0 + $0x10] sm:$0xff] (!%p254_p7) }
  0x1e   : > { %257 = sbr.rel (%p254_p7) target bundleno = 787 (0x313), region = 59  ;;  %s2196_s9 = sshll.u32 (!%p254_p7), %s260_s8, 7  ;;  %647 = vmatprep.mubr.bf16.mxu0 (!%p254_p7), %v2532_v16  ;;  %1000 = vmatprep.mubr.bf16.mxu1 (!%p254_p7), %v2532_v16  ;;  %v368_v35 = vpack.c.bf16 (!%p254_p7), %v305_v34, %v304_v31  ;;  %v307_v37 = vld [vmem:[%s3333_s0 + $0x18] sm:$0xff] (!%p254_p7)  ;;  %v308_v39 = vld [vmem:[%s3333_s0 + $0x20] sm:$0xff] (!%p254_p7)  ;;  %v309_v40 = vld [vmem:[%s3333_s0 + $0x28] sm:$0xff] (!%p254_p7)  ;;  %vm1945_vm1 = vcmask (!%p254_p7), 1041409  }
  0x1f   : > { %s262_s10 = scalar_lea.vmem (!%p254_p7), [#allocation2], %s2196_s9  ;;  %v369_v38 = vpack.c.bf16 (!%p254_p7), %v307_v37, %v306_v36  ;;  %v370_v41 = vpack.c.bf16 (!%p254_p7), %v309_v40, %v308_v39  ;;  %v310_v42 = vld [vmem:[%s3333_s0 + $0x30] sm:$0xff] (!%p254_p7)  ;;  %v311_v43 = vld [vmem:[%s3333_s0 + $0x38] sm:$0xff] (!%p254_p7)  ;;  %v312_v45 = vld [vmem:[%s3333_s0 + $0x40] sm:$0xff] (!%p254_p7)  ;;  %s2198_s29 = sshll.u32 (!%p254_p7), %s2580_s21, 6 }
  0x20   : > { %v2454_v17 = vld [vmem:[%s262_s10 + $0x4] ss:$16 sps:$4 sm:$0xff] (!%p254_p7)   ;;  %v2456_v18 = vld [vmem:[%s262_s10 + $0xc] ss:$16 sps:$4 sm:$0xff] (!%p254_p7)   ;;  %v2458_v19 = vld [vmem:[%s262_s10] ss:$16 sps:$4 sm:$0xff] (!%p254_p7)   ;;  %v371_v44 = vpack.c.bf16 (!%p254_p7), %v311_v43, %v310_v42 }
  0x21   : > { %615 = vmatprep.subr.bf16.mxu0 (!%p254_p7), %v2454_v17  ;;  %v2459_v20 = vld [vmem:[%s262_s10 + $0x8] ss:$16 sps:$4 sm:$0xff] (!%p254_p7)   ;;  %968 = vmatprep.subr.bf16.mxu1 (!%p254_p7), %v2456_v18  ;;  %v2460_v21 = vld [vmem:[%s262_s10 + $0x24] ss:$16 sps:$4 sm:$0xff] (!%p254_p7)   ;;  %v2462_v22 = vld [vmem:[%s262_s10 + $0x2c] ss:$16 sps:$4 sm:$0xff] (!%p254_p7)  }
  0x22   : > { %616 = vmatpush1.bf16.msra.mxu0 (!%p254_p7), %v2458_v19  ;;  %969 = vmatpush1.bf16.msra.mxu1 (!%p254_p7), %v2459_v20  ;;  %v2464_v23 = vld [vmem:[%s262_s10 + $0x20] ss:$16 sps:$4 sm:$0xff] (!%p254_p7)   ;;  %v2465_v24 = vld [vmem:[%s262_s10 + $0x28] ss:$16 sps:$4 sm:$0xff] (!%p254_p7)   ;;  %v2466_v25 = vld [vmem:[%s262_s10 + $0x44] ss:$16 sps:$4 sm:$0xff] (!%p254_p7)  }
  0x23   : > { %617 = vmatprep.subr.bf16.mxu0 (!%p254_p7), %v2460_v21  ;;  %970 = vmatprep.subr.bf16.mxu1 (!%p254_p7), %v2462_v22  ;;  %v2468_v26 = vld [vmem:[%s262_s10 + $0x4c] ss:$16 sps:$4 sm:$0xff] (!%p254_p7)   ;;  %v2470_v27 = vld [vmem:[%s262_s10 + $0x40] ss:$16 sps:$4 sm:$0xff] (!%p254_p7)   ;;  %v2471_v28 = vld [vmem:[%s262_s10 + $0x48] ss:$16 sps:$4 sm:$0xff] (!%p254_p7)  }
  0x24   : > { %v2472_v29 = vld [vmem:[%s262_s10 + $0x64] ss:$16 sps:$4 sm:$0xff] (!%p254_p7)   ;;  %v2474_v30 = vld [vmem:[%s262_s10 + $0x6c] ss:$16 sps:$4 sm:$0xff] (!%p254_p7)   ;;  %v2476_v32 = vld [vmem:[%s262_s10 + $0x60] ss:$16 sps:$4 sm:$0xff] (!%p254_p7)  }
  0x25   : > { %v2477_v33 = vld [vmem:[%s262_s10 + $0x68] ss:$16 sps:$4 sm:$0xff]   ;;  %v314_v48 = vld [vmem:[%s3333_s0 + $0x50] sm:$0xff]  ;;  %v316_v51 = vld [vmem:[%s3333_s0 + $0x60] sm:$0xff]  ;;  %p298_p8 = scmp.lt.s32.totalorder %s2198_s29, 255  ;;  %s2197_s13 = sshll.u32 %s2580_s21, 2 }
  0x26   : > { %618 = vmatpush1.bf16.msra.mxu0 %v2464_v23  ;;  %971 = vmatpush1.bf16.msra.mxu1 %v2465_v24  ;;  %v313_v46 = vld [vmem:[%s3333_s0 + $0x48] sm:$0xff]  ;;  %v315_v49 = vld [vmem:[%s3333_s0 + $0x58] sm:$0xff]  ;;  %v318_v54 = vld [vmem:[%s3333_s0 + $0x70] sm:$0xff]  ;;  %p293_p9 = scmp.lt.s32.totalorder %s2197_s13, 15  ;;  %p2280_p10 = scmp.ne.s32.totalorder %s2580_s21, 0 }
  0x27   : > { %619 = vmatprep.subr.bf16.mxu0 %v2466_v25  ;;  %972 = vmatprep.subr.bf16.mxu1 %v2468_v26  ;;  %v372_v47 = vpack.c.bf16 %v313_v46, %v312_v45  ;;  %v373_v50 = vpack.c.bf16 %v315_v49, %v314_v48  ;;  %v317_v52 = vld [vmem:[%s3333_s0 + $0x68] sm:$0xff]  ;;  %v319_v55 = vld [vmem:[%s3333_s0 + $0x78] sm:$0xff]  ;;  %v320_v57 = vld [vmem:[%s3333_s0 + $0x80] sm:$0xff]  ;;  %s3343_s29 = smov (!%p298_p8, %s2198_s29), 255  ;;  %vm2106_vm2 = vcmask (!%p2280_p10), 9216  }
  0x28   : > { %v374_v53 = vpack.c.bf16 %v317_v52, %v316_v51  ;;  %v375_v56 = vpack.c.bf16 %v319_v55, %v318_v54  ;;  %v321_v58 = vld [vmem:[%s3333_s0 + $0x88] sm:$0xff]  ;;  %v322_v60 = vld [vmem:[%s3333_s0 + $0x90] sm:$0xff]  ;;  %v323_v61 = vld [vmem:[%s3333_s0 + $0x98] sm:$0xff]  ;;  %s2199_s30 = sshll.u32 %s3343_s29, 3  ;;  %s3345_s13 = smov (!%p293_p9, %s2197_s13), 15 }
  0x29   : > { %v376_v59 = vpack.c.bf16 %v321_v58, %v320_v57  ;;  %v377_v62 = vpack.c.bf16 %v323_v61, %v322_v60  ;;  %v324_v63 = vld [vmem:[%s3333_s0 + $0xa0] sm:$0xff]  ;;  %v325_v0 = vld [vmem:[%s3333_s0 + $0xa8] sm:$0xff]  ;;  %v326_v2 = vld [vmem:[%s3333_s0 + $0xb0] sm:$0xff]  ;;  %s2773_s12 = scalar_lea.vmem %s3336_s3, %s2199_s30  ;;  %s295_s28 = scalar_lea.vmem %s3335_s2, %s3345_s13 }
  0x2a   : > { %620 = vmatpush1.bf16.msra.mxu0 %v2470_v27  ;;  %973 = vmatpush1.bf16.msra.mxu1 %v2471_v28  ;;  %v378_v1 = vpack.c.bf16 %v325_v0, %v324_v63  ;;  %v327_v3 = vld [vmem:[%s3333_s0 + $0xb8] sm:$0xff]  ;;  %v328_v5 = vld [vmem:[%s3333_s0 + $0xc0] sm:$0xff]  ;;  %v329_v6 = vld [vmem:[%s3333_s0 + $0xc8] sm:$0xff] }
  0x2b   : > { %621 = vmatprep.subr.bf16.mxu0 %v2472_v29  ;;  %974 = vmatprep.subr.bf16.mxu1 %v2474_v30  ;;  %v379_v4 = vpack.c.bf16 %v327_v3, %v326_v2  ;;  %v380_v7 = vpack.c.bf16 %v329_v6, %v328_v5  ;;  %v330_v8 = vld [vmem:[%s3333_s0 + $0xd0] sm:$0xff]  ;;  %v331_v9 = vld [vmem:[%s3333_s0 + $0xd8] sm:$0xff]  ;;  %v332_v11 = vld [vmem:[%s3333_s0 + $0xe0] sm:$0xff] }
  0x2c   : > { %v381_v10 = vpack.c.bf16 %v331_v9, %v330_v8  ;;  %v333_v12 = vld [vmem:[%s3333_s0 + $0xe8] sm:$0xff]  ;;  %v1889_v13 = vld [vmem:[%s2773_s12 + $0x80] sm:$0xff]  ;;  %v334_v27 = vld [vmem:[%s3333_s0 + $0xf0] sm:$0xff] }
  0x2d   : > { %v1890_v14 = vld [vmem:[%s2773_s12 + $0x88] sm:$0xff]  ;;  %v1921_v15 = vld [vmem:[%s2773_s12 + $0x180] sm:$0xff]  ;;  %v382_v21 = vpack.c.bf16 %v333_v12, %v332_v11  ;;  %v335_v28 = vld [vmem:[%s3333_s0 + $0xf8] sm:$0xff] }
  0x2e   : > { %622 = vmatpush1.bf16.msra.mxu0 %v2476_v32  ;;  %975 = vmatpush1.bf16.msra.mxu1 %v2477_v33  ;;  %v2358_v17 = vpack.c.bf16 %v1890_v14, %v1889_v13  ;;  %v1922_v18 = vld [vmem:[%s2773_s12 + $0x188] sm:$0xff]  ;;  %v1873_v19 = vld [vmem:[%s2773_s12] sm:$0xff]  ;;  %v383_v29 = vpack.c.bf16 %v335_v28, %v334_v27  ;;  %v338_v33 = vld [vmem:[%s3333_s0 + $0x110] sm:$0xff] }
  0x2f   : > { %v1874_v20 = vld [vmem:[%s2773_s12 + $0x8] sm:$0xff]  ;;  %v2390_v22 = vpack.c.bf16 %v1922_v18, %v1921_v15  ;;  %v1905_v24 = vld [vmem:[%s2773_s12 + $0x100] sm:$0xff]  ;;  %v339_v34 = vld [vmem:[%s3333_s0 + $0x118] sm:$0xff] }
  0x30   : > { %v2360_v23 = vpack.c.bf16 %v1874_v20, %v1873_v19  ;;  %v1906_v25 = vld [vmem:[%s2773_s12 + $0x108] sm:$0xff]  ;;  %2359 = vmatprep.subr.bf16.mxu0 %v2358_v17  ;;  %v336_v30 = vld [vmem:[%s3333_s0 + $0x100] sm:$0xff]  ;;  %v1892_v36 = vld [vmem:[%s2773_s12 + $0x98] sm:$0xff] }
  0x31   : > { %2216 = vmatmul.mubr.msk.bf16.vlgmr.msra.gmra.mrb[0].mxu0 %vm518_vm0, %v368_v35  ;;  %2248 = vmatmul.mubr.msk.bf16.vlgmr.msra.gmra.mrb[0].mxu1 %vm518_vm0, %v368_v35  ;;  %v2392_v26 = vpack.c.bf16 %v1906_v25, %v1905_v24  ;;  %v337_v31 = vld [vmem:[%s3333_s0 + $0x108] sm:$0xff]  ;;  %v1891_v35 = vld [vmem:[%s2773_s12 + $0x90] sm:$0xff]  ;;  %v1924_v40 = vld [vmem:[%s2773_s12 + $0x198] sm:$0xff]  ;;  %v418_v24 = vlaneseq }
  0x32   : > { %657 = vmatprep.mubr.bf16.mxu0 %v2532_v16  ;;  %1010 = vmatprep.mubr.bf16.mxu1 %v2532_v16  ;;  %v384_v32 = vpack.c.bf16 %v337_v31, %v336_v30  ;;  %v1923_v37 = vld [vmem:[%s2773_s12 + $0x190] sm:$0xff]  ;;  %v2362_v39 = vpack.c.bf16 %v1892_v36, %v1891_v35  ;;  %v1876_v43 = vld [vmem:[%s2773_s12 + $0x18] sm:$0xff]  ;;  %v340_v45 = vld [vmem:[%s3333_s0 + $0x120] sm:$0xff] }
  0x33   : > { %2391 = vmatprep.subr.bf16.mxu1 %v2390_v22  ;;  %2361 = vmatpush3.bf16.msra.mxu0 %v2360_v23  ;;  %v1875_v42 = vld [vmem:[%s2773_s12 + $0x10] sm:$0xff]  ;;  %v341_v46 = vld [vmem:[%s3333_s0 + $0x128] sm:$0xff]  ;;  %v1908_v48 = vld [vmem:[%s2773_s12 + $0x118] sm:$0xff]  ;;  %v419_v28 = vshrl.u32 %v418_v24, 7 }
  0x34   : > { %2393 = vmatpush3.bf16.msra.mxu1 %v2392_v26  ;;  %2363 = vmatprep.subr.bf16.mxu0 %v2362_v39  ;;  %v342_v51 = vld [vmem:[%s3333_s0 + $0x130] sm:$0xff]  ;;  %v343_v52 = vld [vmem:[%s3333_s0 + $0x138] sm:$0xff]  ;;  %v344_v54 = vld [vmem:[%s3333_s0 + $0x140] sm:$0xff] }
  0x35   : > { %v345_v55 = vld [vmem:[%s3333_s0 + $0x148] sm:$0xff]  ;;  %v346_v57 = vld [vmem:[%s3333_s0 + $0x150] sm:$0xff]  ;;  %v347_v58 = vld [vmem:[%s3333_s0 + $0x158] sm:$0xff]  ;;  %v428_v39 = vsub.s32 2, %v419_v28 }
  0x36   : > { %v1894_v60 = vld [vmem:[%s2773_s12 + $0xa8] sm:$0xff]  ;;  %v1925_v61 = vld [vmem:[%s2773_s12 + $0x1a0] sm:$0xff]  ;;  %v350_v11 = vld [vmem:[%s3333_s0 + $0x170] sm:$0xff] }
  0x37   : > { %v1926_v0 = vld [vmem:[%s2773_s12 + $0x1a8] sm:$0xff]  ;;  %v1877_v2 = vld [vmem:[%s2773_s12 + $0x20] sm:$0xff]  ;;  %v351_v12 = vld [vmem:[%s3333_s0 + $0x178] sm:$0xff] }
  0x38   : > { %v1878_v3 = vld [vmem:[%s2773_s12 + $0x28] sm:$0xff]  ;;  %v348_v5 = vld [vmem:[%s3333_s0 + $0x160] sm:$0xff]  ;;  %v391_v13 = vpack.c.bf16 %v351_v12, %v350_v11  ;;  %v354_v18 = vld [vmem:[%s3333_s0 + $0x190] sm:$0xff] }
  0x39   : > { %2217 = vmatmul.mubr.msk.bf16.gmra.mrb[4].mxu0 %vm518_vm0, %v369_v38  ;;  %2249 = vmatmul.mubr.msk.bf16.gmra.mrb[4].mxu1 %vm518_vm0, %v369_v38  ;;  %v385_v38 = vpack.c.bf16 %v339_v34, %v338_v33  ;;  %v349_v6 = vld [vmem:[%s3333_s0 + $0x168] sm:$0xff]  ;;  %v352_v14 = vld [vmem:[%s3333_s0 + $0x180] sm:$0xff]  ;;  %v355_v19 = vld [vmem:[%s3333_s0 + $0x198] sm:$0xff] }
  0x3a   : > { %667 = vmatprep.mubr.bf16.mxu0 %v2532_v16  ;;  %1020 = vmatprep.mubr.bf16.mxu1 %v2532_v16  ;;  %v1910_v8 = vld [vmem:[%s2773_s12 + $0x128] sm:$0xff]  ;;  %v1895_v20 = vld [vmem:[%s2773_s12 + $0xb0] sm:$0xff]  ;;  %v393_v23 = vpack.c.bf16 %v355_v19, %v354_v18  ;;  %v1928_v26 = vld [vmem:[%s2773_s12 + $0x1b8] sm:$0xff] }
  0x3b   : > { %v353_v15 = vld [vmem:[%s3333_s0 + $0x188] sm:$0xff]  ;;  %v1927_v22 = vld [vmem:[%s2773_s12 + $0x1b0] sm:$0xff]  ;;  %v1880_v30 = vld [vmem:[%s2773_s12 + $0x38] sm:$0xff] }
  0x3c   : > { %v392_v17 = vpack.c.bf16 %v353_v15, %v352_v14  ;;  %v2402_v27 = vpack.c.bf16 %v1928_v26, %v1927_v22  ;;  %v1911_v31 = vld [vmem:[%s2773_s12 + $0x130] sm:$0xff]  ;;  %v357_v33 = vld [vmem:[%s3333_s0 + $0x1a8] sm:$0xff]  ;;  %v1912_v35 = vld [vmem:[%s2773_s12 + $0x138] sm:$0xff] }
  0x3d   : > { %v2404_v36 = vpack.c.bf16 %v1912_v35, %v1911_v31  ;;  %v361_v11 = vld [vmem:[%s3333_s0 + $0x1c8] sm:$0xff] }
  0x41   : > { %2218 = vmatmul.mubr.msk.bf16.gmra.mrb[8].mxu0 %vm518_vm0, %v370_v41  ;;  %2250 = vmatmul.mubr.msk.bf16.gmra.mrb[8].mxu1 %vm518_vm0, %v370_v41  ;;  %v2394_v41 = vpack.c.bf16 %v1924_v40, %v1923_v37  ;;  %v416_v40 = vld [vmem:[%s295_s28] sm:$0xf] }
  0x42   : > { %677 = vmatprep.mubr.bf16.mxu0 %v2532_v16  ;;  %1030 = vmatprep.mubr.bf16.mxu1 %v2532_v16 }
  0x43   : > { %2395 = vmatprep.subr.bf16.mxu1 %v2394_v41  ;;  %v424_v41 = vsub.s32 1, %v419_v28 }
  0x49   : > { %2219 = vmatmul.mubr.msk.bf16.gmra.mrb[12].mxu0 %vm518_vm0, %v371_v44  ;;  %2251 = vmatmul.mubr.msk.bf16.gmra.mrb[12].mxu1 %vm518_vm0, %v371_v44  ;;  %v1907_v44 = vld [vmem:[%s2773_s12 + $0x110] sm:$0xff] }
  0x4a   : > { %687 = vmatprep.mubr.bf16.mxu0 %v2532_v16  ;;  %1040 = vmatprep.mubr.bf16.mxu1 %v2532_v16  ;;  %v2396_v49 = vpack.c.bf16 %v1908_v48, %v1907_v44  ;;  %v2935_v44 = vrot.slane %v416_v40, %v428_v39  ;;  %v359_v48 = vld [vmem:[%s3333_s0 + $0x1b8] sm:$0xff] }
  0x4c   : > { %2397 = vmatpush3.bf16.msra.mxu1 %v2396_v49 }
  0x51   : > { %2220 = vmatmul.mubr.msk.bf16.gmra.mrb[16].mxu0 %vm518_vm0, %v372_v47  ;;  %2252 = vmatmul.mubr.msk.bf16.gmra.mrb[16].mxu1 %vm518_vm0, %v372_v47  ;;  %v2364_v47 = vpack.c.bf16 %v1876_v43, %v1875_v42  ;;  %v432_v42 = vsub.s32 3, %v419_v28 }
  0x52   : > { %697 = vmatprep.mubr.bf16.mxu0 %v2532_v16  ;;  %1050 = vmatprep.mubr.bf16.mxu1 %v2532_v16 }
  0x53   : > { %2365 = vmatpush3.bf16.msra.mxu0 %v2364_v47  ;;  %v358_v47 = vld [vmem:[%s3333_s0 + $0x1b0] sm:$0xff] }
  0x59   : > { %2221 = vmatmul.mubr.msk.bf16.gmra.mrb[20].mxu0 %vm518_vm0, %v373_v50  ;;  %2253 = vmatmul.mubr.msk.bf16.gmra.mrb[20].mxu1 %vm518_vm0, %v373_v50  ;;  %v386_v50 = vpack.c.bf16 %v341_v46, %v340_v45  ;;  %v2937_v45 = vrot.slane %v416_v40, %v424_v41  ;;  %v2939_v46 = vrot.slane %v416_v40, %v432_v42 }
  0x5a   : > { %707 = vmatprep.mubr.bf16.mxu0 %v2532_v16  ;;  %1060 = vmatprep.mubr.bf16.mxu1 %v2532_v16 }
  0x61   : > { %2222 = vmatmul.mubr.msk.bf16.gmra.mrb[24].mxu0 %vm518_vm0, %v374_v53  ;;  %2254 = vmatmul.mubr.msk.bf16.gmra.mrb[24].mxu1 %vm518_vm0, %v374_v53  ;;  %v387_v53 = vpack.c.bf16 %v343_v52, %v342_v51 }
  0x62   : > { %717 = vmatprep.mubr.bf16.mxu0 %v2532_v16  ;;  %1070 = vmatprep.mubr.bf16.mxu1 %v2532_v16 }
  0x69   : > { %2223 = vmatmul.mubr.msk.bf16.gmra.mrb[28].mxu0 %vm518_vm0, %v375_v56  ;;  %2255 = vmatmul.mubr.msk.bf16.gmra.mrb[28].mxu1 %vm518_vm0, %v375_v56  ;;  %v388_v56 = vpack.c.bf16 %v345_v55, %v344_v54  ;;  %v395_v55 = vpack.c.bf16 %v359_v48, %v358_v47 }
  0x6a   : > { %727 = vmatprep.mubr.bf16.mxu0 %v2532_v16  ;;  %1080 = vmatprep.mubr.bf16.mxu1 %v2532_v16 }
  0x71   : > { %2224 = vmatmul.mubr.msk.bf16.gmra.mrb[32].mxu0 %vm518_vm0, %v376_v59  ;;  %2256 = vmatmul.mubr.msk.bf16.gmra.mrb[32].mxu1 %vm518_vm0, %v376_v59  ;;  %v1893_v59 = vld [vmem:[%s2773_s12 + $0xa0] sm:$0xff] }
  0x72   : > { %737 = vmatprep.mubr.bf16.mxu0 %v2532_v16  ;;  %1090 = vmatprep.mubr.bf16.mxu1 %v2532_v16  ;;  %v2366_v63 = vpack.c.bf16 %v1894_v60, %v1893_v59 }
  0x74   : > { %2367 = vmatprep.subr.bf16.mxu0 %v2366_v63 }
  0x79   : > { %2225 = vmatmul.mubr.msk.bf16.gmra.mrb[36].mxu0 %vm518_vm0, %v377_v62  ;;  %2257 = vmatmul.mubr.msk.bf16.gmra.mrb[36].mxu1 %vm518_vm0, %v377_v62  ;;  %v389_v62 = vpack.c.bf16 %v347_v58, %v346_v57 }
  0x7a   : > { %747 = vmatprep.mubr.bf16.mxu0 %v2532_v16  ;;  %1100 = vmatprep.mubr.bf16.mxu1 %v2532_v16 }
  0x81   : > { %2226 = vmatmul.mubr.msk.bf16.gmra.mrb[40].mxu0 %vm518_vm0, %v378_v1  ;;  %2258 = vmatmul.mubr.msk.bf16.gmra.mrb[40].mxu1 %vm518_vm0, %v378_v1  ;;  %v2398_v1 = vpack.c.bf16 %v1926_v0, %v1925_v61 }
  0x82   : > { %757 = vmatprep.mubr.bf16.mxu0 %v2532_v16  ;;  %1110 = vmatprep.mubr.bf16.mxu1 %v2532_v16 }
  0x83   : > { %2399 = vmatprep.subr.bf16.mxu1 %v2398_v1 }
  0x89   : > { %2227 = vmatmul.mubr.msk.bf16.gmra.mrb[44].mxu0 %vm518_vm0, %v379_v4  ;;  %2259 = vmatmul.mubr.msk.bf16.gmra.mrb[44].mxu1 %vm518_vm0, %v379_v4  ;;  %v1909_v4 = vld [vmem:[%s2773_s12 + $0x120] sm:$0xff] }
  0x8a   : > { %767 = vmatprep.mubr.bf16.mxu0 %v2532_v16  ;;  %1120 = vmatprep.mubr.bf16.mxu1 %v2532_v16  ;;  %v2400_v9 = vpack.c.bf16 %v1910_v8, %v1909_v4 }
  0x8c   : > { %2401 = vmatpush3.bf16.msra.mxu1 %v2400_v9 }
  0x8d   : > { %2403 = vmatprep.subr.bf16.mxu1 %v2402_v27 }
  0x90   : > { %2405 = vmatpush3.bf16.msra.mxu1 %v2404_v36 }
  0x91   : > { %2228 = vmatmul.mubr.msk.bf16.gmra.mrb[48].mxu0 %vm518_vm0, %v380_v7  ;;  %2260 = vmatmul.mubr.msk.bf16.gmra.mrb[48].mxu1 %vm518_vm0, %v380_v7  ;;  %v2368_v7 = vpack.c.bf16 %v1878_v3, %v1877_v2 }
  0x92   : > { %777 = vmatprep.mubr.bf16.mxu0 %v2532_v16  ;;  %1130 = vmatprep.mubr.bf16.mxu1 %v2532_v16 }
  0x93   : > { %2369 = vmatpush3.bf16.msra.mxu0 %v2368_v7 }
  0x99   : > { %2229 = vmatmul.mubr.msk.bf16.gmra.mrb[52].mxu0 %vm518_vm0, %v381_v10  ;;  %2261 = vmatmul.mubr.msk.bf16.gmra.mrb[52].mxu1 %vm518_vm0, %v381_v10  ;;  %v390_v10 = vpack.c.bf16 %v349_v6, %v348_v5 }
  0x9a   : > { %787 = vmatprep.mubr.bf16.mxu0 %v2532_v16  ;;  %1140 = vmatprep.mubr.bf16.mxu1 %v2532_v16 }
  0xa1   : > { %2230 = vmatmul.mubr.msk.bf16.gmra.mrb[56].mxu0 %vm518_vm0, %v382_v21  ;;  %2262 = vmatmul.mubr.msk.bf16.gmra.mrb[56].mxu1 %vm518_vm0, %v382_v21  ;;  %v1896_v21 = vld [vmem:[%s2773_s12 + $0xb8] sm:$0xff] }
  0xa2   : > { %797 = vmatprep.mubr.bf16.mxu0 %v2532_v16  ;;  %1150 = vmatprep.mubr.bf16.mxu1 %v2532_v16  ;;  %v2370_v25 = vpack.c.bf16 %v1896_v21, %v1895_v20 }
  0xa4   : > { %2371 = vmatprep.subr.bf16.mxu0 %v2370_v25 }
  0xa9   : > { %2231 = vmatmul.mubr.msk.bf16.gmra.mrb[60].mxu0 %vm518_vm0, %v383_v29  ;;  %2263 = vmatmul.mubr.msk.bf16.gmra.mrb[60].mxu1 %vm518_vm0, %v383_v29  ;;  %v1879_v29 = vld [vmem:[%s2773_s12 + $0x30] sm:$0xff] }
  0xaa   : > { %807 = vmatprep.mubr.bf16.mxu0 %v2532_v16  ;;  %1160 = vmatprep.mubr.bf16.mxu1 %v2532_v16  ;;  %v2372_v34 = vpack.c.bf16 %v1880_v30, %v1879_v29 }
  0xac   : > { %2373 = vmatpush3.bf16.msra.mxu0 %v2372_v34 }
  0xb1   : > { %2232 = vmatmul.mubr.msk.bf16.gmra.mrb[64].mxu0 %vm518_vm0, %v384_v32  ;;  %2264 = vmatmul.mubr.msk.bf16.gmra.mrb[64].mxu1 %vm518_vm0, %v384_v32  ;;  %v356_v32 = vld [vmem:[%s3333_s0 + $0x1a0] sm:$0xff] }
  0xb2   : > { %817 = vmatprep.mubr.bf16.mxu0 %v2532_v16  ;;  %1170 = vmatprep.mubr.bf16.mxu1 %v2532_v16  ;;  %v394_v37 = vpack.c.bf16 %v357_v33, %v356_v32 }
  0xb9   : > { %2233 = vmatmul.mubr.msk.bf16.gmra.mrb[68].mxu0 %vm518_vm0, %v385_v38  ;;  %2265 = vmatmul.mubr.msk.bf16.gmra.mrb[68].mxu1 %vm518_vm0, %v385_v38  ;;  %v420_v38 = vsub.s32 0, %v419_v28 }
  0xba   : > { %827 = vmatprep.mubr.bf16.mxu0 %v2532_v16  ;;  %1180 = vmatprep.mubr.bf16.mxu1 %v2532_v16 }
  0xbb   : > { %v2933_v43 = vrot.slane %v416_v40, %v420_v38 }
  0xc1   : > { %2234 = vmatmul.mubr.msk.bf16.gmra.mrb[72].mxu0 %vm518_vm0, %v386_v50  ;;  %2266 = vmatmul.mubr.msk.bf16.gmra.mrb[72].mxu1 %vm518_vm0, %v386_v50 }
  0xc2   : > { %837 = vmatprep.mubr.bf16.mxu0 %v2532_v16  ;;  %1190 = vmatprep.mubr.bf16.mxu1 %v2532_v16 }
  0xc9   : > { %2235 = vmatmul.mubr.msk.bf16.gmra.mrb[76].mxu0 %vm518_vm0, %v387_v53  ;;  %2267 = vmatmul.mubr.msk.bf16.gmra.mrb[76].mxu1 %vm518_vm0, %v387_v53 }
  0xca   : > { %847 = vmatprep.mubr.bf16.mxu0 %v2532_v16  ;;  %1200 = vmatprep.mubr.bf16.mxu1 %v2532_v16 }
  0xd1   : > { %2236 = vmatmul.mubr.msk.bf16.gmra.mrb[80].mxu0 %vm518_vm0, %v388_v56  ;;  %2268 = vmatmul.mubr.msk.bf16.gmra.mrb[80].mxu1 %vm518_vm0, %v388_v56 }
  0xd2   : > { %857 = vmatprep.mubr.bf16.mxu0 %v2532_v16  ;;  %1210 = vmatprep.mubr.bf16.mxu1 %v2532_v16 }
  0xd9   : > { %2237 = vmatmul.mubr.msk.bf16.gmra.mrb[84].mxu0 %vm518_vm0, %v389_v62  ;;  %2269 = vmatmul.mubr.msk.bf16.gmra.mrb[84].mxu1 %vm518_vm0, %v389_v62 }
  0xda   : > { %867 = vmatprep.mubr.bf16.mxu0 %v2532_v16  ;;  %1220 = vmatprep.mubr.bf16.mxu1 %v2532_v16 }
  0xe1   : > { %2238 = vmatmul.mubr.msk.bf16.gmra.mrb[88].mxu0 %vm518_vm0, %v390_v10  ;;  %2270 = vmatmul.mubr.msk.bf16.gmra.mrb[88].mxu1 %vm518_vm0, %v390_v10  ;;  %v360_v10 = vld [vmem:[%s3333_s0 + $0x1c0] sm:$0xff] }
  0xe2   : > { %877 = vmatprep.mubr.bf16.mxu0 %v2532_v16  ;;  %1230 = vmatprep.mubr.bf16.mxu1 %v2532_v16 }
  0xe9   : > { %2239 = vmatmul.mubr.msk.bf16.gmra.mrb[92].mxu0 %vm518_vm0, %v391_v13  ;;  %2271 = vmatmul.mubr.msk.bf16.gmra.mrb[92].mxu1 %vm518_vm0, %v391_v13 }
  0xea   : > { %887 = vmatprep.mubr.bf16.mxu0 %v2532_v16  ;;  %1240 = vmatprep.mubr.bf16.mxu1 %v2532_v16 }
  0xf1   : > { %2240 = vmatmul.mubr.msk.bf16.gmra.mrb[96].mxu0 %vm518_vm0, %v392_v17  ;;  %2272 = vmatmul.mubr.msk.bf16.gmra.mrb[96].mxu1 %vm518_vm0, %v392_v17 }
  0xf2   : > { %897 = vmatprep.mubr.bf16.mxu0 %v2532_v16  ;;  %1250 = vmatprep.mubr.bf16.mxu1 %v2532_v16 }
  0xf9   : > { %2241 = vmatmul.mubr.msk.bf16.gmra.mrb[100].mxu0 %vm518_vm0, %v393_v23  ;;  %2273 = vmatmul.mubr.msk.bf16.gmra.mrb[100].mxu1 %vm518_vm0, %v393_v23  ;;  %v396_v23 = vpack.c.bf16 %v361_v11, %v360_v10 }
  0xfa   : > { %907 = vmatprep.mubr.bf16.mxu0 %v2532_v16  ;;  %1260 = vmatprep.mubr.bf16.mxu1 %v2532_v16 }
 0x101   : > { %2242 = vmatmul.mubr.msk.bf16.gmra.mrb[104].mxu0 %vm518_vm0, %v394_v37  ;;  %2274 = vmatmul.mubr.msk.bf16.gmra.mrb[104].mxu1 %vm518_vm0, %v394_v37 }
 0x102   : > { %917 = vmatprep.mubr.bf16.mxu0 %v2532_v16  ;;  %1270 = vmatprep.mubr.bf16.mxu1 %v2532_v16 }
 0x104   : > { %v649_v49 = vpop.f32.mrb[0].mxu0  ;;  %v1002_v50 = vpop.f32.mrb[0].mxu1 }
 0x105   : > { %v650_v51 = vadd.f32 %v649_v49, %v2933_v43  ;;  %v1003_v52 = vadd.f32 %v1002_v50, %v2935_v44  ;;  %v651_v53 = vpop.f32.mrb[1].mxu0  ;;  %v1004_v54 = vpop.f32.mrb[1].mxu1  ;;  %v362_v50 = vld [vmem:[%s3333_s0 + $0x1d0] sm:$0xff] }
 0x106   : > { %v652_v56 = vadd.f32 %v651_v53, %v2937_v45  ;;  %v1005_v57 = vadd.f32 %v1004_v54, %v2939_v46  ;;  %v653_v58 = vpop.f32.mrb[2].mxu0  ;;  %v1006_v59 = vpop.f32.mrb[2].mxu1 }
 0x107   : > { %v654_v60 = vadd.f32 %v653_v58, %v2933_v43  ;;  %v1007_v61 = vadd.f32 %v1006_v59, %v2935_v44  ;;  %v655_v62 = vpop.f32.mrb[3].mxu0  ;;  %v1008_v63 = vpop.f32.mrb[3].mxu1  ;;  %v1321_v2 = vmax.f32 %v650_v51, 0.0  ;;  %v1323_v3 = vmax.f32 %v1003_v52, 0.0  ;;  %v363_v51 = vld [vmem:[%s3333_s0 + $0x1d8] sm:$0xff] }
 0x108   : > { %v656_v0 = vadd.f32 %v655_v62, %v2937_v45  ;;  %v1009_v1 = vadd.f32 %v1008_v63, %v2939_v46  ;;  %v1322_v6 = vmax.f32 %v652_v56, 0.0  ;;  %v1324_v7 = vmax.f32 %v1005_v57, 0.0  ;;  %v1897_v63 = vld [vmem:[%s2773_s12 + $0xc0] sm:$0xff] }
 0x109   : > { %v1325_v4 = vmax.f32 %v654_v60, 0.0  ;;  %v1327_v5 = vmax.f32 %v1007_v61, 0.0  ;;  %2243 = vmatmul.mubr.msk.bf16.gmra.mrb[108].mxu0 %vm518_vm0, %v395_v55  ;;  %2275 = vmatmul.mubr.msk.bf16.gmra.mrb[108].mxu1 %vm518_vm0, %v395_v55  ;;  %v397_v62 = vpack.c.bf16 %v363_v51, %v362_v50 }
 0x10a   : > { %v1326_v8 = vmax.f32 %v656_v0, 0.0  ;;  %v1328_v9 = vmax.f32 %v1009_v1, 0.0  ;;  %927 = vmatprep.mubr.bf16.mxu0 %v2532_v16  ;;  %1280 = vmatprep.mubr.bf16.mxu1 %v2532_v16  ;;  %v1898_v0 = vld [vmem:[%s2773_s12 + $0xc8] sm:$0xff] }
 0x10b   : > { %v1577_v12 = vadd.f32 %v1325_v4, %v1321_v2  ;;  %v1651_v13 = vadd.f32 %v1327_v5, %v1323_v3  ;;  %v2374_v5 = vpack.c.bf16 %v1898_v0, %v1897_v63 }
 0x10c   : > { %v1614_v14 = vadd.f32 %v1326_v8, %v1322_v6  ;;  %v1688_v15 = vadd.f32 %v1328_v9, %v1324_v7  ;;  %v659_v17 = vpop.f32.mrb[4].mxu0  ;;  %v1012_v18 = vpop.f32.mrb[4].mxu1 }
 0x10d   : > { %v660_v19 = vadd.f32 %v659_v17, %v2933_v43  ;;  %v1013_v20 = vadd.f32 %v1012_v18, %v2935_v44  ;;  %v661_v21 = vpop.f32.mrb[5].mxu0  ;;  %v1014_v22 = vpop.f32.mrb[5].mxu1  ;;  %2375 = vmatprep.subr.bf16.mxu0 %v2374_v5  ;;  %v1929_v17 = vld [vmem:[%s2773_s12 + $0x1c0] sm:$0xff]  ;;  %v1930_v18 = vld [vmem:[%s2773_s12 + $0x1c8] sm:$0xff] }
 0x10e   : > { %v662_v24 = vadd.f32 %v661_v21, %v2937_v45  ;;  %v1015_v25 = vadd.f32 %v1014_v22, %v2939_v46  ;;  %v663_v26 = vpop.f32.mrb[6].mxu0  ;;  %v1016_v27 = vpop.f32.mrb[6].mxu1 }
 0x10f   : > { %v1329_v28 = vmax.f32 %v660_v19, 0.0  ;;  %v1331_v29 = vmax.f32 %v1013_v20, 0.0  ;;  %v664_v30 = vadd.f32 %v663_v26, %v2933_v43  ;;  %v1017_v31 = vadd.f32 %v1016_v27, %v2935_v44  ;;  %v665_v32 = vpop.f32.mrb[7].mxu0  ;;  %v1018_v33 = vpop.f32.mrb[7].mxu1 }
 0x110   : > { %v1330_v34 = vmax.f32 %v662_v24, 0.0  ;;  %v1332_v35 = vmax.f32 %v1015_v25, 0.0  ;;  %v666_v36 = vadd.f32 %v665_v32, %v2937_v45  ;;  %v1019_v37 = vadd.f32 %v1018_v33, %v2939_v46  ;;  %v1882_v24 = vld [vmem:[%s2773_s12 + $0x48] sm:$0xff]  ;;  %v1913_v25 = vld [vmem:[%s2773_s12 + $0x140] sm:$0xff] }
 0x111   : > { %v1578_v38 = vadd.f32 %v1577_v12, %v1329_v28  ;;  %v1652_v39 = vadd.f32 %v1651_v13, %v1331_v29  ;;  %v1333_v40 = vmax.f32 %v664_v30, 0.0  ;;  %v1335_v41 = vmax.f32 %v1017_v31, 0.0  ;;  %2244 = vmatmul.mubr.msk.bf16.gmra.mrb[112].mxu0 %vm518_vm0, %v396_v23  ;;  %2276 = vmatmul.mubr.msk.bf16.gmra.mrb[112].mxu1 %vm518_vm0, %v396_v23  ;;  %v1881_v23 = vld [vmem:[%s2773_s12 + $0x40] sm:$0xff]  ;;  %v365_v31 = vld [vmem:[%s3333_s0 + $0x1e8] sm:$0xff] }
 0x112   : > { %v1615_v42 = vadd.f32 %v1614_v14, %v1330_v34  ;;  %v1689_v47 = vadd.f32 %v1688_v15, %v1332_v35  ;;  %v1334_v48 = vmax.f32 %v666_v36, 0.0  ;;  %v1336_v49 = vmax.f32 %v1019_v37, 0.0  ;;  %937 = vmatprep.mubr.bf16.mxu0 %v2532_v16  ;;  %1290 = vmatprep.mubr.bf16.mxu1 %v2532_v16  ;;  %v364_v30 = vld [vmem:[%s3333_s0 + $0x1e0] sm:$0xff]  ;;  %v1914_v32 = vld [vmem:[%s2773_s12 + $0x148] sm:$0xff] }
 0x113   : > { %v1579_v52 = vadd.f32 %v1578_v38, %v1333_v40  ;;  %v1653_v53 = vadd.f32 %v1652_v39, %v1335_v41  ;;  %v2406_v35 = vpack.c.bf16 %v1930_v18, %v1929_v17  ;;  %v2376_v36 = vpack.c.bf16 %v1882_v24, %v1881_v23 }
 0x114   : > { %v1616_v54 = vadd.f32 %v1615_v42, %v1334_v48  ;;  %v1690_v55 = vadd.f32 %v1689_v47, %v1336_v49  ;;  %v669_v56 = vpop.f32.mrb[8].mxu0  ;;  %v1022_v57 = vpop.f32.mrb[8].mxu1  ;;  %v2408_v41 = vpack.c.bf16 %v1914_v32, %v1913_v25  ;;  %v398_v50 = vpack.c.bf16 %v365_v31, %v364_v30 }
 0x115   : > { %v670_v58 = vadd.f32 %v669_v56, %v2933_v43  ;;  %v1023_v59 = vadd.f32 %v1022_v57, %v2935_v44  ;;  %v671_v60 = vpop.f32.mrb[9].mxu0  ;;  %v1024_v61 = vpop.f32.mrb[9].mxu1  ;;  %2407 = vmatprep.subr.bf16.mxu1 %v2406_v35  ;;  %2377 = vmatpush3.bf16.msra.mxu0 %v2376_v36 }
 0x116   : > { %v672_v1 = vadd.f32 %v671_v60, %v2937_v45  ;;  %v1025_v2 = vadd.f32 %v1024_v61, %v2939_v46  ;;  %v673_v3 = vpop.f32.mrb[10].mxu0  ;;  %v1026_v4 = vpop.f32.mrb[10].mxu1  ;;  %2409 = vmatpush3.bf16.msra.mxu1 %v2408_v41 }
 0x117   : > { %v1337_v6 = vmax.f32 %v670_v58, 0.0  ;;  %v1339_v7 = vmax.f32 %v1023_v59, 0.0  ;;  %v674_v8 = vadd.f32 %v673_v3, %v2933_v43  ;;  %v1027_v9 = vadd.f32 %v1026_v4, %v2935_v44  ;;  %v675_v10 = vpop.f32.mrb[11].mxu0  ;;  %v1028_v11 = vpop.f32.mrb[11].mxu1 }
 0x118   : > { %v1338_v12 = vmax.f32 %v672_v1, 0.0  ;;  %v1340_v13 = vmax.f32 %v1025_v2, 0.0  ;;  %v676_v14 = vadd.f32 %v675_v10, %v2937_v45  ;;  %v1029_v15 = vadd.f32 %v1028_v11, %v2939_v46  ;;  %v367_v10 = vld [vmem:[%s3333_s0 + $0x1f8] sm:$0xff] }
 0x119   : > { %v1580_v19 = vadd.f32 %v1579_v52, %v1337_v6  ;;  %v1654_v20 = vadd.f32 %v1653_v53, %v1339_v7  ;;  %v1341_v21 = vmax.f32 %v674_v8, 0.0  ;;  %v1343_v22 = vmax.f32 %v1027_v9, 0.0  ;;  %2245 = vmatmul.mubr.msk.bf16.gmra.mrb[116].mxu0 %vm518_vm0, %v397_v62  ;;  %2277 = vmatmul.mubr.msk.bf16.gmra.mrb[116].mxu1 %vm518_vm0, %v397_v62  ;;  %v366_v9 = vld [vmem:[%s3333_s0 + $0x1f0] sm:$0xff] }
 0x11a   : > { %v1617_v26 = vadd.f32 %v1616_v54, %v1338_v12  ;;  %v1691_v27 = vadd.f32 %v1690_v55, %v1340_v13  ;;  %v1342_v28 = vmax.f32 %v676_v14, 0.0  ;;  %v1344_v29 = vmax.f32 %v1029_v15, 0.0  ;;  %947 = vmatprep.mubr.bf16.mxu0 %v2532_v16  ;;  %1300 = vmatprep.mubr.bf16.mxu1 %v2532_v16 }
 0x11b   : > { %v1581_v33 = vadd.f32 %v1580_v19, %v1341_v21  ;;  %v1655_v34 = vadd.f32 %v1654_v20, %v1343_v22  ;;  %v399_v21 = vpack.c.bf16 %v367_v10, %v366_v9 }
 0x11c   : > { %v1618_v37 = vadd.f32 %v1617_v26, %v1342_v28  ;;  %v1692_v38 = vadd.f32 %v1691_v27, %v1344_v29  ;;  %v679_v39 = vpop.f32.mrb[12].mxu0  ;;  %v1032_v40 = vpop.f32.mrb[12].mxu1 }
 0x11d   : > { %v680_v42 = vadd.f32 %v679_v39, %v2933_v43  ;;  %v1033_v47 = vadd.f32 %v1032_v40, %v2935_v44  ;;  %v681_v48 = vpop.f32.mrb[13].mxu0  ;;  %v1034_v49 = vpop.f32.mrb[13].mxu1 }
 0x11e   : > { %v682_v51 = vadd.f32 %v681_v48, %v2937_v45  ;;  %v1035_v52 = vadd.f32 %v1034_v49, %v2939_v46  ;;  %v683_v53 = vpop.f32.mrb[14].mxu0  ;;  %v1036_v54 = vpop.f32.mrb[14].mxu1 }
 0x11f   : > { %v1345_v55 = vmax.f32 %v680_v42, 0.0  ;;  %v1347_v56 = vmax.f32 %v1033_v47, 0.0  ;;  %v684_v57 = vadd.f32 %v683_v53, %v2933_v43  ;;  %v1037_v58 = vadd.f32 %v1036_v54, %v2935_v44  ;;  %v685_v59 = vpop.f32.mrb[15].mxu0  ;;  %v1038_v60 = vpop.f32.mrb[15].mxu1 }
 0x120   : > { %v1346_v61 = vmax.f32 %v682_v51, 0.0  ;;  %v1348_v62 = vmax.f32 %v1035_v52, 0.0  ;;  %v686_v63 = vadd.f32 %v685_v59, %v2937_v45  ;;  %v1039_v0 = vadd.f32 %v1038_v60, %v2939_v46 }
 0x121   : > { %v1582_v1 = vadd.f32 %v1581_v33, %v1345_v55  ;;  %v1656_v2 = vadd.f32 %v1655_v34, %v1347_v56  ;;  %v1349_v3 = vmax.f32 %v684_v57, 0.0  ;;  %v1351_v4 = vmax.f32 %v1037_v58, 0.0  ;;  %2246 = vmatmul.mubr.msk.bf16.gmra.mrb[120].mxu0 %vm518_vm0, %v398_v50  ;;  %2278 = vmatmul.mubr.msk.bf16.gmra.mrb[120].mxu1 %vm518_vm0, %v398_v50 }
 0x122   : > { %v1619_v5 = vadd.f32 %v1618_v37, %v1346_v61  ;;  %v1693_v6 = vadd.f32 %v1692_v38, %v1348_v62  ;;  %v1350_v7 = vmax.f32 %v686_v63, 0.0  ;;  %v1352_v8 = vmax.f32 %v1039_v0, 0.0  ;;  %957 = vmatprep.mubr.bf16.mxu0 %v2532_v16  ;;  %1310 = vmatprep.mubr.bf16.mxu1 %v2532_v16 }
 0x123   : > { %v1583_v11 = vadd.f32 %v1582_v1, %v1349_v3  ;;  %v1657_v12 = vadd.f32 %v1656_v2, %v1351_v4 }
 0x124   : > { %v1620_v13 = vadd.f32 %v1619_v5, %v1350_v7  ;;  %v1694_v14 = vadd.f32 %v1693_v6, %v1352_v8  ;;  %v689_v15 = vpop.f32.mrb[16].mxu0  ;;  %v1042_v17 = vpop.f32.mrb[16].mxu1 }
 0x125   : > { %v690_v18 = vadd.f32 %v689_v15, %v2933_v43  ;;  %v1043_v19 = vadd.f32 %v1042_v17, %v2935_v44  ;;  %v691_v20 = vpop.f32.mrb[17].mxu0  ;;  %v1044_v16 = vpop.f32.mrb[17].mxu1 }
 0x126   : > { %v692_v22 = vadd.f32 %v691_v20, %v2937_v45  ;;  %v1045_v23 = vadd.f32 %v1044_v16, %v2939_v46  ;;  %v693_v24 = vpop.f32.mrb[18].mxu0  ;;  %v1046_v25 = vpop.f32.mrb[18].mxu1 }
 0x127   : > { %v1353_v26 = vmax.f32 %v690_v18, 0.0  ;;  %v1355_v27 = vmax.f32 %v1043_v19, 0.0  ;;  %v694_v28 = vadd.f32 %v693_v24, %v2933_v43  ;;  %v1047_v29 = vadd.f32 %v1046_v25, %v2935_v44  ;;  %v695_v30 = vpop.f32.mrb[19].mxu0  ;;  %v1048_v31 = vpop.f32.mrb[19].mxu1  ;;  %v1931_v24 = vld [vmem:[%s2773_s12 + $0x1d0] sm:$0xff] }
 0x128   : > { %v1354_v32 = vmax.f32 %v692_v22, 0.0  ;;  %v1356_v33 = vmax.f32 %v1045_v23, 0.0  ;;  %v696_v34 = vadd.f32 %v695_v30, %v2937_v45  ;;  %v1049_v35 = vadd.f32 %v1048_v31, %v2939_v46  ;;  %v1899_v22 = vld [vmem:[%s2773_s12 + $0xd0] sm:$0xff]  ;;  %v1900_v23 = vld [vmem:[%s2773_s12 + $0xd8] sm:$0xff] }
 0x129   : > { %v1584_v36 = vadd.f32 %v1583_v11, %v1353_v26  ;;  %v1658_v37 = vadd.f32 %v1657_v12, %v1355_v27  ;;  %v1357_v38 = vmax.f32 %v694_v28, 0.0  ;;  %v1359_v39 = vmax.f32 %v1047_v29, 0.0  ;;  %2247 = vmatmul.mubr.msk.bf16.gmra.mrb[124].mxu0 %vm518_vm0, %v399_v21  ;;  %2279 = vmatmul.mubr.msk.bf16.gmra.mrb[124].mxu1 %vm518_vm0, %v399_v21  ;;  %v1932_v30 = vld [vmem:[%s2773_s12 + $0x1d8] sm:$0xff] }
 0x12a   : > { %v1621_v40 = vadd.f32 %v1620_v13, %v1354_v32  ;;  %v1695_v41 = vadd.f32 %v1694_v14, %v1356_v33  ;;  %v1358_v42 = vmax.f32 %v696_v34, 0.0  ;;  %v1360_v47 = vmax.f32 %v1049_v35, 0.0 }
 0x12b   : > { %v1585_v48 = vadd.f32 %v1584_v36, %v1357_v38  ;;  %v1659_v49 = vadd.f32 %v1658_v37, %v1359_v39  ;;  %v2378_v29 = vpack.c.bf16 %v1900_v23, %v1899_v22  ;;  %v2410_v35 = vpack.c.bf16 %v1932_v30, %v1931_v24 }
 0x12c   : > { %v1622_v50 = vadd.f32 %v1621_v40, %v1358_v42  ;;  %v1696_v51 = vadd.f32 %v1695_v41, %v1360_v47  ;;  %v699_v52 = vpop.f32.mrb[20].mxu0  ;;  %v1052_v53 = vpop.f32.mrb[20].mxu1 }
 0x12d   : > { %v700_v54 = vadd.f32 %v699_v52, %v2933_v43  ;;  %v1053_v55 = vadd.f32 %v1052_v53, %v2935_v44  ;;  %v701_v56 = vpop.f32.mrb[21].mxu0  ;;  %v1054_v57 = vpop.f32.mrb[21].mxu1  ;;  %2379 = vmatprep.subr.bf16.mxu0 %v2378_v29  ;;  %2411 = vmatprep.subr.bf16.mxu1 %v2410_v35 }
 0x12e   : > { %v702_v58 = vadd.f32 %v701_v56, %v2937_v45  ;;  %v1055_v59 = vadd.f32 %v1054_v57, %v2939_v46  ;;  %v703_v60 = vpop.f32.mrb[22].mxu0  ;;  %v1056_v61 = vpop.f32.mrb[22].mxu1  ;;  %v1915_v56 = vld [vmem:[%s2773_s12 + $0x150] sm:$0xff] }
 0x12f   : > { %v1361_v62 = vmax.f32 %v700_v54, 0.0  ;;  %v1363_v63 = vmax.f32 %v1053_v55, 0.0  ;;  %v704_v0 = vadd.f32 %v703_v60, %v2933_v43  ;;  %v1057_v1 = vadd.f32 %v1056_v61, %v2935_v44  ;;  %v705_v2 = vpop.f32.mrb[23].mxu0  ;;  %v1058_v3 = vpop.f32.mrb[23].mxu1  ;;  %v1883_v54 = vld [vmem:[%s2773_s12 + $0x50] sm:$0xff]  ;;  %v1884_v55 = vld [vmem:[%s2773_s12 + $0x58] sm:$0xff] }
 0x130   : > { %v1362_v4 = vmax.f32 %v702_v58, 0.0  ;;  %v1364_v5 = vmax.f32 %v1055_v59, 0.0  ;;  %v706_v6 = vadd.f32 %v705_v2, %v2937_v45  ;;  %v1059_v7 = vadd.f32 %v1058_v3, %v2939_v46  ;;  %v1916_v61 = vld [vmem:[%s2773_s12 + $0x158] sm:$0xff] }
 0x131   : > { %v1586_v8 = vadd.f32 %v1585_v48, %v1361_v62  ;;  %v1660_v9 = vadd.f32 %v1659_v49, %v1363_v63  ;;  %v1365_v10 = vmax.f32 %v704_v0, 0.0  ;;  %v1367_v11 = vmax.f32 %v1057_v1, 0.0 }
 0x132   : > { %v1623_v12 = vadd.f32 %v1622_v50, %v1362_v4  ;;  %v1697_v13 = vadd.f32 %v1696_v51, %v1364_v5  ;;  %v1366_v14 = vmax.f32 %v706_v6, 0.0  ;;  %v1368_v15 = vmax.f32 %v1059_v7, 0.0 }
 0x133   : > { %v1587_v17 = vadd.f32 %v1586_v8, %v1365_v10  ;;  %v1661_v18 = vadd.f32 %v1660_v9, %v1367_v11  ;;  %v2380_v0 = vpack.c.bf16 %v1884_v55, %v1883_v54  ;;  %v2412_v1 = vpack.c.bf16 %v1916_v61, %v1915_v56 }
 0x134   : > { %v1624_v19 = vadd.f32 %v1623_v12, %v1366_v14  ;;  %v1698_v20 = vadd.f32 %v1697_v13, %v1368_v15  ;;  %v709_v16 = vpop.f32.mrb[24].mxu0  ;;  %v1062_v21 = vpop.f32.mrb[24].mxu1 }
 0x135   : > { %v710_v25 = vadd.f32 %v709_v16, %v2933_v43  ;;  %v1063_v26 = vadd.f32 %v1062_v21, %v2935_v44  ;;  %v711_v27 = vpop.f32.mrb[25].mxu0  ;;  %v1064_v28 = vpop.f32.mrb[25].mxu1  ;;  %2381 = vmatpush3.bf16.msra.mxu0 %v2380_v0  ;;  %2413 = vmatpush3.bf16.msra.mxu1 %v2412_v1 }
 0x136   : > { %v712_v31 = vadd.f32 %v711_v27, %v2937_v45  ;;  %v1065_v32 = vadd.f32 %v1064_v28, %v2939_v46  ;;  %v713_v33 = vpop.f32.mrb[26].mxu0  ;;  %v1066_v34 = vpop.f32.mrb[26].mxu1 }
 0x137   : > { %v1369_v36 = vmax.f32 %v710_v25, 0.0  ;;  %v1371_v37 = vmax.f32 %v1063_v26, 0.0  ;;  %v714_v38 = vadd.f32 %v713_v33, %v2933_v43  ;;  %v1067_v39 = vadd.f32 %v1066_v34, %v2935_v44  ;;  %v715_v40 = vpop.f32.mrb[27].mxu0  ;;  %v1068_v41 = vpop.f32.mrb[27].mxu1 }
 0x138   : > { %v1370_v42 = vmax.f32 %v712_v31, 0.0  ;;  %v1372_v47 = vmax.f32 %v1065_v32, 0.0  ;;  %v716_v48 = vadd.f32 %v715_v40, %v2937_v45  ;;  %v1069_v49 = vadd.f32 %v1068_v41, %v2939_v46 }
 0x139   : > { %v1588_v50 = vadd.f32 %v1587_v17, %v1369_v36  ;;  %v1662_v51 = vadd.f32 %v1661_v18, %v1371_v37  ;;  %v1373_v52 = vmax.f32 %v714_v38, 0.0  ;;  %v1375_v53 = vmax.f32 %v1067_v39, 0.0 }
 0x13a   : > { %v1625_v57 = vadd.f32 %v1624_v19, %v1370_v42  ;;  %v1699_v58 = vadd.f32 %v1698_v20, %v1372_v47  ;;  %v1374_v59 = vmax.f32 %v716_v48, 0.0  ;;  %v1376_v60 = vmax.f32 %v1069_v49, 0.0 }
 0x13b   : > { %v1589_v62 = vadd.f32 %v1588_v50, %v1373_v52  ;;  %v1663_v63 = vadd.f32 %v1662_v51, %v1375_v53 }
 0x13c   : > { %v1626_v2 = vadd.f32 %v1625_v57, %v1374_v59  ;;  %v1700_v3 = vadd.f32 %v1699_v58, %v1376_v60  ;;  %v719_v4 = vpop.f32.mrb[28].mxu0  ;;  %v1072_v5 = vpop.f32.mrb[28].mxu1 }
 0x13d   : > { %v720_v6 = vadd.f32 %v719_v4, %v2933_v43  ;;  %v1073_v7 = vadd.f32 %v1072_v5, %v2935_v44  ;;  %v721_v8 = vpop.f32.mrb[29].mxu0  ;;  %v1074_v9 = vpop.f32.mrb[29].mxu1 }
 0x13e   : > { %v722_v10 = vadd.f32 %v721_v8, %v2937_v45  ;;  %v1075_v11 = vadd.f32 %v1074_v9, %v2939_v46  ;;  %v723_v12 = vpop.f32.mrb[30].mxu0  ;;  %v1076_v13 = vpop.f32.mrb[30].mxu1 }
 0x13f   : > { %v1377_v14 = vmax.f32 %v720_v6, 0.0  ;;  %v1379_v15 = vmax.f32 %v1073_v7, 0.0  ;;  %v724_v17 = vadd.f32 %v723_v12, %v2933_v43  ;;  %v1077_v18 = vadd.f32 %v1076_v13, %v2935_v44  ;;  %v725_v19 = vpop.f32.mrb[31].mxu0  ;;  %v1078_v20 = vpop.f32.mrb[31].mxu1 }
 0x140   : > { %v1378_v16 = vmax.f32 %v722_v10, 0.0  ;;  %v1380_v21 = vmax.f32 %v1075_v11, 0.0  ;;  %v726_v22 = vadd.f32 %v725_v19, %v2937_v45  ;;  %v1079_v23 = vadd.f32 %v1078_v20, %v2939_v46 }
 0x141   : > { %v1590_v24 = vadd.f32 %v1589_v62, %v1377_v14  ;;  %v1664_v25 = vadd.f32 %v1663_v63, %v1379_v15  ;;  %v1381_v26 = vmax.f32 %v724_v17, 0.0  ;;  %v1383_v27 = vmax.f32 %v1077_v18, 0.0 }
 0x142   : > { %v1627_v28 = vadd.f32 %v1626_v2, %v1378_v16  ;;  %v1701_v29 = vadd.f32 %v1700_v3, %v1380_v21  ;;  %v1382_v30 = vmax.f32 %v726_v22, 0.0  ;;  %v1384_v31 = vmax.f32 %v1079_v23, 0.0 }
 0x143   : > { %v1591_v32 = vadd.f32 %v1590_v24, %v1381_v26  ;;  %v1665_v33 = vadd.f32 %v1664_v25, %v1383_v27 }
 0x144   : > { %v1628_v34 = vadd.f32 %v1627_v28, %v1382_v30  ;;  %v1702_v35 = vadd.f32 %v1701_v29, %v1384_v31  ;;  %v729_v36 = vpop.f32.mrb[32].mxu0  ;;  %v1082_v37 = vpop.f32.mrb[32].mxu1 }
 0x145   : > { %v730_v38 = vadd.f32 %v729_v36, %v2933_v43  ;;  %v1083_v39 = vadd.f32 %v1082_v37, %v2935_v44  ;;  %v731_v40 = vpop.f32.mrb[33].mxu0  ;;  %v1084_v41 = vpop.f32.mrb[33].mxu1 }
 0x146   : > { %v732_v42 = vadd.f32 %v731_v40, %v2937_v45  ;;  %v1085_v47 = vadd.f32 %v1084_v41, %v2939_v46  ;;  %v733_v48 = vpop.f32.mrb[34].mxu0  ;;  %v1086_v49 = vpop.f32.mrb[34].mxu1 }
 0x147   : > { %v1385_v50 = vmax.f32 %v730_v38, 0.0  ;;  %v1387_v51 = vmax.f32 %v1083_v39, 0.0  ;;  %v734_v52 = vadd.f32 %v733_v48, %v2933_v43  ;;  %v1087_v53 = vadd.f32 %v1086_v49, %v2935_v44  ;;  %v735_v54 = vpop.f32.mrb[35].mxu0  ;;  %v1088_v55 = vpop.f32.mrb[35].mxu1  ;;  %v1933_v48 = vld [vmem:[%s2773_s12 + $0x1e0] sm:$0xff] }
 0x148   : > { %v1386_v56 = vmax.f32 %v732_v42, 0.0  ;;  %v1388_v57 = vmax.f32 %v1085_v47, 0.0  ;;  %v736_v58 = vadd.f32 %v735_v54, %v2937_v45  ;;  %v1089_v59 = vadd.f32 %v1088_v55, %v2939_v46  ;;  %v1901_v42 = vld [vmem:[%s2773_s12 + $0xe0] sm:$0xff]  ;;  %v1902_v47 = vld [vmem:[%s2773_s12 + $0xe8] sm:$0xff] }
 0x149   : > { %v1592_v60 = vadd.f32 %v1591_v32, %v1385_v50  ;;  %v1666_v61 = vadd.f32 %v1665_v33, %v1387_v51  ;;  %v1389_v62 = vmax.f32 %v734_v52, 0.0  ;;  %v1391_v63 = vmax.f32 %v1087_v53, 0.0  ;;  %v1934_v54 = vld [vmem:[%s2773_s12 + $0x1e8] sm:$0xff] }
 0x14a   : > { %v1629_v0 = vadd.f32 %v1628_v34, %v1386_v56  ;;  %v1703_v1 = vadd.f32 %v1702_v35, %v1388_v57  ;;  %v1390_v2 = vmax.f32 %v736_v58, 0.0  ;;  %v1392_v3 = vmax.f32 %v1089_v59, 0.0 }
 0x14b   : > { %v1593_v4 = vadd.f32 %v1592_v60, %v1389_v62  ;;  %v1667_v5 = vadd.f32 %v1666_v61, %v1391_v63  ;;  %v2382_v53 = vpack.c.bf16 %v1902_v47, %v1901_v42  ;;  %v2414_v59 = vpack.c.bf16 %v1934_v54, %v1933_v48 }
 0x14c   : > { %v1630_v6 = vadd.f32 %v1629_v0, %v1390_v2  ;;  %v1704_v7 = vadd.f32 %v1703_v1, %v1392_v3  ;;  %v739_v8 = vpop.f32.mrb[36].mxu0  ;;  %v1092_v9 = vpop.f32.mrb[36].mxu1 }
 0x14d   : > { %v740_v10 = vadd.f32 %v739_v8, %v2933_v43  ;;  %v1093_v11 = vadd.f32 %v1092_v9, %v2935_v44  ;;  %v741_v12 = vpop.f32.mrb[37].mxu0  ;;  %v1094_v13 = vpop.f32.mrb[37].mxu1  ;;  %2383 = vmatprep.subr.bf16.mxu0 %v2382_v53  ;;  %2415 = vmatprep.subr.bf16.mxu1 %v2414_v59 }
 0x14e   : > { %v742_v14 = vadd.f32 %v741_v12, %v2937_v45  ;;  %v1095_v15 = vadd.f32 %v1094_v13, %v2939_v46  ;;  %v743_v17 = vpop.f32.mrb[38].mxu0  ;;  %v1096_v18 = vpop.f32.mrb[38].mxu1  ;;  %v1917_v12 = vld [vmem:[%s2773_s12 + $0x160] sm:$0xff] }
 0x14f   : > { %v1393_v19 = vmax.f32 %v740_v10, 0.0  ;;  %v1395_v20 = vmax.f32 %v1093_v11, 0.0  ;;  %v744_v16 = vadd.f32 %v743_v17, %v2933_v43  ;;  %v1097_v21 = vadd.f32 %v1096_v18, %v2935_v44  ;;  %v745_v22 = vpop.f32.mrb[39].mxu0  ;;  %v1098_v23 = vpop.f32.mrb[39].mxu1  ;;  %v1885_v10 = vld [vmem:[%s2773_s12 + $0x60] sm:$0xff]  ;;  %v1886_v11 = vld [vmem:[%s2773_s12 + $0x68] sm:$0xff] }
 0x150   : > { %v1394_v24 = vmax.f32 %v742_v14, 0.0  ;;  %v1396_v25 = vmax.f32 %v1095_v15, 0.0  ;;  %v746_v26 = vadd.f32 %v745_v22, %v2937_v45  ;;  %v1099_v27 = vadd.f32 %v1098_v23, %v2939_v46  ;;  %v1918_v18 = vld [vmem:[%s2773_s12 + $0x168] sm:$0xff] }
 0x151   : > { %v1594_v28 = vadd.f32 %v1593_v4, %v1393_v19  ;;  %v1668_v29 = vadd.f32 %v1667_v5, %v1395_v20  ;;  %v1397_v30 = vmax.f32 %v744_v16, 0.0  ;;  %v1399_v31 = vmax.f32 %v1097_v21, 0.0 }
 0x152   : > { %v1631_v32 = vadd.f32 %v1630_v6, %v1394_v24  ;;  %v1705_v33 = vadd.f32 %v1704_v7, %v1396_v25  ;;  %v1398_v34 = vmax.f32 %v746_v26, 0.0  ;;  %v1400_v35 = vmax.f32 %v1099_v27, 0.0 }
 0x153   : > { %v1595_v36 = vadd.f32 %v1594_v28, %v1397_v30  ;;  %v1669_v37 = vadd.f32 %v1668_v29, %v1399_v31  ;;  %v2384_v16 = vpack.c.bf16 %v1886_v11, %v1885_v10  ;;  %v2416_v21 = vpack.c.bf16 %v1918_v18, %v1917_v12 }
 0x154   : > { %v1632_v38 = vadd.f32 %v1631_v32, %v1398_v34  ;;  %v1706_v39 = vadd.f32 %v1705_v33, %v1400_v35  ;;  %v749_v40 = vpop.f32.mrb[40].mxu0  ;;  %v1102_v41 = vpop.f32.mrb[40].mxu1 }
 0x155   : > { %v750_v49 = vadd.f32 %v749_v40, %v2933_v43  ;;  %v1103_v50 = vadd.f32 %v1102_v41, %v2935_v44  ;;  %v751_v51 = vpop.f32.mrb[41].mxu0  ;;  %v1104_v52 = vpop.f32.mrb[41].mxu1  ;;  %2385 = vmatpush3.bf16.msra.mxu0 %v2384_v16  ;;  %2417 = vmatpush3.bf16.msra.mxu1 %v2416_v21 }
 0x156   : > { %v752_v55 = vadd.f32 %v751_v51, %v2937_v45  ;;  %v1105_v56 = vadd.f32 %v1104_v52, %v2939_v46  ;;  %v753_v57 = vpop.f32.mrb[42].mxu0  ;;  %v1106_v58 = vpop.f32.mrb[42].mxu1 }
 0x157   : > { %v1401_v60 = vmax.f32 %v750_v49, 0.0  ;;  %v1403_v61 = vmax.f32 %v1103_v50, 0.0  ;;  %v754_v62 = vadd.f32 %v753_v57, %v2933_v43  ;;  %v1107_v63 = vadd.f32 %v1106_v58, %v2935_v44  ;;  %v755_v0 = vpop.f32.mrb[43].mxu0  ;;  %v1108_v1 = vpop.f32.mrb[43].mxu1 }
 0x158   : > { %v1402_v2 = vmax.f32 %v752_v55, 0.0  ;;  %v1404_v3 = vmax.f32 %v1105_v56, 0.0  ;;  %v756_v4 = vadd.f32 %v755_v0, %v2937_v45  ;;  %v1109_v5 = vadd.f32 %v1108_v1, %v2939_v46 }
 0x159   : > { %v1596_v6 = vadd.f32 %v1595_v36, %v1401_v60  ;;  %v1670_v7 = vadd.f32 %v1669_v37, %v1403_v61  ;;  %v1405_v8 = vmax.f32 %v754_v62, 0.0  ;;  %v1407_v9 = vmax.f32 %v1107_v63, 0.0 }
 0x15a   : > { %v1633_v13 = vadd.f32 %v1632_v38, %v1402_v2  ;;  %v1707_v14 = vadd.f32 %v1706_v39, %v1404_v3  ;;  %v1406_v15 = vmax.f32 %v756_v4, 0.0  ;;  %v1408_v17 = vmax.f32 %v1109_v5, 0.0 }
 0x15b   : > { %v1597_v19 = vadd.f32 %v1596_v6, %v1405_v8  ;;  %v1671_v20 = vadd.f32 %v1670_v7, %v1407_v9 }
 0x15c   : > { %v1634_v22 = vadd.f32 %v1633_v13, %v1406_v15  ;;  %v1708_v23 = vadd.f32 %v1707_v14, %v1408_v17  ;;  %v759_v24 = vpop.f32.mrb[44].mxu0  ;;  %v1112_v25 = vpop.f32.mrb[44].mxu1 }
 0x15d   : > { %v760_v26 = vadd.f32 %v759_v24, %v2933_v43  ;;  %v1113_v27 = vadd.f32 %v1112_v25, %v2935_v44  ;;  %v761_v28 = vpop.f32.mrb[45].mxu0  ;;  %v1114_v29 = vpop.f32.mrb[45].mxu1 }
 0x15e   : > { %v762_v30 = vadd.f32 %v761_v28, %v2937_v45  ;;  %v1115_v31 = vadd.f32 %v1114_v29, %v2939_v46  ;;  %v763_v32 = vpop.f32.mrb[46].mxu0  ;;  %v1116_v33 = vpop.f32.mrb[46].mxu1 }
 0x15f   : > { %v1409_v34 = vmax.f32 %v760_v26, 0.0  ;;  %v1411_v35 = vmax.f32 %v1113_v27, 0.0  ;;  %v764_v36 = vadd.f32 %v763_v32, %v2933_v43  ;;  %v1117_v37 = vadd.f32 %v1116_v33, %v2935_v44  ;;  %v765_v38 = vpop.f32.mrb[47].mxu0  ;;  %v1118_v39 = vpop.f32.mrb[47].mxu1 }
 0x160   : > { %v1410_v40 = vmax.f32 %v762_v30, 0.0  ;;  %v1412_v41 = vmax.f32 %v1115_v31, 0.0  ;;  %v766_v42 = vadd.f32 %v765_v38, %v2937_v45  ;;  %v1119_v47 = vadd.f32 %v1118_v39, %v2939_v46 }
 0x161   : > { %v1598_v48 = vadd.f32 %v1597_v19, %v1409_v34  ;;  %v1672_v49 = vadd.f32 %v1671_v20, %v1411_v35  ;;  %v1413_v50 = vmax.f32 %v764_v36, 0.0  ;;  %v1415_v51 = vmax.f32 %v1117_v37, 0.0 }
 0x162   : > { %v1635_v52 = vadd.f32 %v1634_v22, %v1410_v40  ;;  %v1709_v53 = vadd.f32 %v1708_v23, %v1412_v41  ;;  %v1414_v54 = vmax.f32 %v766_v42, 0.0  ;;  %v1416_v55 = vmax.f32 %v1119_v47, 0.0 }
 0x163   : > { %v1599_v56 = vadd.f32 %v1598_v48, %v1413_v50  ;;  %v1673_v57 = vadd.f32 %v1672_v49, %v1415_v51 }
 0x164   : > { %v1636_v58 = vadd.f32 %v1635_v52, %v1414_v54  ;;  %v1710_v59 = vadd.f32 %v1709_v53, %v1416_v55  ;;  %v769_v60 = vpop.f32.mrb[48].mxu0  ;;  %v1122_v61 = vpop.f32.mrb[48].mxu1 }
 0x165   : > { %v770_v62 = vadd.f32 %v769_v60, %v2933_v43  ;;  %v1123_v63 = vadd.f32 %v1122_v61, %v2935_v44  ;;  %v771_v0 = vpop.f32.mrb[49].mxu0  ;;  %v1124_v1 = vpop.f32.mrb[49].mxu1 }
 0x166   : > { %v772_v2 = vadd.f32 %v771_v0, %v2937_v45  ;;  %v1125_v3 = vadd.f32 %v1124_v1, %v2939_v46  ;;  %v773_v4 = vpop.f32.mrb[50].mxu0  ;;  %v1126_v5 = vpop.f32.mrb[50].mxu1 }
 0x167   : > { %v1417_v6 = vmax.f32 %v770_v62, 0.0  ;;  %v1419_v7 = vmax.f32 %v1123_v63, 0.0  ;;  %v774_v8 = vadd.f32 %v773_v4, %v2933_v43  ;;  %v1127_v9 = vadd.f32 %v1126_v5, %v2935_v44  ;;  %v775_v10 = vpop.f32.mrb[51].mxu0  ;;  %v1128_v11 = vpop.f32.mrb[51].mxu1  ;;  %v1935_v4 = vld [vmem:[%s2773_s12 + $0x1f0] sm:$0xff] }
 0x168   : > { %v1418_v12 = vmax.f32 %v772_v2, 0.0  ;;  %v1420_v13 = vmax.f32 %v1125_v3, 0.0  ;;  %v776_v14 = vadd.f32 %v775_v10, %v2937_v45  ;;  %v1129_v15 = vadd.f32 %v1128_v11, %v2939_v46  ;;  %v1903_v2 = vld [vmem:[%s2773_s12 + $0xf0] sm:$0xff]  ;;  %v1904_v3 = vld [vmem:[%s2773_s12 + $0xf8] sm:$0xff] }
 0x169   : > { %v1600_v17 = vadd.f32 %v1599_v56, %v1417_v6  ;;  %v1674_v18 = vadd.f32 %v1673_v57, %v1419_v7  ;;  %v1421_v19 = vmax.f32 %v774_v8, 0.0  ;;  %v1423_v20 = vmax.f32 %v1127_v9, 0.0  ;;  %v1936_v10 = vld [vmem:[%s2773_s12 + $0x1f8] sm:$0xff] }
 0x16a   : > { %v1637_v16 = vadd.f32 %v1636_v58, %v1418_v12  ;;  %v1711_v21 = vadd.f32 %v1710_v59, %v1420_v13  ;;  %v1422_v22 = vmax.f32 %v776_v14, 0.0  ;;  %v1424_v23 = vmax.f32 %v1129_v15, 0.0 }
 0x16b   : > { %v1601_v24 = vadd.f32 %v1600_v17, %v1421_v19  ;;  %v1675_v25 = vadd.f32 %v1674_v18, %v1423_v20  ;;  %v2386_v9 = vpack.c.bf16 %v1904_v3, %v1903_v2  ;;  %v2418_v15 = vpack.c.bf16 %v1936_v10, %v1935_v4 }
 0x16c   : > { %v1638_v26 = vadd.f32 %v1637_v16, %v1422_v22  ;;  %v1712_v27 = vadd.f32 %v1711_v21, %v1424_v23  ;;  %v779_v28 = vpop.f32.mrb[52].mxu0  ;;  %v1132_v29 = vpop.f32.mrb[52].mxu1 }
 0x16d   : > { %v780_v30 = vadd.f32 %v779_v28, %v2933_v43  ;;  %v1133_v31 = vadd.f32 %v1132_v29, %v2935_v44  ;;  %v781_v32 = vpop.f32.mrb[53].mxu0  ;;  %v1134_v33 = vpop.f32.mrb[53].mxu1  ;;  %2387 = vmatprep.subr.bf16.mxu0 %v2386_v9  ;;  %2419 = vmatprep.subr.bf16.mxu1 %v2418_v15 }
 0x16e   : > { %v782_v34 = vadd.f32 %v781_v32, %v2937_v45  ;;  %v1135_v35 = vadd.f32 %v1134_v33, %v2939_v46  ;;  %v783_v36 = vpop.f32.mrb[54].mxu0  ;;  %v1136_v37 = vpop.f32.mrb[54].mxu1  ;;  %v1919_v32 = vld [vmem:[%s2773_s12 + $0x170] sm:$0xff] }
 0x16f   : > { %v1425_v38 = vmax.f32 %v780_v30, 0.0  ;;  %v1427_v39 = vmax.f32 %v1133_v31, 0.0  ;;  %v784_v40 = vadd.f32 %v783_v36, %v2933_v43  ;;  %v1137_v41 = vadd.f32 %v1136_v37, %v2935_v44  ;;  %v785_v42 = vpop.f32.mrb[55].mxu0  ;;  %v1138_v47 = vpop.f32.mrb[55].mxu1  ;;  %v1887_v30 = vld [vmem:[%s2773_s12 + $0x70] sm:$0xff]  ;;  %v1888_v31 = vld [vmem:[%s2773_s12 + $0x78] sm:$0xff] }
 0x170   : > { %v1426_v48 = vmax.f32 %v782_v34, 0.0  ;;  %v1428_v49 = vmax.f32 %v1135_v35, 0.0  ;;  %v786_v50 = vadd.f32 %v785_v42, %v2937_v45  ;;  %v1139_v51 = vadd.f32 %v1138_v47, %v2939_v46  ;;  %v1920_v37 = vld [vmem:[%s2773_s12 + $0x178] sm:$0xff] }
 0x171   : > { %v1602_v52 = vadd.f32 %v1601_v24, %v1425_v38  ;;  %v1676_v53 = vadd.f32 %v1675_v25, %v1427_v39  ;;  %v1429_v54 = vmax.f32 %v784_v40, 0.0  ;;  %v1431_v55 = vmax.f32 %v1137_v41, 0.0 }
 0x172   : > { %v1639_v56 = vadd.f32 %v1638_v26, %v1426_v48  ;;  %v1713_v57 = vadd.f32 %v1712_v27, %v1428_v49  ;;  %v1430_v58 = vmax.f32 %v786_v50, 0.0  ;;  %v1432_v59 = vmax.f32 %v1139_v51, 0.0 }
 0x173   : > { %v1603_v60 = vadd.f32 %v1602_v52, %v1429_v54  ;;  %v1677_v61 = vadd.f32 %v1676_v53, %v1431_v55  ;;  %v2388_v40 = vpack.c.bf16 %v1888_v31, %v1887_v30  ;;  %v2420_v41 = vpack.c.bf16 %v1920_v37, %v1919_v32 }
 0x174   : > { %v1640_v62 = vadd.f32 %v1639_v56, %v1430_v58  ;;  %v1714_v63 = vadd.f32 %v1713_v57, %v1432_v59  ;;  %v789_v0 = vpop.f32.mrb[56].mxu0  ;;  %v1142_v1 = vpop.f32.mrb[56].mxu1 }
 0x175   : > { %v790_v5 = vadd.f32 %v789_v0, %v2933_v43  ;;  %v1143_v6 = vadd.f32 %v1142_v1, %v2935_v44  ;;  %v791_v7 = vpop.f32.mrb[57].mxu0  ;;  %v1144_v8 = vpop.f32.mrb[57].mxu1  ;;  %2389 = vmatpush3.bf16.msra.mxu0 %v2388_v40  ;;  %2421 = vmatpush3.bf16.msra.mxu1 %v2420_v41 }
 0x176   : > { %v792_v11 = vadd.f32 %v791_v7, %v2937_v45  ;;  %v1145_v12 = vadd.f32 %v1144_v8, %v2939_v46  ;;  %v793_v13 = vpop.f32.mrb[58].mxu0  ;;  %v1146_v14 = vpop.f32.mrb[58].mxu1 }
 0x177   : > { %v1433_v17 = vmax.f32 %v790_v5, 0.0  ;;  %v1435_v18 = vmax.f32 %v1143_v6, 0.0  ;;  %v794_v19 = vadd.f32 %v793_v13, %v2933_v43  ;;  %v1147_v20 = vadd.f32 %v1146_v14, %v2935_v44  ;;  %v795_v16 = vpop.f32.mrb[59].mxu0  ;;  %v1148_v21 = vpop.f32.mrb[59].mxu1 }
 0x178   : > { %v1434_v22 = vmax.f32 %v792_v11, 0.0  ;;  %v1436_v23 = vmax.f32 %v1145_v12, 0.0  ;;  %v796_v24 = vadd.f32 %v795_v16, %v2937_v45  ;;  %v1149_v25 = vadd.f32 %v1148_v21, %v2939_v46 }
 0x179   : > { %v1604_v26 = vadd.f32 %v1603_v60, %v1433_v17  ;;  %v1678_v27 = vadd.f32 %v1677_v61, %v1435_v18  ;;  %v1437_v28 = vmax.f32 %v794_v19, 0.0  ;;  %v1439_v29 = vmax.f32 %v1147_v20, 0.0 }
 0x17a   : > { %v1641_v33 = vadd.f32 %v1640_v62, %v1434_v22  ;;  %v1715_v34 = vadd.f32 %v1714_v63, %v1436_v23  ;;  %v1438_v35 = vmax.f32 %v796_v24, 0.0  ;;  %v1440_v36 = vmax.f32 %v1149_v25, 0.0 }
 0x17b   : > { %v1605_v38 = vadd.f32 %v1604_v26, %v1437_v28  ;;  %v1679_v39 = vadd.f32 %v1678_v27, %v1439_v29 }
 0x17c   : > { %v1642_v42 = vadd.f32 %v1641_v33, %v1438_v35  ;;  %v1716_v47 = vadd.f32 %v1715_v34, %v1440_v36  ;;  %v799_v48 = vpop.f32.mrb[60].mxu0  ;;  %v1152_v49 = vpop.f32.mrb[60].mxu1 }
 0x17d   : > { %v800_v50 = vadd.f32 %v799_v48, %v2933_v43  ;;  %v1153_v51 = vadd.f32 %v1152_v49, %v2935_v44  ;;  %v801_v52 = vpop.f32.mrb[61].mxu0  ;;  %v1154_v53 = vpop.f32.mrb[61].mxu1 }
 0x17e   : > { %v802_v54 = vadd.f32 %v801_v52, %v2937_v45  ;;  %v1155_v55 = vadd.f32 %v1154_v53, %v2939_v46  ;;  %v803_v56 = vpop.f32.mrb[62].mxu0  ;;  %v1156_v57 = vpop.f32.mrb[62].mxu1 }
 0x17f   : > { %v1441_v58 = vmax.f32 %v800_v50, 0.0  ;;  %v1443_v59 = vmax.f32 %v1153_v51, 0.0  ;;  %v804_v60 = vadd.f32 %v803_v56, %v2933_v43  ;;  %v1157_v61 = vadd.f32 %v1156_v57, %v2935_v44  ;;  %v805_v62 = vpop.f32.mrb[63].mxu0  ;;  %v1158_v63 = vpop.f32.mrb[63].mxu1 }
 0x180   : > { %v1442_v0 = vmax.f32 %v802_v54, 0.0  ;;  %v1444_v1 = vmax.f32 %v1155_v55, 0.0  ;;  %v806_v2 = vadd.f32 %v805_v62, %v2937_v45  ;;  %v1159_v3 = vadd.f32 %v1158_v63, %v2939_v46 }
 0x181   : > { %v1606_v4 = vadd.f32 %v1605_v38, %v1441_v58  ;;  %v1680_v5 = vadd.f32 %v1679_v39, %v1443_v59  ;;  %v1445_v6 = vmax.f32 %v804_v60, 0.0  ;;  %v1447_v7 = vmax.f32 %v1157_v61, 0.0 }
 0x182   : > { %v1643_v8 = vadd.f32 %v1642_v42, %v1442_v0  ;;  %v1717_v9 = vadd.f32 %v1716_v47, %v1444_v1  ;;  %v1446_v10 = vmax.f32 %v806_v2, 0.0  ;;  %v1448_v11 = vmax.f32 %v1159_v3, 0.0 }
 0x183   : > { %v3151_v12 = vadd.f32 %v1606_v4, %v1445_v6  ;;  %v3153_v13 = vadd.f32 %v1680_v5, %v1447_v7 }
 0x184   : > { %v3155_v14 = vadd.f32 %v1643_v8, %v1446_v10  ;;  %v3157_v15 = vadd.f32 %v1717_v9, %v1448_v11  ;;  %v809_v17 = vpop.f32.mrb[64].mxu0  ;;  %v1162_v18 = vpop.f32.mrb[64].mxu1 }
 0x185   : > { %v811_v19 = vpop.f32.mrb[65].mxu0  ;;  %v1164_v20 = vpop.f32.mrb[65].mxu1  ;;  %v810_v22 = vadd.f32 %v809_v17, %v2933_v43  ;;  %v1163_v23 = vadd.f32 %v1162_v18, %v2935_v44 }
 0x186   : > { %v813_v16 = vpop.f32.mrb[66].mxu0  ;;  %v1166_v21 = vpop.f32.mrb[66].mxu1  ;;  %v812_v26 = vadd.f32 %v811_v19, %v2937_v45  ;;  %v1165_v27 = vadd.f32 %v1164_v20, %v2939_v46 }
 0x187   : > { %v815_v24 = vpop.f32.mrb[67].mxu0  ;;  %v1168_v25 = vpop.f32.mrb[67].mxu1  ;;  %v814_v28 = vadd.f32 %v813_v16, %v2933_v43  ;;  %v1167_v29 = vadd.f32 %v1166_v21, %v2935_v44  ;;  %v1449_v32 = vmax.f32 %v810_v22, 0.0  ;;  %v1451_v33 = vmax.f32 %v1163_v23, 0.0 }
 0x188   : > { %v816_v30 = vadd.f32 %v815_v24, %v2937_v45  ;;  %v1169_v31 = vadd.f32 %v1168_v25, %v2939_v46  ;;  %v1450_v36 = vmax.f32 %v812_v26, 0.0  ;;  %v1452_v37 = vmax.f32 %v1165_v27, 0.0 }
 0x189   : > { %v1453_v34 = vmax.f32 %v814_v28, 0.0  ;;  %v1455_v35 = vmax.f32 %v1167_v29, 0.0 }
 0x18a   : > { %v1454_v38 = vmax.f32 %v816_v30, 0.0  ;;  %v1456_v39 = vmax.f32 %v1169_v31, 0.0 }
 0x18b   : > { %v1725_v42 = vadd.f32 %v1453_v34, %v1449_v32  ;;  %v1799_v47 = vadd.f32 %v1455_v35, %v1451_v33 }
 0x18c   : > { %v819_v40 = vpop.f32.mrb[68].mxu0  ;;  %v1172_v41 = vpop.f32.mrb[68].mxu1  ;;  %v1762_v50 = vadd.f32 %v1454_v38, %v1450_v36  ;;  %v1836_v51 = vadd.f32 %v1456_v39, %v1452_v37 }
 0x18d   : > { %v821_v48 = vpop.f32.mrb[69].mxu0  ;;  %v1174_v49 = vpop.f32.mrb[69].mxu1  ;;  %v820_v52 = vadd.f32 %v819_v40, %v2933_v43  ;;  %v1173_v53 = vadd.f32 %v1172_v41, %v2935_v44 }
 0x18e   : > { %v823_v54 = vpop.f32.mrb[70].mxu0  ;;  %v1176_v55 = vpop.f32.mrb[70].mxu1  ;;  %v822_v56 = vadd.f32 %v821_v48, %v2937_v45  ;;  %v1175_v57 = vadd.f32 %v1174_v49, %v2939_v46 }
 0x18f   : > { %v825_v58 = vpop.f32.mrb[71].mxu0  ;;  %v1178_v59 = vpop.f32.mrb[71].mxu1  ;;  %v1457_v60 = vmax.f32 %v820_v52, 0.0  ;;  %v1459_v61 = vmax.f32 %v1173_v53, 0.0  ;;  %v824_v62 = vadd.f32 %v823_v54, %v2933_v43  ;;  %v1177_v63 = vadd.f32 %v1176_v55, %v2935_v44 }
 0x190   : > { %v1458_v0 = vmax.f32 %v822_v56, 0.0  ;;  %v1460_v1 = vmax.f32 %v1175_v57, 0.0  ;;  %v826_v2 = vadd.f32 %v825_v58, %v2937_v45  ;;  %v1179_v3 = vadd.f32 %v1178_v59, %v2939_v46 }
 0x191   : > { %v1726_v4 = vadd.f32 %v1725_v42, %v1457_v60  ;;  %v1800_v5 = vadd.f32 %v1799_v47, %v1459_v61  ;;  %v1461_v6 = vmax.f32 %v824_v62, 0.0  ;;  %v1463_v7 = vmax.f32 %v1177_v63, 0.0 }
 0x192   : > { %v1763_v8 = vadd.f32 %v1762_v50, %v1458_v0  ;;  %v1837_v9 = vadd.f32 %v1836_v51, %v1460_v1  ;;  %v1462_v10 = vmax.f32 %v826_v2, 0.0  ;;  %v1464_v11 = vmax.f32 %v1179_v3, 0.0 }
 0x193   : > { %v1727_v17 = vadd.f32 %v1726_v4, %v1461_v6  ;;  %v1801_v18 = vadd.f32 %v1800_v5, %v1463_v7 }
 0x194   : > { %v829_v19 = vpop.f32.mrb[72].mxu0  ;;  %v1182_v20 = vpop.f32.mrb[72].mxu1  ;;  %v1764_v16 = vadd.f32 %v1763_v8, %v1462_v10  ;;  %v1838_v21 = vadd.f32 %v1837_v9, %v1464_v11 }
 0x195   : > { %v830_v22 = vadd.f32 %v829_v19, %v2933_v43  ;;  %v1183_v23 = vadd.f32 %v1182_v20, %v2935_v44  ;;  %v831_v24 = vpop.f32.mrb[73].mxu0  ;;  %v1184_v25 = vpop.f32.mrb[73].mxu1 }
 0x196   : > { %v832_v26 = vadd.f32 %v831_v24, %v2937_v45  ;;  %v1185_v27 = vadd.f32 %v1184_v25, %v2939_v46  ;;  %v833_v28 = vpop.f32.mrb[74].mxu0  ;;  %v1186_v29 = vpop.f32.mrb[74].mxu1 }
 0x197   : > { %v1465_v30 = vmax.f32 %v830_v22, 0.0  ;;  %v1467_v31 = vmax.f32 %v1183_v23, 0.0  ;;  %v834_v32 = vadd.f32 %v833_v28, %v2933_v43  ;;  %v1187_v33 = vadd.f32 %v1186_v29, %v2935_v44  ;;  %v835_v34 = vpop.f32.mrb[75].mxu0  ;;  %v1188_v35 = vpop.f32.mrb[75].mxu1 }
 0x198   : > { %v1466_v36 = vmax.f32 %v832_v26, 0.0  ;;  %v1468_v37 = vmax.f32 %v1185_v27, 0.0  ;;  %v836_v38 = vadd.f32 %v835_v34, %v2937_v45  ;;  %v1189_v39 = vadd.f32 %v1188_v35, %v2939_v46 }
 0x199   : > { %v1728_v40 = vadd.f32 %v1727_v17, %v1465_v30  ;;  %v1802_v41 = vadd.f32 %v1801_v18, %v1467_v31  ;;  %v1469_v42 = vmax.f32 %v834_v32, 0.0  ;;  %v1471_v47 = vmax.f32 %v1187_v33, 0.0 }
 0x19a   : > { %v1765_v48 = vadd.f32 %v1764_v16, %v1466_v36  ;;  %v1839_v49 = vadd.f32 %v1838_v21, %v1468_v37  ;;  %v1470_v50 = vmax.f32 %v836_v38, 0.0  ;;  %v1472_v51 = vmax.f32 %v1189_v39, 0.0 }
 0x19b   : > { %v1729_v52 = vadd.f32 %v1728_v40, %v1469_v42  ;;  %v1803_v53 = vadd.f32 %v1802_v41, %v1471_v47 }
 0x19c   : > { %v1766_v54 = vadd.f32 %v1765_v48, %v1470_v50  ;;  %v1840_v55 = vadd.f32 %v1839_v49, %v1472_v51  ;;  %v839_v56 = vpop.f32.mrb[76].mxu0  ;;  %v1192_v57 = vpop.f32.mrb[76].mxu1 }
 0x19d   : > { %v840_v58 = vadd.f32 %v839_v56, %v2933_v43  ;;  %v1193_v59 = vadd.f32 %v1192_v57, %v2935_v44  ;;  %v841_v60 = vpop.f32.mrb[77].mxu0  ;;  %v1194_v61 = vpop.f32.mrb[77].mxu1 }
 0x19e   : > { %v842_v62 = vadd.f32 %v841_v60, %v2937_v45  ;;  %v1195_v63 = vadd.f32 %v1194_v61, %v2939_v46  ;;  %v843_v0 = vpop.f32.mrb[78].mxu0  ;;  %v1196_v1 = vpop.f32.mrb[78].mxu1 }
 0x19f   : > { %v1473_v2 = vmax.f32 %v840_v58, 0.0  ;;  %v1475_v3 = vmax.f32 %v1193_v59, 0.0  ;;  %v844_v4 = vadd.f32 %v843_v0, %v2933_v43  ;;  %v1197_v5 = vadd.f32 %v1196_v1, %v2935_v44  ;;  %v845_v6 = vpop.f32.mrb[79].mxu0  ;;  %v1198_v7 = vpop.f32.mrb[79].mxu1 }
 0x1a0   : > { %v1474_v8 = vmax.f32 %v842_v62, 0.0  ;;  %v1476_v9 = vmax.f32 %v1195_v63, 0.0  ;;  %v846_v10 = vadd.f32 %v845_v6, %v2937_v45  ;;  %v1199_v11 = vadd.f32 %v1198_v7, %v2939_v46 }
 0x1a1   : > { %v1730_v17 = vadd.f32 %v1729_v52, %v1473_v2  ;;  %v1804_v18 = vadd.f32 %v1803_v53, %v1475_v3  ;;  %v1477_v19 = vmax.f32 %v844_v4, 0.0  ;;  %v1479_v20 = vmax.f32 %v1197_v5, 0.0 }
 0x1a2   : > { %v1767_v16 = vadd.f32 %v1766_v54, %v1474_v8  ;;  %v1841_v21 = vadd.f32 %v1840_v55, %v1476_v9  ;;  %v1478_v22 = vmax.f32 %v846_v10, 0.0  ;;  %v1480_v23 = vmax.f32 %v1199_v11, 0.0 }
 0x1a3   : > { %v1731_v24 = vadd.f32 %v1730_v17, %v1477_v19  ;;  %v1805_v25 = vadd.f32 %v1804_v18, %v1479_v20 }
 0x1a4   : > { %v1768_v26 = vadd.f32 %v1767_v16, %v1478_v22  ;;  %v1842_v27 = vadd.f32 %v1841_v21, %v1480_v23  ;;  %v849_v28 = vpop.f32.mrb[80].mxu0  ;;  %v1202_v29 = vpop.f32.mrb[80].mxu1 }
 0x1a5   : > { %v850_v30 = vadd.f32 %v849_v28, %v2933_v43  ;;  %v1203_v31 = vadd.f32 %v1202_v29, %v2935_v44  ;;  %v851_v32 = vpop.f32.mrb[81].mxu0  ;;  %v1204_v33 = vpop.f32.mrb[81].mxu1 }
 0x1a6   : > { %v852_v34 = vadd.f32 %v851_v32, %v2937_v45  ;;  %v1205_v35 = vadd.f32 %v1204_v33, %v2939_v46  ;;  %v853_v36 = vpop.f32.mrb[82].mxu0  ;;  %v1206_v37 = vpop.f32.mrb[82].mxu1 }
 0x1a7   : > { %v1481_v38 = vmax.f32 %v850_v30, 0.0  ;;  %v1483_v39 = vmax.f32 %v1203_v31, 0.0  ;;  %v854_v40 = vadd.f32 %v853_v36, %v2933_v43  ;;  %v1207_v41 = vadd.f32 %v1206_v37, %v2935_v44  ;;  %v855_v42 = vpop.f32.mrb[83].mxu0  ;;  %v1208_v47 = vpop.f32.mrb[83].mxu1 }
 0x1a8   : > { %v1482_v48 = vmax.f32 %v852_v34, 0.0  ;;  %v1484_v49 = vmax.f32 %v1205_v35, 0.0  ;;  %v856_v50 = vadd.f32 %v855_v42, %v2937_v45  ;;  %v1209_v51 = vadd.f32 %v1208_v47, %v2939_v46 }
 0x1a9   : > { %v1732_v52 = vadd.f32 %v1731_v24, %v1481_v38  ;;  %v1806_v53 = vadd.f32 %v1805_v25, %v1483_v39  ;;  %v1485_v54 = vmax.f32 %v854_v40, 0.0  ;;  %v1487_v55 = vmax.f32 %v1207_v41, 0.0 }
 0x1aa   : > { %v1769_v56 = vadd.f32 %v1768_v26, %v1482_v48  ;;  %v1843_v57 = vadd.f32 %v1842_v27, %v1484_v49  ;;  %v1486_v58 = vmax.f32 %v856_v50, 0.0  ;;  %v1488_v59 = vmax.f32 %v1209_v51, 0.0 }
 0x1ab   : > { %v1733_v60 = vadd.f32 %v1732_v52, %v1485_v54  ;;  %v1807_v61 = vadd.f32 %v1806_v53, %v1487_v55 }
 0x1ac   : > { %v1770_v62 = vadd.f32 %v1769_v56, %v1486_v58  ;;  %v1844_v63 = vadd.f32 %v1843_v57, %v1488_v59  ;;  %v859_v0 = vpop.f32.mrb[84].mxu0  ;;  %v1212_v1 = vpop.f32.mrb[84].mxu1 }
 0x1ad   : > { %v860_v2 = vadd.f32 %v859_v0, %v2933_v43  ;;  %v1213_v3 = vadd.f32 %v1212_v1, %v2935_v44  ;;  %v861_v4 = vpop.f32.mrb[85].mxu0  ;;  %v1214_v5 = vpop.f32.mrb[85].mxu1 }
 0x1ae   : > { %v862_v6 = vadd.f32 %v861_v4, %v2937_v45  ;;  %v1215_v7 = vadd.f32 %v1214_v5, %v2939_v46  ;;  %v863_v8 = vpop.f32.mrb[86].mxu0  ;;  %v1216_v9 = vpop.f32.mrb[86].mxu1 }
 0x1af   : > { %v1489_v10 = vmax.f32 %v860_v2, 0.0  ;;  %v1491_v11 = vmax.f32 %v1213_v3, 0.0  ;;  %v864_v17 = vadd.f32 %v863_v8, %v2933_v43  ;;  %v1217_v18 = vadd.f32 %v1216_v9, %v2935_v44  ;;  %v865_v19 = vpop.f32.mrb[87].mxu0  ;;  %v1218_v20 = vpop.f32.mrb[87].mxu1 }
 0x1b0   : > { %v1490_v16 = vmax.f32 %v862_v6, 0.0  ;;  %v1492_v21 = vmax.f32 %v1215_v7, 0.0  ;;  %v866_v22 = vadd.f32 %v865_v19, %v2937_v45  ;;  %v1219_v23 = vadd.f32 %v1218_v20, %v2939_v46 }
 0x1b1   : > { %v1734_v24 = vadd.f32 %v1733_v60, %v1489_v10  ;;  %v1808_v25 = vadd.f32 %v1807_v61, %v1491_v11  ;;  %v1493_v26 = vmax.f32 %v864_v17, 0.0  ;;  %v1495_v27 = vmax.f32 %v1217_v18, 0.0 }
 0x1b2   : > { %v1771_v28 = vadd.f32 %v1770_v62, %v1490_v16  ;;  %v1845_v29 = vadd.f32 %v1844_v63, %v1492_v21  ;;  %v1494_v30 = vmax.f32 %v866_v22, 0.0  ;;  %v1496_v31 = vmax.f32 %v1219_v23, 0.0 }
 0x1b3   : > { %v1735_v32 = vadd.f32 %v1734_v24, %v1493_v26  ;;  %v1809_v33 = vadd.f32 %v1808_v25, %v1495_v27 }
 0x1b4   : > { %v1772_v34 = vadd.f32 %v1771_v28, %v1494_v30  ;;  %v1846_v35 = vadd.f32 %v1845_v29, %v1496_v31  ;;  %v869_v36 = vpop.f32.mrb[88].mxu0  ;;  %v1222_v37 = vpop.f32.mrb[88].mxu1 }
 0x1b5   : > { %v870_v38 = vadd.f32 %v869_v36, %v2933_v43  ;;  %v1223_v39 = vadd.f32 %v1222_v37, %v2935_v44  ;;  %v871_v40 = vpop.f32.mrb[89].mxu0  ;;  %v1224_v41 = vpop.f32.mrb[89].mxu1 }
 0x1b6   : > { %v872_v42 = vadd.f32 %v871_v40, %v2937_v45  ;;  %v1225_v47 = vadd.f32 %v1224_v41, %v2939_v46  ;;  %v873_v48 = vpop.f32.mrb[90].mxu0  ;;  %v1226_v49 = vpop.f32.mrb[90].mxu1 }
 0x1b7   : > { %v1497_v50 = vmax.f32 %v870_v38, 0.0  ;;  %v1499_v51 = vmax.f32 %v1223_v39, 0.0  ;;  %v874_v52 = vadd.f32 %v873_v48, %v2933_v43  ;;  %v1227_v53 = vadd.f32 %v1226_v49, %v2935_v44  ;;  %v875_v54 = vpop.f32.mrb[91].mxu0  ;;  %v1228_v55 = vpop.f32.mrb[91].mxu1 }
 0x1b8   : > { %v1498_v56 = vmax.f32 %v872_v42, 0.0  ;;  %v1500_v57 = vmax.f32 %v1225_v47, 0.0  ;;  %v876_v58 = vadd.f32 %v875_v54, %v2937_v45  ;;  %v1229_v59 = vadd.f32 %v1228_v55, %v2939_v46 }
 0x1b9   : > { %v1736_v60 = vadd.f32 %v1735_v32, %v1497_v50  ;;  %v1810_v61 = vadd.f32 %v1809_v33, %v1499_v51  ;;  %v1501_v62 = vmax.f32 %v874_v52, 0.0  ;;  %v1503_v63 = vmax.f32 %v1227_v53, 0.0 }
 0x1ba   : > { %v1773_v0 = vadd.f32 %v1772_v34, %v1498_v56  ;;  %v1847_v1 = vadd.f32 %v1846_v35, %v1500_v57  ;;  %v1502_v2 = vmax.f32 %v876_v58, 0.0  ;;  %v1504_v3 = vmax.f32 %v1229_v59, 0.0 }
 0x1bb   : > { %v1737_v4 = vadd.f32 %v1736_v60, %v1501_v62  ;;  %v1811_v5 = vadd.f32 %v1810_v61, %v1503_v63 }
 0x1bc   : > { %v1774_v6 = vadd.f32 %v1773_v0, %v1502_v2  ;;  %v1848_v7 = vadd.f32 %v1847_v1, %v1504_v3  ;;  %v879_v8 = vpop.f32.mrb[92].mxu0  ;;  %v1232_v9 = vpop.f32.mrb[92].mxu1 }
 0x1bd   : > { %v880_v10 = vadd.f32 %v879_v8, %v2933_v43  ;;  %v1233_v11 = vadd.f32 %v1232_v9, %v2935_v44  ;;  %v881_v17 = vpop.f32.mrb[93].mxu0  ;;  %v1234_v18 = vpop.f32.mrb[93].mxu1 }
 0x1be   : > { %v882_v19 = vadd.f32 %v881_v17, %v2937_v45  ;;  %v1235_v20 = vadd.f32 %v1234_v18, %v2939_v46  ;;  %v883_v16 = vpop.f32.mrb[94].mxu0  ;;  %v1236_v21 = vpop.f32.mrb[94].mxu1 }
 0x1bf   : > { %v1505_v22 = vmax.f32 %v880_v10, 0.0  ;;  %v1507_v23 = vmax.f32 %v1233_v11, 0.0  ;;  %v884_v24 = vadd.f32 %v883_v16, %v2933_v43  ;;  %v1237_v25 = vadd.f32 %v1236_v21, %v2935_v44  ;;  %v885_v26 = vpop.f32.mrb[95].mxu0  ;;  %v1238_v27 = vpop.f32.mrb[95].mxu1 }
 0x1c0   : > { %v1506_v28 = vmax.f32 %v882_v19, 0.0  ;;  %v1508_v29 = vmax.f32 %v1235_v20, 0.0  ;;  %v886_v30 = vadd.f32 %v885_v26, %v2937_v45  ;;  %v1239_v31 = vadd.f32 %v1238_v27, %v2939_v46 }
 0x1c1   : > { %v1738_v32 = vadd.f32 %v1737_v4, %v1505_v22  ;;  %v1812_v33 = vadd.f32 %v1811_v5, %v1507_v23  ;;  %v1509_v34 = vmax.f32 %v884_v24, 0.0  ;;  %v1511_v35 = vmax.f32 %v1237_v25, 0.0 }
 0x1c2   : > { %v1775_v36 = vadd.f32 %v1774_v6, %v1506_v28  ;;  %v1849_v37 = vadd.f32 %v1848_v7, %v1508_v29  ;;  %v1510_v38 = vmax.f32 %v886_v30, 0.0  ;;  %v1512_v39 = vmax.f32 %v1239_v31, 0.0 }
 0x1c3   : > { %v1739_v40 = vadd.f32 %v1738_v32, %v1509_v34  ;;  %v1813_v41 = vadd.f32 %v1812_v33, %v1511_v35 }
 0x1c4   : > { %v1776_v42 = vadd.f32 %v1775_v36, %v1510_v38  ;;  %v1850_v47 = vadd.f32 %v1849_v37, %v1512_v39  ;;  %v889_v48 = vpop.f32.mrb[96].mxu0  ;;  %v1242_v49 = vpop.f32.mrb[96].mxu1 }
 0x1c5   : > { %v890_v50 = vadd.f32 %v889_v48, %v2933_v43  ;;  %v1243_v51 = vadd.f32 %v1242_v49, %v2935_v44  ;;  %v891_v52 = vpop.f32.mrb[97].mxu0  ;;  %v1244_v53 = vpop.f32.mrb[97].mxu1 }
 0x1c6   : > { %v892_v54 = vadd.f32 %v891_v52, %v2937_v45  ;;  %v1245_v55 = vadd.f32 %v1244_v53, %v2939_v46  ;;  %v893_v56 = vpop.f32.mrb[98].mxu0  ;;  %v1246_v57 = vpop.f32.mrb[98].mxu1 }
 0x1c7   : > { %v1513_v58 = vmax.f32 %v890_v50, 0.0  ;;  %v1515_v59 = vmax.f32 %v1243_v51, 0.0  ;;  %v894_v60 = vadd.f32 %v893_v56, %v2933_v43  ;;  %v1247_v61 = vadd.f32 %v1246_v57, %v2935_v44  ;;  %v895_v62 = vpop.f32.mrb[99].mxu0  ;;  %v1248_v63 = vpop.f32.mrb[99].mxu1 }
 0x1c8   : > { %v1514_v0 = vmax.f32 %v892_v54, 0.0  ;;  %v1516_v1 = vmax.f32 %v1245_v55, 0.0  ;;  %v896_v2 = vadd.f32 %v895_v62, %v2937_v45  ;;  %v1249_v3 = vadd.f32 %v1248_v63, %v2939_v46 }
 0x1c9   : > { %v1740_v4 = vadd.f32 %v1739_v40, %v1513_v58  ;;  %v1814_v5 = vadd.f32 %v1813_v41, %v1515_v59  ;;  %v1517_v6 = vmax.f32 %v894_v60, 0.0  ;;  %v1519_v7 = vmax.f32 %v1247_v61, 0.0 }
 0x1ca   : > { %v1777_v8 = vadd.f32 %v1776_v42, %v1514_v0  ;;  %v1851_v9 = vadd.f32 %v1850_v47, %v1516_v1  ;;  %v1518_v10 = vmax.f32 %v896_v2, 0.0  ;;  %v1520_v11 = vmax.f32 %v1249_v3, 0.0 }
 0x1cb   : > { %v1741_v17 = vadd.f32 %v1740_v4, %v1517_v6  ;;  %v1815_v18 = vadd.f32 %v1814_v5, %v1519_v7 }
 0x1cc   : > { %v1778_v19 = vadd.f32 %v1777_v8, %v1518_v10  ;;  %v1852_v20 = vadd.f32 %v1851_v9, %v1520_v11  ;;  %v899_v16 = vpop.f32.mrb[100].mxu0  ;;  %v1252_v21 = vpop.f32.mrb[100].mxu1 }
 0x1cd   : > { %v900_v22 = vadd.f32 %v899_v16, %v2933_v43  ;;  %v1253_v23 = vadd.f32 %v1252_v21, %v2935_v44  ;;  %v901_v24 = vpop.f32.mrb[101].mxu0  ;;  %v1254_v25 = vpop.f32.mrb[101].mxu1 }
 0x1ce   : > { %v902_v26 = vadd.f32 %v901_v24, %v2937_v45  ;;  %v1255_v27 = vadd.f32 %v1254_v25, %v2939_v46  ;;  %v903_v28 = vpop.f32.mrb[102].mxu0  ;;  %v1256_v29 = vpop.f32.mrb[102].mxu1 }
 0x1cf   : > { %v1521_v30 = vmax.f32 %v900_v22, 0.0  ;;  %v1523_v31 = vmax.f32 %v1253_v23, 0.0  ;;  %v904_v32 = vadd.f32 %v903_v28, %v2933_v43  ;;  %v1257_v33 = vadd.f32 %v1256_v29, %v2935_v44  ;;  %v905_v34 = vpop.f32.mrb[103].mxu0  ;;  %v1258_v35 = vpop.f32.mrb[103].mxu1 }
 0x1d0   : > { %v1522_v36 = vmax.f32 %v902_v26, 0.0  ;;  %v1524_v37 = vmax.f32 %v1255_v27, 0.0  ;;  %v906_v38 = vadd.f32 %v905_v34, %v2937_v45  ;;  %v1259_v39 = vadd.f32 %v1258_v35, %v2939_v46 }
 0x1d1   : > { %v1742_v40 = vadd.f32 %v1741_v17, %v1521_v30  ;;  %v1816_v41 = vadd.f32 %v1815_v18, %v1523_v31  ;;  %v1525_v42 = vmax.f32 %v904_v32, 0.0  ;;  %v1527_v47 = vmax.f32 %v1257_v33, 0.0 }
 0x1d2   : > { %v1779_v48 = vadd.f32 %v1778_v19, %v1522_v36  ;;  %v1853_v49 = vadd.f32 %v1852_v20, %v1524_v37  ;;  %v1526_v50 = vmax.f32 %v906_v38, 0.0  ;;  %v1528_v51 = vmax.f32 %v1259_v39, 0.0 }
 0x1d3   : > { %v1743_v52 = vadd.f32 %v1742_v40, %v1525_v42  ;;  %v1817_v53 = vadd.f32 %v1816_v41, %v1527_v47 }
 0x1d4   : > { %v1780_v54 = vadd.f32 %v1779_v48, %v1526_v50  ;;  %v1854_v55 = vadd.f32 %v1853_v49, %v1528_v51  ;;  %v909_v56 = vpop.f32.mrb[104].mxu0  ;;  %v1262_v57 = vpop.f32.mrb[104].mxu1 }
 0x1d5   : > { %v910_v58 = vadd.f32 %v909_v56, %v2933_v43  ;;  %v1263_v59 = vadd.f32 %v1262_v57, %v2935_v44  ;;  %v911_v60 = vpop.f32.mrb[105].mxu0  ;;  %v1264_v61 = vpop.f32.mrb[105].mxu1 }
 0x1d6   : > { %v912_v62 = vadd.f32 %v911_v60, %v2937_v45  ;;  %v1265_v63 = vadd.f32 %v1264_v61, %v2939_v46  ;;  %v913_v0 = vpop.f32.mrb[106].mxu0  ;;  %v1266_v1 = vpop.f32.mrb[106].mxu1 }
 0x1d7   : > { %v1529_v2 = vmax.f32 %v910_v58, 0.0  ;;  %v1531_v3 = vmax.f32 %v1263_v59, 0.0  ;;  %v914_v4 = vadd.f32 %v913_v0, %v2933_v43  ;;  %v1267_v5 = vadd.f32 %v1266_v1, %v2935_v44  ;;  %v915_v6 = vpop.f32.mrb[107].mxu0  ;;  %v1268_v7 = vpop.f32.mrb[107].mxu1 }
 0x1d8   : > { %v1530_v8 = vmax.f32 %v912_v62, 0.0  ;;  %v1532_v9 = vmax.f32 %v1265_v63, 0.0  ;;  %v916_v10 = vadd.f32 %v915_v6, %v2937_v45  ;;  %v1269_v11 = vadd.f32 %v1268_v7, %v2939_v46 }
 0x1d9   : > { %v1744_v17 = vadd.f32 %v1743_v52, %v1529_v2  ;;  %v1818_v18 = vadd.f32 %v1817_v53, %v1531_v3  ;;  %v1533_v19 = vmax.f32 %v914_v4, 0.0  ;;  %v1535_v20 = vmax.f32 %v1267_v5, 0.0 }
 0x1da   : > { %v1781_v16 = vadd.f32 %v1780_v54, %v1530_v8  ;;  %v1855_v21 = vadd.f32 %v1854_v55, %v1532_v9  ;;  %v1534_v22 = vmax.f32 %v916_v10, 0.0  ;;  %v1536_v23 = vmax.f32 %v1269_v11, 0.0 }
 0x1db   : > { %v1745_v24 = vadd.f32 %v1744_v17, %v1533_v19  ;;  %v1819_v25 = vadd.f32 %v1818_v18, %v1535_v20 }
 0x1dc   : > { %v1782_v26 = vadd.f32 %v1781_v16, %v1534_v22  ;;  %v1856_v27 = vadd.f32 %v1855_v21, %v1536_v23  ;;  %v919_v28 = vpop.f32.mrb[108].mxu0  ;;  %v1272_v29 = vpop.f32.mrb[108].mxu1 }
 0x1dd   : > { %v920_v30 = vadd.f32 %v919_v28, %v2933_v43  ;;  %v1273_v31 = vadd.f32 %v1272_v29, %v2935_v44  ;;  %v921_v32 = vpop.f32.mrb[109].mxu0  ;;  %v1274_v33 = vpop.f32.mrb[109].mxu1 }
 0x1de   : > { %v922_v34 = vadd.f32 %v921_v32, %v2937_v45  ;;  %v1275_v35 = vadd.f32 %v1274_v33, %v2939_v46  ;;  %v923_v36 = vpop.f32.mrb[110].mxu0  ;;  %v1276_v37 = vpop.f32.mrb[110].mxu1 }
 0x1df   : > { %v1537_v38 = vmax.f32 %v920_v30, 0.0  ;;  %v1539_v39 = vmax.f32 %v1273_v31, 0.0  ;;  %v924_v40 = vadd.f32 %v923_v36, %v2933_v43  ;;  %v1277_v41 = vadd.f32 %v1276_v37, %v2935_v44  ;;  %v925_v42 = vpop.f32.mrb[111].mxu0  ;;  %v1278_v47 = vpop.f32.mrb[111].mxu1 }
 0x1e0   : > { %v1538_v48 = vmax.f32 %v922_v34, 0.0  ;;  %v1540_v49 = vmax.f32 %v1275_v35, 0.0  ;;  %v926_v50 = vadd.f32 %v925_v42, %v2937_v45  ;;  %v1279_v51 = vadd.f32 %v1278_v47, %v2939_v46 }
 0x1e1   : > { %v1746_v52 = vadd.f32 %v1745_v24, %v1537_v38  ;;  %v1820_v53 = vadd.f32 %v1819_v25, %v1539_v39  ;;  %v1541_v54 = vmax.f32 %v924_v40, 0.0  ;;  %v1543_v55 = vmax.f32 %v1277_v41, 0.0 }
 0x1e2   : > { %v1783_v56 = vadd.f32 %v1782_v26, %v1538_v48  ;;  %v1857_v57 = vadd.f32 %v1856_v27, %v1540_v49  ;;  %v1542_v58 = vmax.f32 %v926_v50, 0.0  ;;  %v1544_v59 = vmax.f32 %v1279_v51, 0.0 }
 0x1e3   : > { %v1747_v60 = vadd.f32 %v1746_v52, %v1541_v54  ;;  %v1821_v61 = vadd.f32 %v1820_v53, %v1543_v55 }
 0x1e4   : > { %v1784_v62 = vadd.f32 %v1783_v56, %v1542_v58  ;;  %v1858_v63 = vadd.f32 %v1857_v57, %v1544_v59  ;;  %v929_v0 = vpop.f32.mrb[112].mxu0  ;;  %v1282_v1 = vpop.f32.mrb[112].mxu1 }
 0x1e5   : > { %v930_v2 = vadd.f32 %v929_v0, %v2933_v43  ;;  %v1283_v3 = vadd.f32 %v1282_v1, %v2935_v44  ;;  %v931_v4 = vpop.f32.mrb[113].mxu0  ;;  %v1284_v5 = vpop.f32.mrb[113].mxu1 }
 0x1e6   : > { %v932_v6 = vadd.f32 %v931_v4, %v2937_v45  ;;  %v1285_v7 = vadd.f32 %v1284_v5, %v2939_v46  ;;  %v933_v8 = vpop.f32.mrb[114].mxu0  ;;  %v1286_v9 = vpop.f32.mrb[114].mxu1 }
 0x1e7   : > { %v1545_v10 = vmax.f32 %v930_v2, 0.0  ;;  %v1547_v11 = vmax.f32 %v1283_v3, 0.0  ;;  %v934_v17 = vadd.f32 %v933_v8, %v2933_v43  ;;  %v1287_v18 = vadd.f32 %v1286_v9, %v2935_v44  ;;  %v935_v19 = vpop.f32.mrb[115].mxu0  ;;  %v1288_v20 = vpop.f32.mrb[115].mxu1 }
 0x1e8   : > { %v1546_v16 = vmax.f32 %v932_v6, 0.0  ;;  %v1548_v21 = vmax.f32 %v1285_v7, 0.0  ;;  %v936_v22 = vadd.f32 %v935_v19, %v2937_v45  ;;  %v1289_v23 = vadd.f32 %v1288_v20, %v2939_v46 }
 0x1e9   : > { %v1748_v24 = vadd.f32 %v1747_v60, %v1545_v10  ;;  %v1822_v25 = vadd.f32 %v1821_v61, %v1547_v11  ;;  %v1549_v26 = vmax.f32 %v934_v17, 0.0  ;;  %v1551_v27 = vmax.f32 %v1287_v18, 0.0 }
 0x1ea   : > { %v1785_v28 = vadd.f32 %v1784_v62, %v1546_v16  ;;  %v1859_v29 = vadd.f32 %v1858_v63, %v1548_v21  ;;  %v1550_v30 = vmax.f32 %v936_v22, 0.0  ;;  %v1552_v31 = vmax.f32 %v1289_v23, 0.0 }
 0x1eb   : > { %v1749_v32 = vadd.f32 %v1748_v24, %v1549_v26  ;;  %v1823_v33 = vadd.f32 %v1822_v25, %v1551_v27  ;;  %v1608_v10 = vrot.slane %v3151_v12, 4  ;;  %v1682_v11 = vrot.slane %v3153_v13, 4 }
 0x1ec   : > { %v1786_v34 = vadd.f32 %v1785_v28, %v1550_v30  ;;  %v1860_v35 = vadd.f32 %v1859_v29, %v1552_v31  ;;  %v939_v36 = vpop.f32.mrb[116].mxu0  ;;  %v1292_v37 = vpop.f32.mrb[116].mxu1  ;;  %v1645_v16 = vrot.slane %v3155_v14, 4  ;;  %v1719_v21 = vrot.slane %v3157_v15, 4 }
 0x1ed   : > { %v940_v38 = vadd.f32 %v939_v36, %v2933_v43  ;;  %v1293_v39 = vadd.f32 %v1292_v37, %v2935_v44  ;;  %v941_v40 = vpop.f32.mrb[117].mxu0  ;;  %v1294_v41 = vpop.f32.mrb[117].mxu1 }
 0x1ee   : > { %v942_v42 = vadd.f32 %v941_v40, %v2937_v45  ;;  %v1295_v47 = vadd.f32 %v1294_v41, %v2939_v46  ;;  %v943_v48 = vpop.f32.mrb[118].mxu0  ;;  %v1296_v49 = vpop.f32.mrb[118].mxu1 }
 0x1ef   : > { %v1553_v50 = vmax.f32 %v940_v38, 0.0  ;;  %v1555_v51 = vmax.f32 %v1293_v39, 0.0  ;;  %v944_v52 = vadd.f32 %v943_v48, %v2933_v43  ;;  %v1297_v53 = vadd.f32 %v1296_v49, %v2935_v44  ;;  %v945_v54 = vpop.f32.mrb[119].mxu0  ;;  %v1298_v55 = vpop.f32.mrb[119].mxu1 }
 0x1f0   : > { %v1554_v56 = vmax.f32 %v942_v42, 0.0  ;;  %v1556_v57 = vmax.f32 %v1295_v47, 0.0  ;;  %v946_v58 = vadd.f32 %v945_v54, %v2937_v45  ;;  %v1299_v59 = vadd.f32 %v1298_v55, %v2939_v46 }
 0x1f1   : > { %v1750_v60 = vadd.f32 %v1749_v32, %v1553_v50  ;;  %v1824_v61 = vadd.f32 %v1823_v33, %v1555_v51  ;;  %v1557_v62 = vmax.f32 %v944_v52, 0.0  ;;  %v1559_v63 = vmax.f32 %v1297_v53, 0.0 }
 0x1f2   : > { %v1787_v0 = vadd.f32 %v1786_v34, %v1554_v56  ;;  %v1861_v1 = vadd.f32 %v1860_v35, %v1556_v57  ;;  %v1558_v2 = vmax.f32 %v946_v58, 0.0  ;;  %v1560_v3 = vmax.f32 %v1299_v59, 0.0 }
 0x1f3   : > { %v1751_v4 = vadd.f32 %v1750_v60, %v1557_v62  ;;  %v1825_v5 = vadd.f32 %v1824_v61, %v1559_v63  ;;  %v1609_v54 = vadd.f32 %v1608_v10, %v3151_v12  ;;  %v1683_v55 = vadd.f32 %v1682_v11, %v3153_v13 }
 0x1f4   : > { %v1788_v6 = vadd.f32 %v1787_v0, %v1558_v2  ;;  %v1862_v7 = vadd.f32 %v1861_v1, %v1560_v3  ;;  %v949_v8 = vpop.f32.mrb[120].mxu0  ;;  %v1302_v9 = vpop.f32.mrb[120].mxu1  ;;  %v1646_v60 = vadd.f32 %v1645_v16, %v3155_v14  ;;  %v1720_v61 = vadd.f32 %v1719_v21, %v3157_v15 }
 0x1f5   : > { %v950_v17 = vadd.f32 %v949_v8, %v2933_v43  ;;  %v1303_v18 = vadd.f32 %v1302_v9, %v2935_v44  ;;  %v951_v19 = vpop.f32.mrb[121].mxu0  ;;  %v1304_v20 = vpop.f32.mrb[121].mxu1  ;;  %v1610_v16 = vrot.slane %v1609_v54, 2 }
 0x1f6   : > { %v952_v22 = vadd.f32 %v951_v19, %v2937_v45  ;;  %v1305_v23 = vadd.f32 %v1304_v20, %v2939_v46  ;;  %v953_v24 = vpop.f32.mrb[122].mxu0  ;;  %v1306_v25 = vpop.f32.mrb[122].mxu1 }
 0x1f7   : > { %v1561_v26 = vmax.f32 %v950_v17, 0.0  ;;  %v1563_v27 = vmax.f32 %v1303_v18, 0.0  ;;  %v954_v28 = vadd.f32 %v953_v24, %v2933_v43  ;;  %v1307_v29 = vadd.f32 %v1306_v25, %v2935_v44  ;;  %v955_v30 = vpop.f32.mrb[123].mxu0  ;;  %v1308_v31 = vpop.f32.mrb[123].mxu1 }
 0x1f8   : > { %v1562_v32 = vmax.f32 %v952_v22, 0.0  ;;  %v1564_v33 = vmax.f32 %v1305_v23, 0.0  ;;  %v956_v34 = vadd.f32 %v955_v30, %v2937_v45  ;;  %v1309_v35 = vadd.f32 %v1308_v31, %v2939_v46 }
 0x1f9   : > { %v1752_v36 = vadd.f32 %v1751_v4, %v1561_v26  ;;  %v1826_v37 = vadd.f32 %v1825_v5, %v1563_v27  ;;  %v1565_v38 = vmax.f32 %v954_v28, 0.0  ;;  %v1567_v39 = vmax.f32 %v1307_v29, 0.0 }
 0x1fa   : > { %v1789_v40 = vadd.f32 %v1788_v6, %v1562_v32  ;;  %v1863_v41 = vadd.f32 %v1862_v7, %v1564_v33  ;;  %v1566_v42 = vmax.f32 %v956_v34, 0.0  ;;  %v1568_v47 = vmax.f32 %v1309_v35, 0.0 }
 0x1fb   : > { %v1753_v48 = vadd.f32 %v1752_v36, %v1565_v38  ;;  %v1827_v49 = vadd.f32 %v1826_v37, %v1567_v39  ;;  %v1647_v22 = vrot.slane %v1646_v60, 2  ;;  %v1721_v23 = vrot.slane %v1720_v61, 2 }
 0x1fc   : > { %v1790_v50 = vadd.f32 %v1789_v40, %v1566_v42  ;;  %v1864_v51 = vadd.f32 %v1863_v41, %v1568_v47  ;;  %v959_v52 = vpop.f32.mrb[124].mxu0  ;;  %v1312_v53 = vpop.f32.mrb[124].mxu1  ;;  %v1611_v28 = vadd.f32 %v1610_v16, %v1609_v54 }
 0x1fd   : > { %v960_v56 = vadd.f32 %v959_v52, %v2933_v43  ;;  %v1313_v57 = vadd.f32 %v1312_v53, %v2935_v44  ;;  %v961_v58 = vpop.f32.mrb[125].mxu0  ;;  %v1314_v59 = vpop.f32.mrb[125].mxu1  ;;  %v1648_v32 = vadd.f32 %v1647_v22, %v1646_v60  ;;  %v1722_v33 = vadd.f32 %v1721_v23, %v1720_v61 }
 0x1fe   : > { %v962_v62 = vadd.f32 %v961_v58, %v2937_v45  ;;  %v1315_v63 = vadd.f32 %v1314_v59, %v2939_v46  ;;  %v963_v0 = vpop.f32.mrb[126].mxu0  ;;  %v1316_v1 = vpop.f32.mrb[126].mxu1  ;;  %v1612_v40 = vrot.slane %v1611_v28, 1 }
 0x1ff   : > { %v1569_v2 = vmax.f32 %v960_v56, 0.0  ;;  %v1571_v12 = vmax.f32 %v1313_v57, 0.0  ;;  %v964_v13 = vadd.f32 %v963_v0, %v2933_v43  ;;  %v1317_v3 = vadd.f32 %v1316_v1, %v2935_v44  ;;  %v965_v4 = vpop.f32.mrb[127].mxu0  ;;  %v1318_v5 = vpop.f32.mrb[127].mxu1 }
 0x200   : > { %v1570_v6 = vmax.f32 %v962_v62, 0.0  ;;  %v1572_v7 = vmax.f32 %v1315_v63, 0.0  ;;  %v966_v14 = vadd.f32 %v965_v4, %v2937_v45  ;;  %v1319_v15 = vadd.f32 %v1318_v5, %v2939_v46 }
 0x201   : > { %v1754_v8 = vadd.f32 %v1753_v48, %v1569_v2  ;;  %v1828_v9 = vadd.f32 %v1827_v49, %v1571_v12  ;;  %v1573_v10 = vmax.f32 %v964_v13, 0.0  ;;  %v1575_v11 = vmax.f32 %v1317_v3, 0.0 }
 0x202   : > { %v1791_v17 = vadd.f32 %v1790_v50, %v1570_v6  ;;  %v1865_v18 = vadd.f32 %v1864_v51, %v1572_v7  ;;  %v1574_v19 = vmax.f32 %v966_v14, 0.0  ;;  %v1576_v20 = vmax.f32 %v1319_v15, 0.0  ;;  %v2281_v15 = vld [vmem:[%s3337_s4] ss:$0 sm:$0xff] (!%p2280_p10) }
 0x203   : > { %v1684_v43 = vrot.slane %v1683_v55, 2  ;;  %v1755_v21 = vadd.f32 %v1754_v8, %v1573_v10  ;;  %v1829_v44 = vadd.f32 %v1828_v9, %v1575_v11  ;;  %v1649_v50 = vrot.slane %v1648_v32, 1 }
 0x204   : > { %v1792_v24 = vadd.f32 %v1791_v17, %v1574_v19  ;;  %v1866_v25 = vadd.f32 %v1865_v18, %v1576_v20  ;;  %v1723_v51 = vrot.slane %v1722_v33, 1  ;;  %v1613_v56 = vadd.f32 %v1612_v40, %v1611_v28 }
 0x205   : > { %v1756_v26 = vrot.slane %v1755_v21, 4  ;;  %v1830_v45 = vrot.slane %v1829_v44, 4  ;;  %v1685_v29 = vadd.f32 %v1684_v43, %v1683_v55  ;;  %v1650_v60 = vadd.f32 %v1649_v50, %v1648_v32 }
 0x206   : > { %v1793_v27 = vrot.slane %v1792_v24, 4  ;;  %v1867_v46 = vrot.slane %v1866_v25, 4  ;;  %v1724_v62 = vadd.f32 %v1723_v51, %v1722_v33 }
 0x207   : > { %v1757_v30 = vadd.f32 %v1756_v26, %v1755_v21  ;;  %v1831_v31 = vadd.f32 %v1830_v45, %v1829_v44  ;;  %v1686_v41 = vrot.slane %v1685_v29, 1 }
 0x208   : > { %v1794_v34 = vadd.f32 %v1793_v27, %v1792_v24  ;;  %v1868_v35 = vadd.f32 %v1867_v46, %v1866_v25 }
 0x209   : > { %v1758_v36 = vrot.slane %v1757_v30, 2  ;;  %v1832_v37 = vrot.slane %v1831_v31, 2  ;;  %v1687_v57 = vadd.f32 %v1686_v41, %v1685_v29 }
 0x20a   : > { %v1795_v38 = vrot.slane %v1794_v34, 2  ;;  %v1869_v39 = vrot.slane %v1868_v35, 2 }
 0x20b   : > { %v1759_v42 = vadd.f32 %v1758_v36, %v1757_v30  ;;  %v1833_v47 = vadd.f32 %v1832_v37, %v1831_v31 }
 0x20c   : > { %v1796_v48 = vadd.f32 %v1795_v38, %v1794_v34  ;;  %v1870_v49 = vadd.f32 %v1869_v39, %v1868_v35 }
 0x20d   : > { %v1760_v52 = vrot.slane %v1759_v42, 1  ;;  %v1834_v53 = vrot.slane %v1833_v47, 1 }
 0x20e   : > { %v1797_v54 = vrot.slane %v1796_v48, 1  ;;  %v1871_v55 = vrot.slane %v1870_v49, 1 }
 0x20f   : > { %v1761_v58 = vadd.f32 %v1760_v52, %v1759_v42  ;;  %v1835_v59 = vadd.f32 %v1834_v53, %v1833_v47 }
 0x210   : > { %v1798_v61 = vadd.f32 %v1797_v54, %v1796_v48  ;;  %v1872_v63 = vadd.f32 %v1871_v55, %v1870_v49 }
 0x211   : > { %v1946_v0 = vsel %vm1945_vm1, %v1761_v58, %v1613_v56  ;;  %v1948_v1 = vsel %vm1945_vm1, %v1835_v59, %v1687_v57 }
 0x212   : > { %v1947_v2 = vsel %vm1945_vm1, %v1798_v61, %v1650_v60  ;;  %v1949_v12 = vsel %vm1945_vm1, %v1872_v63, %v1724_v62 }
 0x213   : > { %2018 = vmatprep.mubr.f32.mxu0 %v1947_v2  ;;  %2088 = vmatprep.mubr.f32.mxu1 %v1949_v12 }
 0x214   : > { %2019 = vmatmul.mubr.f32.vlgmr.msra.gmra.mrb[128].mxu0 %v1946_v0  ;;  %2089 = vmatmul.mubr.f32.vlgmr.msra.gmra.mrb[128].mxu1 %v1948_v1 }
 0x2e5   : > { %2097 = sbr.rel (%p2280_p10) target bundleno = 752 (0x2f0), region = 67 }
 0x2e7   : > { %v2320_v13 = vpop.f32.mrb[128].mxu0  ;;  %v2355_v3 = vpop.f32.mrb[128].mxu1 }
 0x2e8   : > { %v2321_v4 = vpop.f32.mrb[129].mxu0  ;;  %v2356_v5 = vpop.f32.mrb[129].mxu1 }
 0x2e9   : > { %v2322_v6 = vadd.f32 %v2321_v4, %v2320_v13  ;;  %v2357_v7 = vadd.f32 %v2356_v5, %v2355_v3 }
 0x2eb   : > { %v2091_v14 = vadd.f32 %v2357_v7, %v2322_v6 }
 0x2ed   : > { %v2105_v8 = vadd.f32 %v2281_v15, %v2091_v14 }
 0x2ef   : > { %2107 = vst.msk [vmem:[#allocation3] sm:$0x3] %vm2106_vm2, %v2105_v8 }
 0x2f0 PF: > { %p2282_p11 = scmp.eq.s32.totalorder %s2580_s21, 0 }
 0x2f1   : > { %vm2114_vm3 = vcmask (!%p2282_p11), 9216  }
 0x2f2   : > { %2111 = sbr.rel (%p2282_p11) target bundleno = 762 (0x2fa), region = 71 }
 0x2f6   : > { %v2112_v9 = vld [vmem:[#allocation3] sm:$0x3] (!%p2282_p11) }
 0x2f7   : > { %v2113_v10 = vadd.f32 (!%p2282_p11), %v2112_v9, %v2091_v14 }
 0x2f9   : > { %2115 = vst.msk [vmem:[#allocation3] sm:$0x3] %vm2114_vm3, %v2113_v10 }
 0x2fa PF: > { %p2426_p12 = scmp.eq.s32.totalorder %s2580_s21, 3  ;;  %s2533_s30 = smov [#allocation3]  }
 0x2fb   : > { %s2123_s6 = sshll.u32 %s2533_s30, 4  ;;  %s2124_s6 = int_to_ptr.vmem [resolvable:$true] %s2123_s6 }
 0x2fc   : > { %s2478_s7 = scalar_lea.vmem %s2124_s6, 32  ;;  %p2485_p2 = scmp.lt.s32.totalorder %s2124_s6, %s2124_s6 }
 0x2fd   : > { %p2479_p13 = scmp.ne.s32.totalorder %s2124_s6, %s2478_s7  ;;  %p2486_p3 = scmp.lt.s32.totalorder %s2478_s7, %s2478_s7 }
 0x2ff   : > { %p2480_p0 = pnand %p2479_p13, %p2426_p12  ;;  %p2487_p4 = por %p2486_p3, %p2485_p2 }
 0x301   : > { %p2481_p1 = pneg %p2480_p0 }
 0x303   : > { %p2488_p5 = pnand %p2487_p4, %p2481_p1 }
 0x305   : > { %2491 = shalt.err (!%p2488_p5)
}
 0x306   : > { %s2492_s10 = scalar_lea.hbm %s3338_s5, 32 }
 0x307   : > { %p2493_p6 = scmp.ne.s32.totalorder %s3338_s5, %s2492_s10  ;;  %p2498_p9 = scmp.lt.u32.totalorder %s2492_s10, %s3338_s5 }
 0x309   : > { %p2494_p7 = pnand %p2493_p6, %p2426_p12 }
 0x30b   : > { %p2495_p8 = pneg %p2494_p7 }
 0x30d   : > { %p2500_p10 = pnand %p2498_p9, %p2495_p8 }
 0x30f   : > { %2503 = shalt.err (!%p2500_p10)
}
 0x310   : > { %2423 = dma.vmem_to_hbm [thread:$0]  (%p2426_p12), %s2124_s6, 32, %s3338_s5, [#allocation4]  }
 0x311   : > { %2517 = dma.done.wait (%p2426_p12), [#allocation4], 32  }
 0x312   : > { %2519 = vsyncadd (%p2426_p12), [#allocation4], 4294967264 }
 0x313 PF: > { %p13_p11 = scmp.ge.s32.totalorder %s2583_s22, 6   ;;  %s3339_s18 = smov %s2526_s19 }
 0x314   : > { %s3340_s19 = smov %s2592_s25  ;;  %s3341_s20 = smov %s2583_s22 }
 0x315   :  { %15 = sbr.rel (!%p13_p11) target bundleno = 2 (0x2), region = 109 }
 0x31c   :  { %2136 = vsyncpa [#allocation4], 1 }
 0x31d   :  { %2138 = vsyncpa [#allocation4 + $0x1], 1 }

// kernel: inception_v3_forward.2
= control target key start
LH: loop header
LB: loop body
LE: loop exit
PB: predicated region body
PF: predicated region fallthrough
CT: control target
= control target key end

     0   :  { %s7813_s24 = smov 0   ;;  %s7815_s25 = smov 0   ;;  %s10228_s0 = inlined_call_operand.vmem [shape: f32[2,4,256,9], index: 0, kind: input, shape index: {}]   ;;  %s10229_s1 = inlined_call_operand.vmem [shape: bf16[9,3], index: 1, kind: input, shape index: {}]   ;;  %s10230_s2 = inlined_call_operand.vmem [shape: f32[1,3], index: 2, kind: input, shape index: {}]   ;;  %s10231_s3 = inlined_call_operand.vmem [shape: bf16[9,3,32], index: 3, kind: input, shape index: {}]   ;;  %s10232_s4 = inlined_call_operand.vmem [shape: f32[1,32], index: 4, kind: input, shape index: {}]   ;;  %s10233_s5 = inlined_call_operand.vmem [shape: bf16[9,32,64], index: 5, kind: input, shape index: {}]   ;;  %s10234_s6 = inlined_call_operand.vmem [shape: f32[1,64], index: 6, kind: input, shape index: {}]   ;;  %s10235_s7 = inlined_call_operand.vmem [shape: f32[2,256,64], index: 7, kind: output, shape index: {}]  }
   0x1   :  { %s7817_s26 = smov 0   ;;  %s7819_s27 = smov 0  }
   0x2   :  { %s7821_s28 = smov 0  }
   0x3 LB: > { %s26_s29 = sadd.s32 1, %s7761_s26  ;;  %s29_s30 = sadd.s32 1, %s7765_s27  ;;  %s7769_s28 = sphi %s7821_s28, %s17_s28   ;;  %s7765_s27 = sphi %s7819_s27, %s10589_s27   ;;  %s7761_s26 = sphi %s7817_s26, %s10588_s26   ;;  %s7757_s25 = sphi %s7815_s25, %s10587_s25   ;;  %s7753_s24 = sphi %s7813_s24, %s10586_s24  }
   0x4   : > { %p27_p0 = scmp.ge.s32.totalorder %s26_s29, 4  ;;  %p5783_p1 = scmp.ge.s32.totalorder %s7769_s28, 1 }
   0x5   : > { %p255_p2 = scmp.lt.s32.totalorder %s7769_s28, 9 }
   0x6   : > { %s10591_s29 = smov (%p27_p0, %s26_s29), 0  ;;  %s10593_s30 = smov (!%p27_p0, %s29_s30), %s7765_s27 }
   0x7   : > { %p256_p3 = pnand %p5783_p1, %p255_p2  ;;  %p31_p4 = scmp.ge.s32.totalorder %s10593_s30, 2 }
   0x9   : > { %s10595_s30 = smov (%p31_p4, %s10593_s30), 0  ;;  %259 = sbr.rel (%p256_p3) target bundleno = 1822 (0x71e), region = 48 }
  0x10   : > { %v7712_v0 = vld [vmem:[%s10229_s1] sm:$0x1f]   ;;  %vm417_vm0 = vcmask 1043456   ;;  %vm418_vm1 = vcmask 1044480   ;;  %vm650_vm2 = vcmask 1040384   ;;  %p291_p5 = scmp.lt.s32.totalorder %s7757_s25, 1 }
  0x11   : > { %p293_p6 = scmp.lt.s32.totalorder %s7753_s24, 3  ;;  %v7771_v1 = vmov 65535   ;;  %vm1014_vm3 = vcmask 1041408   ;;  %v5807_v4 = vld [vmem:[%s10231_s3 + $0x2] sm:$0x3]  ;;  %vm368_vm4 = vcmask 72704  }
  0x12   : > { %v419_v2 = vsel %vm417_vm0, 4294967295, %v7771_v1  ;;  %v1015_v3 = vsel %vm650_vm2, 4294967295, %v7771_v1  ;;  %s10597_s25 = smov (!%p291_p5, %s7757_s25), 1  ;;  %v7772_v57 = vmov 0.0   ;;  %vm834_vm5 = vcmask 1046528   ;;  %p6155_p7 = scmp.ne.s32.totalorder %s7753_s24, 0 }
  0x13   : > { %v420_v5 = vsel %vm418_vm1, %v419_v2, 0  ;;  %v7853_v6 = vsel %vm1014_vm3, %v1015_v3, 0  ;;  %s294_s12 = scalar_select %p293_p6, %s7753_s24, 3  ;;  %v7915_v58 = vrot.slane %v7772_v57, 7  ;;  %vm965_vm6 = vcmask 23552  }
  0x14   : > { %10335 = vst [vmem:[#allocation2_spill] sm:$0xff] %v7853_v6  ;;  %v422_v7 = vand.u32 %v7712_v0, %v420_v5  ;;  %v1018_v8 = vand.u32 %v5807_v4, %v7853_v6  ;;  %s5785_s13 = sshll.u32 %s10597_s25, 7  ;;  %s6159_s14 = sshll.u32 %s10597_s25, 8  ;;  %v801_v3 = vld [vmem:[%s10231_s3] sm:$0x3]  ;;  %vm1393_vm7 = vcmask 1045504  }
  0x15   : > { %s5784_s15 = sshll.u32 %s294_s12, 5  ;;  %s7860_s18 = scalar_lea.vmem %s10235_s7, %s6159_s14  ;;  %10336 = vst [vmem:[#allocation3_spill] sm:$0xff] %v7915_v58  ;;  %v7919_v59 = vsel %vm650_vm2, 0.0, %v7915_v58  ;;  %v7923_v60 = vsel %vm650_vm2, %v7915_v58, 0.0  ;;  %v836_v62 = vrot.slane %v7915_v58, 1  ;;  %v7938_v4 = vand.u32 %v7853_v6, %v801_v3 }
  0x16   : > { %6492 = vmatprep.subr.bf16.mxu0 %v422_v7  ;;  %7156 = vmatprep.subr.bf16.mxu1 %v422_v7  ;;  %s297_s19 = sadd.s32 %s5785_s13, %s5784_s15  ;;  %10337 = vst [vmem:[#allocation4_spill] sm:$0xff] %v7919_v59  ;;  %10338 = vst [vmem:[#allocation5_spill] sm:$0xff] %v7923_v60  ;;  %v835_v61 = vrot.slane %v7919_v59, 1  ;;  %v838_v63 = vrot.slane %v7923_v60, 1  ;;  %v7944_v5 = vld [vmem:[%s10230_s2] ss:$0 sm:$0xff] }
  0x17   : > { %6493 = vmatpush3.bf16.msra.mxu0 %v422_v7  ;;  %7157 = vmatpush3.bf16.msra.mxu1 %v422_v7  ;;  %s5786_s20 = sshll.u32 %s297_s19, 3  ;;  %vm3401_vm8 = vcmask 261120   ;;  %vm5570_vm9 = vcmask (!%p6155_p7), 523264  }
  0x18   : > { %6526 = vmatprep.subr.bf16.mxu1 %v1018_v8  ;;  %s7865_s23 = scalar_lea.vmem %s10228_s0, %s5786_s20  ;;  %v837_v0 = vsel %vm834_vm5, %v835_v61, %v836_v62  ;;  %v839_v1 = vsel %vm834_vm5, %v836_v62, %v838_v63 }
  0x19   : > { %v306_v9 = vld [vmem:[%s7865_s23] sm:$0xff]  ;;  %v307_v10 = vld [vmem:[%s7865_s23 + $0x8] sm:$0xff]  ;;  %v308_v11 = vld [vmem:[%s7865_s23 + $0x10] sm:$0xff]  ;;  %v7930_v2 = vpack.c.bf16 %v839_v1, %v837_v0 }
  0x1a   : > { %v338_v12 = vpack.c.bf16 %v307_v10, %v306_v9  ;;  %v309_v13 = vld [vmem:[%s7865_s23 + $0x18] sm:$0xff]  ;;  %v310_v14 = vld [vmem:[%s7865_s23 + $0x20] sm:$0xff]  ;;  %v311_v15 = vld [vmem:[%s7865_s23 + $0x28] sm:$0xff] }
  0x1b   : > { %v339_v16 = vpack.c.bf16 %v309_v13, %v308_v11  ;;  %v340_v17 = vpack.c.bf16 %v311_v15, %v310_v14  ;;  %v312_v18 = vld [vmem:[%s7865_s23 + $0x30] sm:$0xff]  ;;  %v313_v19 = vld [vmem:[%s7865_s23 + $0x38] sm:$0xff]  ;;  %v314_v20 = vld [vmem:[%s7865_s23 + $0x40] sm:$0xff]  ;;  %10339 = vst [vmem:[#allocation6_spill] sm:$0xff] %v7930_v2 }
  0x1c   : > { %6494 = vmatprep.mubr.msk.bf16.mxu0 %vm368_vm4, %v338_v12  ;;  %v315_v21 = vld [vmem:[%s7865_s23 + $0x48] sm:$0xff]  ;;  %v322_v22 = vld [vmem:[%s7865_s23 + $0x80] sm:$0xff]  ;;  %v324_v25 = vld [vmem:[%s7865_s23 + $0x90] sm:$0xff]  ;;  %v341_v30 = vpack.c.bf16 %v313_v19, %v312_v18 }
  0x1d   : > { %6495 = vmatmul.mubr.msk.bf16.vlgmr.msra.gmra.mrb[0].mxu0 %vm368_vm4, %v339_v16  ;;  %v323_v23 = vld [vmem:[%s7865_s23 + $0x88] sm:$0xff]  ;;  %v325_v26 = vld [vmem:[%s7865_s23 + $0x98] sm:$0xff]  ;;  %v326_v27 = vld [vmem:[%s7865_s23 + $0xa0] sm:$0xff]  ;;  %v342_v32 = vpack.c.bf16 %v315_v21, %v314_v20 }
  0x1e   : > { %6498 = vmatprep.mubr.msk.bf16.mxu0 %vm368_vm4, %v340_v17  ;;  %v346_v24 = vpack.c.bf16 %v323_v23, %v322_v22  ;;  %v347_v28 = vpack.c.bf16 %v325_v26, %v324_v25  ;;  %v327_v29 = vld [vmem:[%s7865_s23 + $0xa8] sm:$0xff]  ;;  %v328_v33 = vld [vmem:[%s7865_s23 + $0xb0] sm:$0xff]  ;;  %v329_v34 = vld [vmem:[%s7865_s23 + $0xb8] sm:$0xff] }
  0x1f   : > { %v348_v31 = vpack.c.bf16 %v327_v29, %v326_v27  ;;  %v330_v35 = vld [vmem:[%s7865_s23 + $0xc0] sm:$0xff]  ;;  %v331_v36 = vld [vmem:[%s7865_s23 + $0xc8] sm:$0xff]  ;;  %v316_v37 = vld [vmem:[%s7865_s23 + $0x50] sm:$0xff]  ;;  %v349_v41 = vpack.c.bf16 %v329_v34, %v328_v33 }
  0x20   : > { %6510 = vmatprep.mubr.msk.bf16.mxu1 %vm368_vm4, %v346_v24  ;;  %v317_v38 = vld [vmem:[%s7865_s23 + $0x58] sm:$0xff]  ;;  %v318_v39 = vld [vmem:[%s7865_s23 + $0x60] sm:$0xff]  ;;  %v319_v40 = vld [vmem:[%s7865_s23 + $0x68] sm:$0xff]  ;;  %v350_v42 = vpack.c.bf16 %v331_v36, %v330_v35 }
  0x21   : > { %6511 = vmatmul.mubr.msk.bf16.vlgmr.msra.gmra.mrb[0].mxu1 %vm368_vm4, %v347_v28  ;;  %v343_v43 = vpack.c.bf16 %v317_v38, %v316_v37  ;;  %v344_v44 = vpack.c.bf16 %v319_v40, %v318_v39  ;;  %v332_v45 = vld [vmem:[%s7865_s23 + $0xd0] sm:$0xff]  ;;  %v333_v46 = vld [vmem:[%s7865_s23 + $0xd8] sm:$0xff]  ;;  %v334_v47 = vld [vmem:[%s7865_s23 + $0xe0] sm:$0xff] }
  0x22   : > { %6514 = vmatprep.mubr.msk.bf16.mxu1 %vm368_vm4, %v348_v31  ;;  %6527 = vmatpush3.bf16.msra.mxu1 %v1018_v8  ;;  %v335_v48 = vld [vmem:[%s7865_s23 + $0xe8] sm:$0xff]  ;;  %v320_v49 = vld [vmem:[%s7865_s23 + $0x70] sm:$0xff]  ;;  %v321_v50 = vld [vmem:[%s7865_s23 + $0x78] sm:$0xff]  ;;  %v351_v51 = vpack.c.bf16 %v333_v46, %v332_v45 }
  0x23   : > { %v352_v52 = vpack.c.bf16 %v335_v48, %v334_v47  ;;  %v345_v53 = vpack.c.bf16 %v321_v50, %v320_v49  ;;  %v336_v54 = vld [vmem:[%s7865_s23 + $0xf0] sm:$0xff]  ;;  %v337_v55 = vld [vmem:[%s7865_s23 + $0xf8] sm:$0xff]  ;;  %6560 = vmatprep.subr.bf16.mxu1 %v7938_v4  ;;  %v5840_v23 = vld [vmem:[%s10231_s3 + $0x4] sm:$0x3] }
  0x24   : > { %v353_v56 = vpack.c.bf16 %v337_v55, %v336_v54  ;;  %v7973_v35 = vand.u32 %v5840_v23, %v7853_v6 }
  0x25   : > { %6499 = vmatmul.mubr.msk.bf16.gmra.mrb[4].mxu0 %vm368_vm4, %v341_v30 }
  0x26   : > { %6502 = vmatprep.mubr.msk.bf16.mxu0 %vm368_vm4, %v342_v32  ;;  %10341 = vst [vmem:[#allocation8_spill] sm:$0xff] %v7973_v35 }
  0x29   : > { %6515 = vmatmul.mubr.msk.bf16.gmra.mrb[4].mxu1 %vm368_vm4, %v349_v41 }
  0x2a   : > { %6518 = vmatprep.mubr.msk.bf16.mxu1 %vm368_vm4, %v350_v42 }
  0x2d   : > { %6503 = vmatmul.mubr.msk.bf16.gmra.mrb[8].mxu0 %vm368_vm4, %v343_v43 }
  0x2e   : > { %6506 = vmatprep.mubr.msk.bf16.mxu0 %vm368_vm4, %v344_v44 }
  0x31   : > { %6519 = vmatmul.mubr.msk.bf16.gmra.mrb[8].mxu1 %vm368_vm4, %v351_v51 }
  0x32   : > { %6522 = vmatprep.mubr.msk.bf16.mxu1 %vm368_vm4, %v352_v52 }
  0x35   : > { %6507 = vmatmul.mubr.msk.bf16.gmra.mrb[12].mxu0 %vm368_vm4, %v345_v53 }
  0x39   : > { %6523 = vmatmul.mubr.msk.bf16.gmra.mrb[12].mxu1 %vm368_vm4, %v353_v56 }
  0x3a   : > { %6528 = vmatprep.mubr.msk.bf16.mxu1 %vm965_vm6, %v7930_v2 }
  0xf0   : > { %v6496_v7 = vpop.f32.mrb[0].mxu0 }
  0xf1   : > { %v467_v8 = vadd.f32 %v6496_v7, %v7944_v5  ;;  %v458_v9 = vpop.f32.mrb[1].mxu0 }
  0xf2   : > { %v459_v10 = vadd.f32 %v7944_v5, %v458_v9  ;;  %v6497_v11 = vpop.f32.mrb[2].mxu0 }
  0xf3   : > { %v587_v12 = vmax.f32 %v467_v8, 0.0  ;;  %v470_v13 = vadd.f32 %v6497_v11, %v7944_v5  ;;  %v461_v14 = vpop.f32.mrb[3].mxu0 }
  0xf4   : > { %v585_v15 = vmax.f32 %v459_v10, 0.0  ;;  %v462_v16 = vadd.f32 %v7944_v5, %v461_v14  ;;  %v7950_v19 = vpop.f32.mrb[0].mxu1 }
  0xf5   : > { %v656_v17 = vrot.slane %v587_v12, 7  ;;  %v588_v18 = vmax.f32 %v470_v13, 0.0  ;;  %v7952_v22 = vpop.f32.mrb[1].mxu1 }
  0xf6   : > { %v653_v20 = vrot.slane %v585_v15, 7  ;;  %v586_v21 = vmax.f32 %v462_v16, 0.0  ;;  %v7960_v26 = vpop.f32.mrb[2].mxu1 }
  0xf7   : > { %v7958_v24 = vsel %vm650_vm2, 0.0, %v656_v17  ;;  %v657_v25 = vrot.slane %v588_v18, 7  ;;  %v7963_v30 = vpop.f32.mrb[3].mxu1 }
  0xf8   : > { %v752_v27 = vsel %vm650_vm2, 0.0, %v653_v20  ;;  %v654_v28 = vrot.slane %v586_v21, 7  ;;  %v6500_v29 = vpop.f32.mrb[4].mxu0  ;;  %v845_v31 = vrot.slane %v7958_v24, 1 }
  0xf9   : > { %v7967_v32 = vsel %vm650_vm2, %v656_v17, %v657_v25  ;;  %v7970_v33 = vsel %vm650_vm2, %v657_v25, 0.0  ;;  %v474_v34 = vpop.f32.mrb[5].mxu0  ;;  %v840_v36 = vrot.slane %v752_v27, 1  ;;  %v1399_v37 = vrot.slane %v752_v27, 2 }
  0xfa   : > { %10340 = vst [vmem:[#allocation7_spill] sm:$0xff] %v7970_v33  ;;  %v846_v38 = vrot.slane %v7967_v32, 1  ;;  %v848_v39 = vrot.slane %v7970_v33, 1  ;;  %v6501_v40 = vpop.f32.mrb[6].mxu0  ;;  %v655_v41 = vsel %vm650_vm2, %v653_v20, %v654_v28  ;;  %v769_v42 = vsel %vm650_vm2, %v654_v28, 0.0 }
  0xfb   : > { %v483_v43 = vadd.f32 %v6500_v29, %v7944_v5  ;;  %v475_v44 = vadd.f32 %v7944_v5, %v474_v34  ;;  %v477_v45 = vpop.f32.mrb[7].mxu0  ;;  %v7981_v46 = vpack.c.bf16 %v655_v41, %v752_v27  ;;  %v841_v47 = vrot.slane %v655_v41, 1 }
  0xfc   : > { %v843_v48 = vrot.slane %v769_v42, 1  ;;  %v1400_v49 = vrot.slane %v655_v41, 2  ;;  %v1402_v50 = vrot.slane %v769_v42, 2  ;;  %v486_v53 = vadd.f32 %v6501_v40, %v7944_v5  ;;  %v7984_v54 = vpop.f32.mrb[4].mxu1 }
  0xfd   : > { %10342 = vst [vmem:[#allocation9_spill] sm:$0xff] %v7981_v46  ;;  %v591_v51 = vmax.f32 %v483_v43, 0.0  ;;  %v589_v52 = vmax.f32 %v475_v44, 0.0  ;;  %v842_v55 = vsel %vm834_vm5, %v840_v36, %v841_v47  ;;  %v478_v61 = vadd.f32 %v7944_v5, %v477_v45  ;;  %v7990_v62 = vpop.f32.mrb[5].mxu1 }
  0xfe   : > { %v844_v56 = vsel %vm834_vm5, %v841_v47, %v843_v48  ;;  %v1401_v57 = vsel %vm1393_vm7, %v1399_v37, %v1400_v49  ;;  %v1403_v0 = vsel %vm1393_vm7, %v1400_v49, %v1402_v50  ;;  %v7995_v7 = vpop.f32.mrb[6].mxu1  ;;  %v592_v9 = vmax.f32 %v486_v53, 0.0 }
  0xff   : > { %v7992_v63 = vpack.c.bf16 %v844_v56, %v842_v55  ;;  %v662_v1 = vrot.slane %v591_v51, 7  ;;  %v659_v3 = vrot.slane %v589_v52, 7  ;;  %v7997_v8 = vpack.c.bf16 %v1403_v0, %v1401_v57  ;;  %v7999_v12 = vpop.f32.mrb[7].mxu1 }
 0x100   : > { %v590_v10 = vmax.f32 %v478_v61, 0.0  ;;  %v6504_v11 = vpop.f32.mrb[8].mxu0  ;;  %v847_v15 = vsel %vm834_vm5, %v845_v31, %v846_v38  ;;  %v849_v16 = vsel %vm834_vm5, %v846_v38, %v848_v39  ;;  %v663_v21 = vrot.slane %v592_v9, 7 }
 0x101   : > { %10343 = vst [vmem:[#allocation10_spill] sm:$0xff] %v7992_v63  ;;  %10344 = vst [vmem:[#allocation11_spill] sm:$0xff] %v7997_v8  ;;  %v499_v13 = vadd.f32 %v6504_v11, %v7944_v5  ;;  %6529 = vmatmul.mubr.msk.bf16.vlgmr.msra.gmra.mrb[16].mxu1 %vm965_vm6, %v7992_v63  ;;  %v490_v14 = vpop.f32.mrb[9].mxu0  ;;  %v8007_v17 = vsel %vm650_vm2, 0.0, %v662_v1  ;;  %v8011_v20 = vsel %vm650_vm2, 0.0, %v659_v3  ;;  %v8015_v29 = vpack.c.bf16 %v849_v16, %v847_v15 }
 0x102   : > { %6561 = vmatpush3.bf16.msra.mxu1 %v7938_v4  ;;  %v6505_v18 = vpop.f32.mrb[10].mxu0  ;;  %v660_v23 = vrot.slane %v590_v10, 7  ;;  %v491_v28 = vadd.f32 %v7944_v5, %v490_v14  ;;  %v8020_v4 = vsel %vm650_vm2, %v662_v1, %v663_v21  ;;  %v855_v39 = vrot.slane %v8007_v17, 1 }
 0x103   : > { %v595_v25 = vmax.f32 %v499_v13, 0.0  ;;  %v493_v27 = vpop.f32.mrb[11].mxu0  ;;  %6594 = vmatprep.subr.bf16.mxu1 %v7973_v35  ;;  %10345 = vst [vmem:[#allocation12_spill] sm:$0xff] %v8015_v29  ;;  %v502_v31 = vadd.f32 %v6505_v18, %v7944_v5  ;;  %v856_v40 = vrot.slane %v8020_v4, 1  ;;  %6532 = vmatprep.mubr.msk.bf16.mxu1 %vm965_vm6, %v8015_v29  ;;  %v531_v41 = vadd.f32 %v7950_v19, %v7944_v5 }
 0x104   : > { %v494_v34 = vadd.f32 %v7944_v5, %v493_v27  ;;  %v8023_v36 = vsel %vm650_vm2, %v659_v3, %v660_v23  ;;  %v8026_v37 = vsel %vm650_vm2, %v660_v23, 0.0  ;;  %v8028_v38 = vpop.f32.mrb[8].mxu1  ;;  %v850_v43 = vrot.slane %v8011_v20, 1 }
 0x105   : > { %v8036_v42 = vpop.f32.mrb[9].mxu1  ;;  %v8040_v44 = vsel %vm650_vm2, %v663_v21, 0.0  ;;  %v851_v45 = vrot.slane %v8023_v36, 1  ;;  %v853_v47 = vrot.slane %v8026_v37, 1  ;;  %v668_v49 = vrot.slane %v595_v25, 7 }
 0x106   : > { %v8044_v48 = vpop.f32.mrb[10].mxu1  ;;  %v593_v50 = vmax.f32 %v491_v28, 0.0  ;;  %v596_v51 = vmax.f32 %v502_v31, 0.0  ;;  %v594_v52 = vmax.f32 %v494_v34, 0.0  ;;  %v857_v0 = vsel %vm834_vm5, %v855_v39, %v856_v40 }
 0x107   : > { %v8046_v55 = vpop.f32.mrb[11].mxu1  ;;  %v852_v56 = vsel %vm834_vm5, %v850_v43, %v851_v45  ;;  %v854_v57 = vsel %vm834_vm5, %v851_v45, %v853_v47  ;;  %v8054_v11 = vpack.c.bf16 %v7915_v58, %v7919_v59  ;;  %v8058_v14 = vsel %vm650_vm2, 0.0, %v668_v49 }
 0x108   : > { %v6508_v53 = vpop.f32.mrb[12].mxu0  ;;  %v665_v1 = vrot.slane %v593_v50, 7  ;;  %v669_v3 = vrot.slane %v596_v51, 7  ;;  %v666_v9 = vrot.slane %v594_v52, 7  ;;  %v8060_v15 = vpack.c.bf16 %v854_v57, %v852_v56 }
 0x109   : > { %v515_v19 = vadd.f32 %v6508_v53, %v7944_v5  ;;  %v506_v61 = vpop.f32.mrb[13].mxu0  ;;  %10346 = vst [vmem:[#allocation13_spill] sm:$0xff] %v8054_v11  ;;  %v523_v18 = vadd.f32 %v7944_v5, %v7952_v22  ;;  %v858_v21 = vrot.slane %v8040_v44, 1  ;;  %v603_v22 = vmax.f32 %v531_v41, 0.0 }
 0x10a   : > { %v6509_v10 = vpop.f32.mrb[14].mxu0  ;;  %10347 = vst [vmem:[#allocation14_spill] sm:$0xff] %v8060_v15  ;;  %v8066_v23 = vsel %vm650_vm2, 0.0, %v665_v1  ;;  %v8069_v25 = vsel %vm650_vm2, %v668_v49, %v669_v3  ;;  %v8072_v27 = vsel %vm650_vm2, %v665_v1, %v666_v9  ;;  %6533 = vmatmul.mubr.msk.bf16.gmra.mrb[20].mxu1 %vm965_vm6, %v8060_v15  ;;  %v865_v49 = vrot.slane %v8058_v14, 1 }
 0x10b   : > { %v509_v16 = vpop.f32.mrb[15].mxu0  ;;  %v599_v34 = vmax.f32 %v515_v19, 0.0  ;;  %v860_v52 = vrot.slane %v8066_v23, 1  ;;  %v8090_v41 = vsel %vm650_vm2, %v669_v3, 0.0  ;;  %v507_v56 = vadd.f32 %v7944_v5, %v506_v61 }
 0x10c   : > { %v8078_v39 = vpop.f32.mrb[12].mxu1  ;;  %v859_v57 = vsel %vm834_vm5, %v856_v40, %v858_v21  ;;  %v518_v1 = vadd.f32 %v6509_v10, %v7944_v5  ;;  %v510_v43 = vadd.f32 %v7944_v5, %v509_v16  ;;  %v680_v47 = vrot.slane %v603_v22, 7 }
 0x10d   : > { %v8084_v50 = vpop.f32.mrb[13].mxu1  ;;  %v674_v51 = vrot.slane %v599_v34, 7  ;;  %v8100_v31 = vpack.c.bf16 %v859_v57, %v857_v0  ;;  %v601_v53 = vmax.f32 %v523_v18, 0.0  ;;  %v866_v3 = vrot.slane %v8069_v25, 1 }
 0x10e   : > { %v8092_v19 = vpop.f32.mrb[14].mxu1  ;;  %v868_v28 = vrot.slane %v8090_v41, 1  ;;  %v597_v45 = vmax.f32 %v507_v56, 0.0  ;;  %v600_v2 = vmax.f32 %v518_v1, 0.0  ;;  %v598_v40 = vmax.f32 %v510_v43, 0.0 }
 0x10f   : > { %v8098_v13 = vpop.f32.mrb[15].mxu1  ;;  %10348 = vst [vmem:[#allocation15_spill] sm:$0xff] %v8100_v31  ;;  %6536 = vmatprep.mubr.msk.bf16.mxu1 %vm965_vm6, %v8100_v31  ;;  %v677_v10 = vrot.slane %v601_v53, 7  ;;  %v534_v16 = vadd.f32 %v7960_v26, %v7944_v5  ;;  %v8110_v0 = vsel %vm650_vm2, %v666_v9, 0.0  ;;  %v861_v18 = vrot.slane %v8072_v27, 1 }
 0x110   : > { %v671_v21 = vrot.slane %v597_v45, 7  ;;  %v675_v34 = vrot.slane %v600_v2, 7  ;;  %v8114_v22 = vsel %vm650_vm2, 0.0, %v674_v51  ;;  %v672_v56 = vrot.slane %v598_v40, 7 }
 0x111   : > { %v8117_v57 = vsel %vm650_vm2, 0.0, %v680_v47  ;;  %v8120_v43 = vsel %vm650_vm2, 0.0, %v677_v10  ;;  %v604_v9 = vmax.f32 %v534_v16, 0.0  ;;  %v526_v2 = vadd.f32 %v7944_v5, %v7963_v30 }
 0x112   : > { %v8123_v53 = vsel %vm650_vm2, 0.0, %v671_v21  ;;  %v8126_v26 = vsel %vm650_vm2, %v674_v51, %v675_v34  ;;  %v863_v1 = vrot.slane %v8110_v0, 1  ;;  %v875_v31 = vrot.slane %v8114_v22, 1 }
 0x113   : > { %v8137_v29 = vsel %vm650_vm2, %v671_v21, %v672_v56  ;;  %v870_v16 = vrot.slane %v8123_v53, 1  ;;  %v8142_v30 = vsel %vm650_vm2, %v675_v34, 0.0  ;;  %v880_v40 = vrot.slane %v8120_v43, 1 }
 0x114   : > { %v8147_v61 = vsel %vm650_vm2, %v672_v56, 0.0  ;;  %v681_v63 = vrot.slane %v604_v9, 7  ;;  %v602_v8 = vmax.f32 %v526_v2, 0.0  ;;  %v862_v15 = vsel %vm834_vm5, %v860_v52, %v861_v18 }
 0x115   : > { %v864_v21 = vsel %vm834_vm5, %v861_v18, %v863_v1  ;;  %v867_v51 = vsel %vm834_vm5, %v865_v49, %v866_v3  ;;  %v869_v33 = vsel %vm834_vm5, %v866_v3, %v868_v28  ;;  %v547_v34 = vadd.f32 %v7984_v54, %v7944_v5 }
 0x116   : > { %v8157_v60 = vsel %vm650_vm2, %v680_v47, %v681_v63  ;;  %v678_v56 = vrot.slane %v602_v8, 7  ;;  %v8159_v58 = vpack.c.bf16 %v864_v21, %v862_v15  ;;  %v876_v9 = vrot.slane %v8126_v26, 1 }
 0x117   : > { %v878_v52 = vrot.slane %v8142_v30, 1  ;;  %v871_v18 = vrot.slane %v8137_v29, 1  ;;  %v873_v49 = vrot.slane %v8147_v61, 1  ;;  %v8171_v47 = vpack.c.bf16 %v869_v33, %v867_v51 }
 0x118   : > { %10349 = vst [vmem:[#allocation16_spill] sm:$0xff] %v8159_v58  ;;  %v8167_v54 = vsel %vm650_vm2, %v677_v10, %v678_v56  ;;  %6537 = vmatmul.mubr.msk.bf16.gmra.mrb[24].mxu1 %vm965_vm6, %v8159_v58  ;;  %v607_v8 = vmax.f32 %v547_v34, 0.0  ;;  %v8176_v2 = vsel %vm650_vm2, %v678_v56, 0.0  ;;  %v539_v21 = vadd.f32 %v7944_v5, %v7990_v62 }
 0x119   : > { %10350 = vst [vmem:[#allocation17_spill] sm:$0xff] %v8171_v47  ;;  %10351 = vst [vmem:[#allocation18_spill] sm:$0xff] %v8176_v2  ;;  %v881_v1 = vrot.slane %v8167_v54, 1  ;;  %6540 = vmatprep.mubr.msk.bf16.mxu1 %vm965_vm6, %v8171_v47  ;;  %v550_v33 = vadd.f32 %v7995_v7, %v7944_v5  ;;  %v542_v51 = vadd.f32 %v7944_v5, %v7999_v12  ;;  %v8194_v7 = vsel %vm650_vm2, %v681_v63, 0.0 }
 0x11a   : > { %v686_v10 = vrot.slane %v607_v8, 7  ;;  %v872_v34 = vsel %vm834_vm5, %v870_v16, %v871_v18  ;;  %v874_v56 = vsel %vm834_vm5, %v871_v18, %v873_v49  ;;  %v877_v15 = vsel %vm834_vm5, %v875_v31, %v876_v9  ;;  %10352 = vst [vmem:[#allocation19_spill] sm:$0xff] %v8194_v7 }
 0x11b   : > { %v879_v28 = vsel %vm834_vm5, %v876_v9, %v878_v52  ;;  %v605_v8 = vmax.f32 %v539_v21, 0.0  ;;  %v608_v3 = vmax.f32 %v550_v33, 0.0  ;;  %v606_v47 = vmax.f32 %v542_v51, 0.0 }
 0x11c   : > { %v8196_v58 = vpack.c.bf16 %v874_v56, %v872_v34  ;;  %v8198_v12 = vpack.c.bf16 %v879_v28, %v877_v15  ;;  %v883_v16 = vrot.slane %v8176_v2, 1  ;;  %v8202_v9 = vsel %vm650_vm2, 0.0, %v686_v10 }
 0x11d   : > { %v683_v18 = vrot.slane %v605_v8, 7  ;;  %v687_v31 = vrot.slane %v608_v3, 7  ;;  %v684_v49 = vrot.slane %v606_v47, 7  ;;  %v563_v52 = vadd.f32 %v8028_v38, %v7944_v5 }
 0x11e   : > { %10353 = vst [vmem:[#allocation20_spill] sm:$0xff] %v8196_v58  ;;  %10354 = vst [vmem:[#allocation21_spill] sm:$0xff] %v8198_v12  ;;  %v555_v21 = vadd.f32 %v7944_v5, %v8036_v42  ;;  %v882_v63 = vsel %vm834_vm5, %v880_v40, %v881_v1  ;;  %v566_v47 = vadd.f32 %v8044_v48, %v7944_v5  ;;  %v886_v15 = vrot.slane %v8157_v60, 1 }
 0x11f   : > { %v8210_v33 = vsel %vm650_vm2, %v686_v10, %v687_v31  ;;  %v8213_v28 = vsel %vm650_vm2, %v683_v18, %v684_v49  ;;  %v558_v38 = vadd.f32 %v7944_v5, %v8046_v55  ;;  %v888_v42 = vrot.slane %v8194_v7, 1 }
 0x120   : > { %6541 = vmatmul.mubr.msk.bf16.gmra.mrb[28].mxu1 %vm965_vm6, %v8196_v58  ;;  %v895_v48 = vrot.slane %v8202_v9, 1  ;;  %v8232_v55 = vsel %vm650_vm2, 0.0, %v683_v18  ;;  %v8235_v56 = vsel %vm650_vm2, %v687_v31, 0.0  ;;  %v8238_v8 = vsel %vm650_vm2, %v684_v49, 0.0 }
 0x121   : > { %6544 = vmatprep.mubr.msk.bf16.mxu1 %vm965_vm6, %v8198_v12  ;;  %v611_v3 = vmax.f32 %v563_v52, 0.0  ;;  %v609_v40 = vmax.f32 %v555_v21, 0.0  ;;  %v612_v62 = vmax.f32 %v566_v47, 0.0  ;;  %v610_v45 = vmax.f32 %v558_v38, 0.0 }
 0x122   : > { %v884_v10 = vsel %vm834_vm5, %v881_v1, %v883_v16  ;;  %v10356_v34 = vrot.slane %v8117_v57, 1  ;;  %v889_v58 = vsel %vm834_vm5, %v886_v15, %v888_v42  ;;  %v890_v52 = vrot.slane %v8232_v55, 1 }
 0x123   : > { %v692_v51 = vrot.slane %v611_v3, 7  ;;  %v8241_v12 = vpack.c.bf16 %v884_v10, %v882_v63  ;;  %v689_v31 = vrot.slane %v609_v40, 7  ;;  %v693_v59 = vrot.slane %v612_v62, 7 }
 0x124   : > { %v887_v18 = vsel %vm834_vm5, %v10356_v34, %v886_v15  ;;  %v690_v35 = vrot.slane %v610_v45, 7  ;;  %v579_v16 = vadd.f32 %v8078_v39, %v7944_v5  ;;  %v582_v45 = vadd.f32 %v8092_v19, %v7944_v5 }
 0x125   : > { %10355 = vst [vmem:[#allocation22_spill] sm:$0xff] %v8241_v12  ;;  %v8247_v49 = vpack.c.bf16 %v889_v58, %v887_v18  ;;  %v8252_v1 = vsel %vm650_vm2, 0.0, %v692_v51  ;;  %v8257_v63 = vsel %vm650_vm2, 0.0, %v689_v31  ;;  %v8260_v47 = vsel %vm650_vm2, %v692_v51, %v693_v59 }
 0x126   : > { %v571_v58 = vadd.f32 %v7944_v5, %v8084_v50  ;;  %v896_v62 = vrot.slane %v8210_v33, 1  ;;  %v891_v38 = vrot.slane %v8213_v28, 1  ;;  %v893_v39 = vrot.slane %v8238_v8, 1 }
 0x127   : > { %10357 = vst [vmem:[#allocation23_spill] sm:$0xff] %v8247_v49  ;;  %v8272_v15 = vsel %vm650_vm2, %v693_v59, 0.0  ;;  %v898_v42 = vrot.slane %v8235_v56, 1  ;;  %v905_v50 = vrot.slane %v8252_v1, 1  ;;  %v8280_v19 = vsel %vm650_vm2, %v689_v31, %v690_v35 }
 0x128   : > { %6545 = vmatmul.mubr.msk.bf16.gmra.mrb[32].mxu1 %vm965_vm6, %v8241_v12  ;;  %v900_v3 = vrot.slane %v8257_v63, 1  ;;  %v906_v10 = vrot.slane %v8260_v47, 1  ;;  %v901_v51 = vrot.slane %v8280_v19, 1  ;;  %v615_v59 = vmax.f32 %v579_v16, 0.0 }
 0x129   : > { %6548 = vmatprep.mubr.msk.bf16.mxu1 %vm965_vm6, %v8247_v49  ;;  %v908_v34 = vrot.slane %v8272_v15, 1  ;;  %v8287_v18 = vsel %vm650_vm2, %v690_v35, 0.0  ;;  %v613_v21 = vmax.f32 %v571_v58, 0.0  ;;  %v616_v49 = vmax.f32 %v582_v45, 0.0 }
 0x12a   : > { %v698_v40 = vrot.slane %v615_v59, 7  ;;  %v574_v12 = vadd.f32 %v7944_v5, %v8098_v13  ;;  %v892_v31 = vsel %vm834_vm5, %v890_v52, %v891_v38  ;;  %v894_v46 = vsel %vm834_vm5, %v891_v38, %v893_v39 }
 0x12b   : > { %v695_v6 = vrot.slane %v613_v21, 7  ;;  %v699_v7 = vrot.slane %v616_v49, 7  ;;  %v8293_v2 = vpack.c.bf16 %v894_v46, %v892_v31  ;;  %v897_v16 = vsel %vm834_vm5, %v895_v48, %v896_v62 }
 0x12c   : > { %v903_v11 = vrot.slane %v8287_v18, 1  ;;  %v614_v35 = vmax.f32 %v574_v12, 0.0  ;;  %v899_v58 = vsel %vm834_vm5, %v896_v62, %v898_v42  ;;  %v902_v45 = vsel %vm834_vm5, %v900_v3, %v901_v51 }
 0x12d   : > { %10358 = vst [vmem:[#allocation24_spill] sm:$0xff] %v8293_v2  ;;  %v8302_v13 = vsel %vm650_vm2, 0.0, %v695_v6  ;;  %v8305_v49 = vsel %vm650_vm2, %v698_v40, %v699_v7  ;;  %v8316_v42 = vpack.c.bf16 %v899_v58, %v897_v16  ;;  %v907_v31 = vsel %vm834_vm5, %v905_v50, %v906_v10 }
 0x12e   : > { %v910_v38 = vrot.slane %v8302_v13, 1  ;;  %v696_v39 = vrot.slane %v614_v35, 7  ;;  %v904_v3 = vsel %vm834_vm5, %v901_v51, %v903_v11  ;;  %v909_v59 = vsel %vm834_vm5, %v906_v10, %v908_v34 }
 0x12f   : > { %10359 = vst [vmem:[#allocation25_spill] sm:$0xff] %v8316_v42  ;;  %v8327_v21 = vpack.c.bf16 %v904_v3, %v902_v45  ;;  %v8329_v48 = vpack.c.bf16 %v909_v59, %v907_v31  ;;  %v8333_v16 = vsel %vm650_vm2, 0.0, %v698_v40  ;;  %v8344_v10 = vpack.c.bf16 %v8023_v36, %v8011_v20 }
 0x130   : > { %6549 = vmatmul.mubr.msk.bf16.gmra.mrb[36].mxu1 %vm965_vm6, %v8293_v2  ;;  %v8322_v12 = vsel %vm650_vm2, %v695_v6, %v696_v39  ;;  %v8325_v52 = vsel %vm650_vm2, %v696_v39, 0.0  ;;  %v8340_v6 = vsel %vm650_vm2, %v699_v7, 0.0  ;;  %v8348_v51 = vpack.c.bf16 %v8020_v4, %v8007_v17 }
 0x131   : > { %10360 = vst [vmem:[#allocation26_spill] sm:$0xff] %v8327_v21  ;;  %10361 = vst [vmem:[#allocation27_spill] sm:$0xff] %v8329_v48  ;;  %v911_v11 = vrot.slane %v8322_v12, 1  ;;  %v913_v50 = vrot.slane %v8325_v52, 1  ;;  %6552 = vmatprep.mubr.msk.bf16.mxu1 %vm965_vm6, %v8316_v42  ;;  %v8352_v40 = vpack.c.bf16 %v8072_v27, %v8066_v23  ;;  %v8358_v7 = vpack.c.bf16 %v8069_v25, %v8058_v14 }
 0x132   : > { %v8362_v45 = vpack.c.bf16 %v8137_v29, %v8123_v53  ;;  %v8370_v39 = vpack.c.bf16 %v8126_v26, %v8114_v22  ;;  %v8378_v3 = vpack.c.bf16 %v8157_v60, %v8117_v57  ;;  %v8384_v31 = vpack.c.bf16 %v8213_v28, %v8232_v55 }
 0x133   : > { %v912_v34 = vsel %vm834_vm5, %v910_v38, %v911_v11  ;;  %v914_v58 = vsel %vm834_vm5, %v911_v11, %v913_v50  ;;  %v8374_v38 = vpack.c.bf16 %v8167_v54, %v8120_v43  ;;  %v8388_v11 = vpack.c.bf16 %v8210_v33, %v8202_v9 }
 0x134   : > { %v8366_v59 = vpack.c.bf16 %v914_v58, %v912_v34  ;;  %10362 = vst [vmem:[#allocation28_spill] sm:$0xff] %v8370_v39  ;;  %10364 = vst [vmem:[#allocation30_spill] sm:$0xff] %v8378_v3  ;;  %v8392_v50 = vpack.c.bf16 %v8280_v19, %v8257_v63  ;;  %v8396_v34 = vpack.c.bf16 %v8260_v47, %v8252_v1  ;;  %v1972_v58 = vrot.slane %v8333_v16, 1 }
 0x135   : > { %10363 = vst [vmem:[#allocation29_spill] sm:$0xff] %v8374_v38  ;;  %10365 = vst [vmem:[#allocation31_spill] sm:$0xff] %v8384_v31  ;;  %v2181_v35 = vrot.slane %v8333_v16, 2  ;;  %v1469_v62 = vrot.slane %v8302_v13, 2  ;;  %v8403_v46 = vpack.c.bf16 %v8322_v12, %v8302_v13  ;;  %v1973_v5 = vrot.slane %v8305_v49, 1 }
 0x136   : > { %10366 = vst [vmem:[#allocation32_spill] sm:$0xff] %v8388_v11  ;;  %10367 = vst [vmem:[#allocation33_spill] sm:$0xff] %v8392_v50  ;;  %v10370_v42 = vrot.slane %v8023_v36, 2  ;;  %v10371_v2 = vrot.slane %v8011_v20, 2  ;;  %v2184_v50 = vrot.slane %v8340_v6, 2  ;;  %v1470_v11 = vrot.slane %v8322_v12, 2 }
 0x137   : > { %10368 = vst [vmem:[#allocation34_spill] sm:$0xff] %v8396_v34  ;;  %10369 = vst [vmem:[#allocation35_spill] sm:$0xff] %v8403_v46  ;;  %v1472_v31 = vrot.slane %v8325_v52, 2  ;;  %v10372_v13 = vrot.slane %v8026_v37, 2  ;;  %v8423_v38 = vpack.c.bf16 %v7967_v32, %v7958_v24  ;;  %v10374_v20 = vrot.slane %v8020_v4, 2 }
 0x138   : > { %6553 = vmatmul.mubr.msk.bf16.gmra.mrb[40].mxu1 %vm965_vm6, %v8327_v21  ;;  %v2182_v21 = vrot.slane %v8305_v49, 2  ;;  %v1411_v34 = vsel %vm1393_vm7, %v10371_v2, %v10370_v42  ;;  %v10373_v46 = vmov %v10370_v42  ;;  %v10375_v2 = vrot.slane %v8007_v17, 2 }
 0x139   : > { %6556 = vmatprep.mubr.msk.bf16.mxu1 %vm965_vm6, %v8329_v48  ;;  %v1975_v48 = vrot.slane %v8340_v6, 1  ;;  %v1413_v3 = vsel %vm1393_vm7, %v10373_v46, %v10372_v13  ;;  %v10376_v52 = vrot.slane %v8040_v44, 2  ;;  %v10377_v37 = vmov %v10374_v20 }
 0x13a   : > { %v8425_v39 = vpack.c.bf16 %v1413_v3, %v1411_v34  ;;  %v1416_v12 = vsel %vm1393_vm7, %v10375_v2, %v10374_v20  ;;  %v10378_v46 = vrot.slane %v8072_v27, 2  ;;  %v10379_v6 = vrot.slane %v8066_v23, 2 }
 0x13b   : > { %v1418_v36 = vsel %vm1393_vm7, %v10377_v37, %v10376_v52  ;;  %v10380_v34 = vrot.slane %v8110_v0, 2  ;;  %v10382_v44 = vrot.slane %v8069_v25, 2  ;;  %v10383_v4 = vrot.slane %v8058_v14, 2 }
 0x13c   : > { %v8437_v42 = vpack.c.bf16 %v1418_v36, %v1416_v12  ;;  %v1421_v3 = vsel %vm1393_vm7, %v10379_v6, %v10378_v46  ;;  %v10381_v17 = vmov %v10378_v46  ;;  %v10384_v12 = vrot.slane %v8090_v41, 2 }
 0x13d   : > { %v1423_v13 = vsel %vm1393_vm7, %v10381_v17, %v10380_v34  ;;  %v1426_v20 = vsel %vm1393_vm7, %v10383_v4, %v10382_v44  ;;  %v10385_v23 = vmov %v10382_v44  ;;  %v10386_v0 = vrot.slane %v8137_v29, 2  ;;  %v10394_v17 = vld [vmem:[#allocation13_spill] sm:$0xff] }
 0x13e   : > { %v8454_v2 = vpack.c.bf16 %v1423_v13, %v1421_v3  ;;  %v1428_v52 = vsel %vm1393_vm7, %v10385_v23, %v10384_v12  ;;  %v10387_v27 = vrot.slane %v8123_v53, 2  ;;  %v10388_v36 = vrot.slane %v8147_v61, 2 }
 0x13f   : > { %v10389_v14 = vmov %v10386_v0  ;;  %v8473_v41 = vpack.c.bf16 %v1428_v52, %v1426_v20  ;;  %v10390_v6 = vrot.slane %v8126_v26, 2  ;;  %v10391_v3 = vrot.slane %v8114_v22, 2  ;;  %v10397_v22 = vld [vmem:[#allocation18_spill] sm:$0xff] }
 0x140   : > { %v1431_v37 = vsel %vm1393_vm7, %v10387_v27, %v10386_v0  ;;  %v1433_v46 = vsel %vm1393_vm7, %v10389_v14, %v10388_v36  ;;  %6557 = vmatmul.mubr.msk.bf16.gmra.mrb[44].mxu1 %vm965_vm6, %v8366_v59  ;;  %v10392_v34 = vrot.slane %v8142_v30, 2  ;;  %v10395_v44 = vrot.slane %v8167_v54, 2 }
 0x141   : > { %v8475_v25 = vpack.c.bf16 %v1433_v46, %v1431_v37  ;;  %v1436_v53 = vsel %vm1393_vm7, %v10391_v3, %v10390_v6  ;;  %v10393_v61 = vmov %v10390_v6  ;;  %6562 = vmatprep.mubr.msk.bf16.mxu1 %vm965_vm6, %v10394_v17  ;;  %v10396_v4 = vrot.slane %v8120_v43, 2  ;;  %v10402_v37 = vld [vmem:[#allocation19_spill] sm:$0xff] }
 0x142   : > { %v1438_v29 = vsel %vm1393_vm7, %v10393_v61, %v10392_v34  ;;  %v10398_v12 = vrot.slane %v10397_v22, 2  ;;  %v10399_v23 = vmov %v10395_v44  ;;  %v10400_v26 = vrot.slane %v8157_v60, 2  ;;  %v5857_v34 = vld [vmem:[%s10231_s3 + $0x6] sm:$0x3] }
 0x143   : > { %v8489_v13 = vpack.c.bf16 %v1438_v29, %v1436_v53  ;;  %v1441_v20 = vsel %vm1393_vm7, %v10396_v4, %v10395_v44  ;;  %v10401_v52 = vrot.slane %v8117_v57, 2  ;;  %v10403_v36 = vrot.slane %v10402_v37, 2 }
 0x144   : > { %v1443_v30 = vsel %vm1393_vm7, %v10399_v23, %v10398_v12  ;;  %v10404_v43 = vmov %v10400_v26  ;;  %v10405_v46 = vrot.slane %v8213_v28, 2  ;;  %v10406_v54 = vrot.slane %v8232_v55, 2 }
 0x145   : > { %v1446_v0 = vsel %vm1393_vm7, %v10401_v52, %v10400_v26  ;;  %v8506_v27 = vpack.c.bf16 %v1443_v30, %v1441_v20  ;;  %v1448_v14 = vsel %vm1393_vm7, %v10404_v43, %v10403_v36  ;;  %v10407_v3 = vrot.slane %v8238_v8, 2  ;;  %v10421_v43 = vld [vmem:[#allocation2_spill] sm:$0xff] }
 0x146   : > { %v1451_v6 = vsel %vm1393_vm7, %v10406_v54, %v10405_v46  ;;  %v10408_v57 = vmov %v10405_v46  ;;  %v8526_v61 = vpack.c.bf16 %v1448_v14, %v1446_v0  ;;  %v10409_v29 = vrot.slane %v8210_v33, 2 }
 0x147   : > { %v1453_v53 = vsel %vm1393_vm7, %v10408_v57, %v10407_v3  ;;  %v10410_v55 = vrot.slane %v8202_v9, 2  ;;  %v10411_v8 = vrot.slane %v8235_v56, 2  ;;  %v10413_v22 = vrot.slane %v8280_v19, 2  ;;  %v10422_v3 = vld [vmem:[#allocation9_spill] sm:$0xff]  ;;  %v10423_v57 = vld [vmem:[#allocation8_spill] sm:$0xff] }
 0x148   : > { %v8528_v60 = vpack.c.bf16 %v1453_v53, %v1451_v6  ;;  %v10412_v28 = vmov %v10409_v29  ;;  %v10414_v12 = vrot.slane %v8257_v63, 2  ;;  %v10415_v30 = vrot.slane %v8287_v18, 2  ;;  %6563 = vmatmul.mubr.msk.bf16.vlgmr.msra.gmra.mrb[16].mxu1 %vm965_vm6, %v10422_v3 }
 0x149   : > { %v1456_v44 = vsel %vm1393_vm7, %v10410_v55, %v10409_v29  ;;  %v1458_v4 = vsel %vm1393_vm7, %v10412_v28, %v10411_v8  ;;  %v10416_v9 = vmov %v10413_v22  ;;  %v10417_v56 = vrot.slane %v8260_v47, 2  ;;  %6595 = vmatpush3.bf16.msra.mxu1 %v10423_v57  ;;  %6566 = vmatprep.mubr.msk.bf16.mxu1 %vm965_vm6, %v8423_v38  ;;  %v10432_v55 = vld [vmem:[#allocation33_spill] sm:$0xff] }
 0x14a   : > { %v8540_v20 = vpack.c.bf16 %v1458_v4, %v1456_v44  ;;  %v1461_v23 = vsel %vm1393_vm7, %v10414_v12, %v10413_v22  ;;  %v1463_v26 = vsel %vm1393_vm7, %v10416_v9, %v10415_v30  ;;  %v10418_v33 = vrot.slane %v8252_v1, 2  ;;  %v10433_v44 = vld [vmem:[#allocation34_spill] sm:$0xff]  ;;  %v10435_v12 = vld [vmem:[#allocation7_spill] sm:$0xff]  ;;  %v10445_v57 = vld [vmem:[#allocation21_spill] sm:$0xff] }
 0x14b   : > { %v8557_v0 = vpack.c.bf16 %v1463_v26, %v1461_v23  ;;  %v10419_v37 = vrot.slane %v8272_v15, 2  ;;  %v10420_v63 = vmov %v10417_v56  ;;  %v1471_v18 = vsel %vm1393_vm7, %v1469_v62, %v1470_v11  ;;  %v10436_v30 = vld [vmem:[#allocation35_spill] sm:$0xff] }
 0x14c   : > { %v1466_v52 = vsel %vm1393_vm7, %v10418_v33, %v10417_v56  ;;  %v1473_v19 = vsel %vm1393_vm7, %v1470_v11, %v1472_v31  ;;  %v1775_v14 = vand.u32 %v5857_v34, %v10421_v43  ;;  %v8573_v1 = vpack.c.bf16 %v8305_v49, %v8333_v16  ;;  %v10425_v49 = vld [vmem:[#allocation29_spill] sm:$0xff]  ;;  %v10429_v16 = vld [vmem:[#allocation4_spill] sm:$0xff]  ;;  %v5874_v26 = vld [vmem:[%s10231_s3 + $0x8] sm:$0x3] }
 0x14d   : > { %v1468_v36 = vsel %vm1393_vm7, %v10420_v63, %v10419_v37  ;;  %v8569_v54 = vpack.c.bf16 %v1473_v19, %v1471_v18  ;;  %v1974_v15 = vsel %vm834_vm5, %v1972_v58, %v1973_v5  ;;  %v1976_v47 = vsel %vm834_vm5, %v1973_v5, %v1975_v48  ;;  %v10424_v5 = vld [vmem:[#allocation28_spill] sm:$0xff]  ;;  %v10426_v48 = vld [vmem:[#allocation30_spill] sm:$0xff]  ;;  %v10430_v58 = vld [vmem:[#allocation3_spill] sm:$0xff] }
 0x14e   : > { %v8567_v46 = vpack.c.bf16 %v1468_v36, %v1466_v52  ;;  %v2183_v6 = vsel %vm1393_vm7, %v2181_v35, %v2182_v21  ;;  %v2185_v62 = vsel %vm1393_vm7, %v2182_v21, %v2184_v50  ;;  %v8581_v31 = vpack.c.bf16 %v1976_v47, %v1974_v15  ;;  %6628 = vmatprep.subr.bf16.mxu1 %v1775_v14  ;;  %v10427_v21 = vld [vmem:[#allocation31_spill] sm:$0xff]  ;;  %v10428_v35 = vld [vmem:[#allocation32_spill] sm:$0xff]  ;;  %v10431_v34 = vld [vmem:[#allocation5_spill] sm:$0xff] }
 0x14f   : > { %v8583_v11 = vpack.c.bf16 %v2185_v62, %v2183_v6  ;;  %v1394_v50 = vrot.slane %v10429_v16, 2  ;;  %v1395_v53 = vrot.slane %v10430_v58, 2  ;;  %v1397_v29 = vrot.slane %v10431_v34, 2  ;;  %v10437_v37 = vld [vmem:[#allocation11_spill] sm:$0xff]  ;;  %v10438_v36 = vld [vmem:[#allocation10_spill] sm:$0xff]  ;;  %v10442_v6 = vld [vmem:[#allocation16_spill] sm:$0xff] }
 0x150   : > { %6567 = vmatmul.mubr.msk.bf16.gmra.mrb[20].mxu1 %vm965_vm6, %v8344_v10  ;;  %v1405_v22 = vrot.slane %v7967_v32, 2  ;;  %v1407_v23 = vrot.slane %v10435_v12, 2  ;;  %v1404_v9 = vrot.slane %v7958_v24, 2  ;;  %v1986_v32 = vand.u32 %v5874_v26, %v10421_v43  ;;  %v5891_v24 = vld [vmem:[%s10231_s3 + $0xa] sm:$0x3]  ;;  %v10440_v15 = vld [vmem:[#allocation14_spill] sm:$0xff] }
 0x151   : > { %6570 = vmatprep.mubr.msk.bf16.mxu1 %vm965_vm6, %v8348_v51  ;;  %v1396_v8 = vsel %vm1393_vm7, %v1394_v50, %v1395_v53  ;;  %v1398_v28 = vsel %vm1393_vm7, %v1395_v53, %v1397_v29  ;;  %v2195_v63 = vand.u32 %v5891_v24, %v10421_v43  ;;  %v5908_v18 = vld [vmem:[%s10231_s3 + $0xc] sm:$0x3]  ;;  %v10443_v62 = vld [vmem:[#allocation17_spill] sm:$0xff]  ;;  %v10446_v16 = vld [vmem:[#allocation22_spill] sm:$0xff] }
 0x152   : > { %v8617_v4 = vpack.c.bf16 %v1398_v28, %v1396_v8  ;;  %v1406_v56 = vsel %vm1393_vm7, %v1404_v9, %v1405_v22  ;;  %v1408_v33 = vsel %vm1393_vm7, %v1405_v22, %v1407_v23  ;;  %v2393_v19 = vand.u32 %v5908_v18, %v10421_v43  ;;  %v10441_v47 = vld [vmem:[#allocation15_spill] sm:$0xff]  ;;  %v10448_v58 = vld [vmem:[#allocation24_spill] sm:$0xff]  ;;  %v10449_v53 = vld [vmem:[#allocation25_spill] sm:$0xff] }
 0x153   : > { %v8632_v52 = vpack.c.bf16 %v1408_v33, %v1406_v56  ;;  %v10447_v50 = vld [vmem:[#allocation23_spill] sm:$0xff]  ;;  %v10450_v34 = vld [vmem:[#allocation26_spill] sm:$0xff]  ;;  %v5942_v22 = vld [vmem:[%s10231_s3 + $0x10] sm:$0x3] }
 0x154   : > { %10434 = vst [vmem:[#allocation13_spill] sm:$0xff] %v8617_v4  ;;  %v10451_v29 = vld [vmem:[#allocation27_spill] sm:$0xff]  ;;  %v2789_v12 = vand.u32 %v5942_v22, %v10421_v43 }
 0x155   : > { %v5925_v8 = vld [vmem:[%s10231_s3 + $0xe] sm:$0x3] }
 0x156   : > { %v2591_v28 = vand.u32 %v5925_v8, %v10421_v43 }
 0x158   : > { %6571 = vmatmul.mubr.msk.bf16.gmra.mrb[24].mxu1 %vm965_vm6, %v8352_v40 }
 0x159   : > { %6574 = vmatprep.mubr.msk.bf16.mxu1 %vm965_vm6, %v8358_v7 }
 0x160   : > { %6575 = vmatmul.mubr.msk.bf16.gmra.mrb[28].mxu1 %vm965_vm6, %v8362_v45 }
 0x161   : > { %6578 = vmatprep.mubr.msk.bf16.mxu1 %vm965_vm6, %v10424_v5 }
 0x168   : > { %6579 = vmatmul.mubr.msk.bf16.gmra.mrb[32].mxu1 %vm965_vm6, %v10425_v49 }
 0x169   : > { %6582 = vmatprep.mubr.msk.bf16.mxu1 %vm965_vm6, %v10426_v48 }
 0x170   : > { %6583 = vmatmul.mubr.msk.bf16.gmra.mrb[36].mxu1 %vm965_vm6, %v10427_v21 }
 0x171   : > { %6586 = vmatprep.mubr.msk.bf16.mxu1 %vm965_vm6, %v10428_v35 }
 0x178   : > { %6587 = vmatmul.mubr.msk.bf16.gmra.mrb[40].mxu1 %vm965_vm6, %v10432_v55 }
 0x179   : > { %6590 = vmatprep.mubr.msk.bf16.mxu1 %vm965_vm6, %v10433_v44 }
 0x180   : > { %6591 = vmatmul.mubr.msk.bf16.gmra.mrb[44].mxu1 %vm965_vm6, %v10436_v30 }
 0x181   : > { %6596 = vmatprep.mubr.msk.bf16.mxu1 %vm965_vm6, %v8617_v4 }
 0x188   : > { %6597 = vmatmul.mubr.msk.bf16.vlgmr.msra.gmra.mrb[16].mxu1 %vm965_vm6, %v10437_v37 }
 0x189   : > { %6629 = vmatpush3.bf16.msra.mxu1 %v1775_v14  ;;  %6600 = vmatprep.mubr.msk.bf16.mxu1 %vm965_vm6, %v8632_v52  ;;  %v10439_v14 = vld [vmem:[#allocation12_spill] sm:$0xff] }
 0x18a   : > { %6662 = vmatprep.subr.bf16.mxu1 %v1986_v32 }
 0x190   : > { %6601 = vmatmul.mubr.msk.bf16.gmra.mrb[20].mxu1 %vm965_vm6, %v8425_v39 }
 0x191   : > { %6604 = vmatprep.mubr.msk.bf16.mxu1 %vm965_vm6, %v8437_v42 }
 0x198   : > { %6605 = vmatmul.mubr.msk.bf16.gmra.mrb[24].mxu1 %vm965_vm6, %v8454_v2 }
 0x199   : > { %6608 = vmatprep.mubr.msk.bf16.mxu1 %vm965_vm6, %v8473_v41 }
 0x1a0   : > { %6609 = vmatmul.mubr.msk.bf16.gmra.mrb[28].mxu1 %vm965_vm6, %v8475_v25 }
 0x1a1   : > { %6612 = vmatprep.mubr.msk.bf16.mxu1 %vm965_vm6, %v8489_v13 }
 0x1a8   : > { %6613 = vmatmul.mubr.msk.bf16.gmra.mrb[32].mxu1 %vm965_vm6, %v8506_v27 }
 0x1a9   : > { %6616 = vmatprep.mubr.msk.bf16.mxu1 %vm965_vm6, %v8526_v61 }
 0x1b0   : > { %6617 = vmatmul.mubr.msk.bf16.gmra.mrb[36].mxu1 %vm965_vm6, %v8528_v60 }
 0x1b1   : > { %6620 = vmatprep.mubr.msk.bf16.mxu1 %vm965_vm6, %v8540_v20 }
 0x1b8   : > { %6621 = vmatmul.mubr.msk.bf16.gmra.mrb[40].mxu1 %vm965_vm6, %v8557_v0 }
 0x1b9   : > { %6624 = vmatprep.mubr.msk.bf16.mxu1 %vm965_vm6, %v8567_v46 }
 0x1c0   : > { %6625 = vmatmul.mubr.msk.bf16.gmra.mrb[44].mxu1 %vm965_vm6, %v8569_v54 }
 0x1c1   : > { %6630 = vmatprep.mubr.msk.bf16.mxu1 %vm965_vm6, %v10422_v3  ;;  %v10444_v3 = vld [vmem:[#allocation20_spill] sm:$0xff] }
 0x1c8   : > { %6631 = vmatmul.mubr.msk.bf16.vlgmr.msra.gmra.mrb[16].mxu1 %vm965_vm6, %v8423_v38 }
 0x1c9   : > { %6663 = vmatpush3.bf16.msra.mxu1 %v1986_v32  ;;  %6634 = vmatprep.mubr.msk.bf16.mxu1 %vm965_vm6, %v8344_v10 }
 0x1ca   : > { %6696 = vmatprep.subr.bf16.mxu1 %v2195_v63 }
 0x1d0   : > { %6635 = vmatmul.mubr.msk.bf16.gmra.mrb[20].mxu1 %vm965_vm6, %v8348_v51 }
 0x1d1   : > { %6638 = vmatprep.mubr.msk.bf16.mxu1 %vm965_vm6, %v8352_v40 }
 0x1d8   : > { %6639 = vmatmul.mubr.msk.bf16.gmra.mrb[24].mxu1 %vm965_vm6, %v8358_v7 }
 0x1d9   : > { %6642 = vmatprep.mubr.msk.bf16.mxu1 %vm965_vm6, %v8362_v45 }
 0x1e0   : > { %6643 = vmatmul.mubr.msk.bf16.gmra.mrb[28].mxu1 %vm965_vm6, %v10424_v5 }
 0x1e1   : > { %6646 = vmatprep.mubr.msk.bf16.mxu1 %vm965_vm6, %v10425_v49 }
 0x1e8   : > { %6647 = vmatmul.mubr.msk.bf16.gmra.mrb[32].mxu1 %vm965_vm6, %v10426_v48 }
 0x1e9   : > { %6650 = vmatprep.mubr.msk.bf16.mxu1 %vm965_vm6, %v10427_v21 }
 0x1f0   : > { %6651 = vmatmul.mubr.msk.bf16.gmra.mrb[36].mxu1 %vm965_vm6, %v10428_v35 }
 0x1f1   : > { %6654 = vmatprep.mubr.msk.bf16.mxu1 %vm965_vm6, %v10432_v55 }
 0x1f8   : > { %6655 = vmatmul.mubr.msk.bf16.gmra.mrb[40].mxu1 %vm965_vm6, %v10433_v44 }
 0x1f9   : > { %6658 = vmatprep.mubr.msk.bf16.mxu1 %vm965_vm6, %v10436_v30 }
 0x200   : > { %6659 = vmatmul.mubr.msk.bf16.gmra.mrb[44].mxu1 %vm965_vm6, %v8573_v1 }
 0x201   : > { %6664 = vmatprep.mubr.msk.bf16.mxu1 %vm965_vm6, %v10438_v36 }
 0x208   : > { %6665 = vmatmul.mubr.msk.bf16.vlgmr.msra.gmra.mrb[16].mxu1 %vm965_vm6, %v10439_v14 }
 0x209   : > { %6697 = vmatpush3.bf16.msra.mxu1 %v2195_v63  ;;  %6668 = vmatprep.mubr.msk.bf16.mxu1 %vm965_vm6, %v10440_v15 }
 0x20a   : > { %6730 = vmatprep.subr.bf16.mxu1 %v2393_v19 }
 0x210   : > { %6669 = vmatmul.mubr.msk.bf16.gmra.mrb[20].mxu1 %vm965_vm6, %v10441_v47 }
 0x211   : > { %6672 = vmatprep.mubr.msk.bf16.mxu1 %vm965_vm6, %v10442_v6 }
 0x218   : > { %6673 = vmatmul.mubr.msk.bf16.gmra.mrb[24].mxu1 %vm965_vm6, %v10443_v62 }
 0x219   : > { %6676 = vmatprep.mubr.msk.bf16.mxu1 %vm965_vm6, %v10444_v3 }
 0x220   : > { %6677 = vmatmul.mubr.msk.bf16.gmra.mrb[28].mxu1 %vm965_vm6, %v10445_v57 }
 0x221   : > { %6680 = vmatprep.mubr.msk.bf16.mxu1 %vm965_vm6, %v10446_v16 }
 0x228   : > { %6681 = vmatmul.mubr.msk.bf16.gmra.mrb[32].mxu1 %vm965_vm6, %v10447_v50 }
 0x229   : > { %6684 = vmatprep.mubr.msk.bf16.mxu1 %vm965_vm6, %v10448_v58 }
 0x230   : > { %6685 = vmatmul.mubr.msk.bf16.gmra.mrb[36].mxu1 %vm965_vm6, %v10449_v53 }
 0x231   : > { %6688 = vmatprep.mubr.msk.bf16.mxu1 %vm965_vm6, %v10450_v34 }
 0x238   : > { %6689 = vmatmul.mubr.msk.bf16.gmra.mrb[40].mxu1 %vm965_vm6, %v10451_v29 }
 0x239   : > { %6692 = vmatprep.mubr.msk.bf16.mxu1 %vm965_vm6, %v8366_v59 }
 0x240   : > { %6693 = vmatmul.mubr.msk.bf16.gmra.mrb[44].mxu1 %vm965_vm6, %v8581_v31 }
 0x241   : > { %6698 = vmatprep.mubr.msk.bf16.mxu1 %vm965_vm6, %v10437_v37 }
 0x248   : > { %6699 = vmatmul.mubr.msk.bf16.vlgmr.msra.gmra.mrb[16].mxu1 %vm965_vm6, %v8632_v52 }
 0x249   : > { %6731 = vmatpush3.bf16.msra.mxu1 %v2393_v19  ;;  %6702 = vmatprep.mubr.msk.bf16.mxu1 %vm965_vm6, %v8425_v39 }
 0x24a   : > { %6764 = vmatprep.subr.bf16.mxu1 %v2591_v28 }
 0x250   : > { %6703 = vmatmul.mubr.msk.bf16.gmra.mrb[20].mxu1 %vm965_vm6, %v8437_v42 }
 0x251   : > { %6706 = vmatprep.mubr.msk.bf16.mxu1 %vm965_vm6, %v8454_v2 }
 0x258   : > { %6707 = vmatmul.mubr.msk.bf16.gmra.mrb[24].mxu1 %vm965_vm6, %v8473_v41 }
 0x259   : > { %6710 = vmatprep.mubr.msk.bf16.mxu1 %vm965_vm6, %v8475_v25 }
 0x260   : > { %6711 = vmatmul.mubr.msk.bf16.gmra.mrb[28].mxu1 %vm965_vm6, %v8489_v13 }
 0x261   : > { %6714 = vmatprep.mubr.msk.bf16.mxu1 %vm965_vm6, %v8506_v27 }
 0x268   : > { %6715 = vmatmul.mubr.msk.bf16.gmra.mrb[32].mxu1 %vm965_vm6, %v8526_v61 }
 0x269   : > { %6718 = vmatprep.mubr.msk.bf16.mxu1 %vm965_vm6, %v8528_v60 }
 0x270   : > { %6719 = vmatmul.mubr.msk.bf16.gmra.mrb[36].mxu1 %vm965_vm6, %v8540_v20 }
 0x271   : > { %6722 = vmatprep.mubr.msk.bf16.mxu1 %vm965_vm6, %v8557_v0 }
 0x278   : > { %6723 = vmatmul.mubr.msk.bf16.gmra.mrb[40].mxu1 %vm965_vm6, %v8567_v46 }
 0x279   : > { %6726 = vmatprep.mubr.msk.bf16.mxu1 %vm965_vm6, %v8569_v54 }
 0x280   : > { %6727 = vmatmul.mubr.msk.bf16.gmra.mrb[44].mxu1 %vm965_vm6, %v8583_v11 }
 0x281   : > { %6732 = vmatprep.mubr.msk.bf16.mxu1 %vm965_vm6, %v8423_v38 }
 0x288   : > { %6733 = vmatmul.mubr.msk.bf16.vlgmr.msra.gmra.mrb[16].mxu1 %vm965_vm6, %v8344_v10  ;;  %v7713_v10 = vld [vmem:[%s10233_s5 + $0x10] sm:$0xff]  }
 0x289   : > { %6765 = vmatpush3.bf16.msra.mxu1 %v2591_v28  ;;  %6736 = vmatprep.mubr.msk.bf16.mxu1 %vm965_vm6, %v8348_v51  ;;  %v7714_v51 = vld [vmem:[%s10233_s5 + $0x18] sm:$0xff]  }
 0x28a   : > { %6798 = vmatprep.subr.bf16.mxu1 %v2789_v12  ;;  %6832 = vmatprep.subr.bf16.mxu0 %v7713_v10 }
 0x28b   : > { %6833 = vmatpush3.bf16.msra.mxu0 %v7713_v10 }
 0x28c   : > { %6834 = vmatprep.subr.bf16.mxu0 %v7714_v51 }
 0x28f   : > { %6835 = vmatpush3.bf16.msra.mxu0 %v7714_v51 }
 0x290   : > { %6737 = vmatmul.mubr.msk.bf16.gmra.mrb[20].mxu1 %vm965_vm6, %v8352_v40  ;;  %v10452_v40 = vld [vmem:[#allocation6_spill] sm:$0xff] }
 0x291   : > { %6740 = vmatprep.mubr.msk.bf16.mxu1 %vm965_vm6, %v8358_v7  ;;  %v8881_v7 = vld [vmem:[%s10233_s5] sm:$0xff]   ;;  %6836 = vmatprep.mubr.msk.bf16.mxu0 %vm3401_vm8, %v10452_v40 }
 0x292   : > { %6868 = vmatprep.subr.bf16.mxu0 %v8881_v7 }
 0x298   : > { %6741 = vmatmul.mubr.msk.bf16.gmra.mrb[24].mxu1 %vm965_vm6, %v8362_v45  ;;  %v8889_v45 = vld [vmem:[%s10232_s4] ss:$0 sm:$0xff] }
 0x299   : > { %6744 = vmatprep.mubr.msk.bf16.mxu1 %vm965_vm6, %v10424_v5 }
 0x2a0   : > { %6745 = vmatmul.mubr.msk.bf16.gmra.mrb[28].mxu1 %vm965_vm6, %v10425_v49 }
 0x2a1   : > { %6748 = vmatprep.mubr.msk.bf16.mxu1 %vm965_vm6, %v10426_v48 }
 0x2a8   : > { %6749 = vmatmul.mubr.msk.bf16.gmra.mrb[32].mxu1 %vm965_vm6, %v10427_v21 }
 0x2a9   : > { %6752 = vmatprep.mubr.msk.bf16.mxu1 %vm965_vm6, %v10428_v35 }
 0x2b0   : > { %6753 = vmatmul.mubr.msk.bf16.gmra.mrb[36].mxu1 %vm965_vm6, %v10432_v55 }
 0x2b1   : > { %6756 = vmatprep.mubr.msk.bf16.mxu1 %vm965_vm6, %v10433_v44 }
 0x2b8   : > { %6757 = vmatmul.mubr.msk.bf16.gmra.mrb[40].mxu1 %vm965_vm6, %v10436_v30 }
 0x2b9   : > { %6760 = vmatprep.mubr.msk.bf16.mxu1 %vm965_vm6, %v8573_v1 }
 0x2c0   : > { %6761 = vmatmul.mubr.msk.bf16.gmra.mrb[44].mxu1 %vm965_vm6, %v10394_v17 }
 0x2c1   : > { %6766 = vmatprep.mubr.msk.bf16.mxu1 %vm965_vm6, %v10439_v14 }
 0x2c8   : > { %6767 = vmatmul.mubr.msk.bf16.vlgmr.msra.gmra.mrb[16].mxu1 %vm965_vm6, %v10440_v15 }
 0x2c9   : > { %6799 = vmatpush3.bf16.msra.mxu1 %v2789_v12  ;;  %6770 = vmatprep.mubr.msk.bf16.mxu1 %vm965_vm6, %v10441_v47 }
 0x2d0   : > { %6771 = vmatmul.mubr.msk.bf16.gmra.mrb[20].mxu1 %vm965_vm6, %v10442_v6 }
 0x2d1   : > { %6774 = vmatprep.mubr.msk.bf16.mxu1 %vm965_vm6, %v10443_v62 }
 0x2d8   : > { %6775 = vmatmul.mubr.msk.bf16.gmra.mrb[24].mxu1 %vm965_vm6, %v10444_v3 }
 0x2d9   : > { %6778 = vmatprep.mubr.msk.bf16.mxu1 %vm965_vm6, %v10445_v57 }
 0x2e0   : > { %6779 = vmatmul.mubr.msk.bf16.gmra.mrb[28].mxu1 %vm965_vm6, %v10446_v16 }
 0x2e1   : > { %6782 = vmatprep.mubr.msk.bf16.mxu1 %vm965_vm6, %v10447_v50 }
 0x2e8   : > { %6783 = vmatmul.mubr.msk.bf16.gmra.mrb[32].mxu1 %vm965_vm6, %v10448_v58 }
 0x2e9   : > { %6786 = vmatprep.mubr.msk.bf16.mxu1 %vm965_vm6, %v10449_v53 }
 0x2f0   : > { %6787 = vmatmul.mubr.msk.bf16.gmra.mrb[36].mxu1 %vm965_vm6, %v10450_v34 }
 0x2f1   : > { %6790 = vmatprep.mubr.msk.bf16.mxu1 %vm965_vm6, %v10451_v29  ;;  %v7716_v29 = vld [vmem:[%s10233_s5 + $0x8] sm:$0xff]  }
 0x2f8   : > { %6791 = vmatmul.mubr.msk.bf16.gmra.mrb[40].mxu1 %vm965_vm6, %v8366_v59 }
 0x2f9   : > { %6794 = vmatprep.mubr.msk.bf16.mxu1 %vm965_vm6, %v8581_v31 }
 0x300   : > { %6795 = vmatmul.mubr.msk.bf16.gmra.mrb[44].mxu1 %vm965_vm6, %v10452_v40 }
 0x301   : > { %6800 = vmatprep.mubr.msk.bf16.mxu1 %vm965_vm6, %v8632_v52 }
 0x308   : > { %6801 = vmatmul.mubr.msk.bf16.vlgmr.msra.gmra.mrb[16].mxu1 %vm965_vm6, %v8425_v39 }
 0x309   : > { %6804 = vmatprep.mubr.msk.bf16.mxu1 %vm965_vm6, %v8437_v42 }
 0x310   : > { %6805 = vmatmul.mubr.msk.bf16.gmra.mrb[20].mxu1 %vm965_vm6, %v8454_v2 }
 0x311   : > { %6808 = vmatprep.mubr.msk.bf16.mxu1 %vm965_vm6, %v8473_v41 }
 0x318   : > { %6809 = vmatmul.mubr.msk.bf16.gmra.mrb[24].mxu1 %vm965_vm6, %v8475_v25 }
 0x319   : > { %6812 = vmatprep.mubr.msk.bf16.mxu1 %vm965_vm6, %v8489_v13 }
 0x320   : > { %6813 = vmatmul.mubr.msk.bf16.gmra.mrb[28].mxu1 %vm965_vm6, %v8506_v27 }
 0x321   : > { %6816 = vmatprep.mubr.msk.bf16.mxu1 %vm965_vm6, %v8526_v61 }
 0x328   : > { %6817 = vmatmul.mubr.msk.bf16.gmra.mrb[32].mxu1 %vm965_vm6, %v8528_v60 }
 0x329   : > { %6820 = vmatprep.mubr.msk.bf16.mxu1 %vm965_vm6, %v8540_v20 }
 0x330   : > { %6821 = vmatmul.mubr.msk.bf16.gmra.mrb[36].mxu1 %vm965_vm6, %v8557_v0 }
 0x331   : > { %6824 = vmatprep.mubr.msk.bf16.mxu1 %vm965_vm6, %v8567_v46 }
 0x338   : > { %6825 = vmatmul.mubr.msk.bf16.gmra.mrb[40].mxu1 %vm965_vm6, %v8569_v54 }
 0x339   : > { %6828 = vmatprep.mubr.msk.bf16.mxu1 %vm965_vm6, %v8583_v11 }
 0x340   : > { %6829 = vmatmul.mubr.msk.bf16.gmra.mrb[44].mxu1 %vm965_vm6, %v8617_v4 }
 0x3db   : > { %v6802_v59 = vpop.f32.mrb[16].mxu1 }
 0x3dc   : > { %v2993_v39 = vadd.f32 %v6802_v59, %v8889_v45  ;;  %v2825_v38 = vpop.f32.mrb[17].mxu1 }
 0x3dd   : > { %v2991_v42 = vadd.f32 %v8889_v45, %v2825_v38  ;;  %v6803_v2 = vpop.f32.mrb[18].mxu1 }
 0x3de   : > { %v3025_v41 = vmax.f32 %v2993_v39, 0.0  ;;  %v2994_v25 = vadd.f32 %v6803_v2, %v8889_v45  ;;  %v2828_v13 = vpop.f32.mrb[19].mxu1 }
 0x3df   : > { %v3023_v27 = vmax.f32 %v2991_v42, 0.0  ;;  %v2992_v61 = vadd.f32 %v8889_v45, %v2828_v13 }
 0x3e0   : > { %v3090_v60 = vrot.slane %v3025_v41, 7  ;;  %v3026_v20 = vmax.f32 %v2994_v25, 0.0 }
 0x3e1   : > { %v3087_v0 = vrot.slane %v3023_v27, 7  ;;  %v3024_v43 = vmax.f32 %v2992_v61, 0.0 }
 0x3e2   : > { %v8896_v46 = vsel %vm650_vm2, 0.0, %v3090_v60  ;;  %v3091_v54 = vrot.slane %v3026_v20, 7 }
 0x3e3   : > { %v3269_v1 = vrot.slane %v8896_v46, 1  ;;  %v3183_v11 = vsel %vm650_vm2, 0.0, %v3087_v0  ;;  %v3088_v5 = vrot.slane %v3024_v43, 7  ;;  %v6806_v49 = vpop.f32.mrb[20].mxu1 }
 0x3e4   : > { %v3264_v48 = vrot.slane %v3183_v11, 1  ;;  %v3830_v21 = vrot.slane %v3183_v11, 2  ;;  %v8902_v35 = vsel %vm650_vm2, %v3090_v60, %v3091_v54  ;;  %v8905_v55 = vsel %vm650_vm2, %v3091_v54, 0.0  ;;  %v2841_v44 = vpop.f32.mrb[21].mxu1  ;;  %v8950_v54 = vld [vmem:[%s10233_s5 + $0x20] sm:$0xff]  }
 0x3e5   : > { %v3270_v23 = vrot.slane %v8902_v35, 1  ;;  %v3272_v30 = vrot.slane %v8905_v55, 1  ;;  %v6807_v56 = vpop.f32.mrb[22].mxu1  ;;  %v3089_v33 = vsel %vm650_vm2, %v3087_v0, %v3088_v5  ;;  %v3199_v32 = vsel %vm650_vm2, %v3088_v5, 0.0  ;;  %10456 = vst [vmem:[#allocation9_spill] sm:$0xff] %v8950_v54 }
 0x3e6   : > { %v2997_v52 = vadd.f32 %v6806_v49, %v8889_v45  ;;  %v2995_v37 = vadd.f32 %v8889_v45, %v2841_v44  ;;  %v2844_v24 = vpop.f32.mrb[23].mxu1  ;;  %v8915_v63 = vpack.c.bf16 %v3089_v33, %v3183_v11  ;;  %v3265_v36 = vrot.slane %v3089_v33, 1 }
 0x3e7   : > { %v3267_v18 = vrot.slane %v3199_v32, 1  ;;  %v3831_v19 = vrot.slane %v3089_v33, 2  ;;  %v3833_v14 = vrot.slane %v3199_v32, 2  ;;  %v2998_v6 = vadd.f32 %v6807_v56, %v8889_v45 }
 0x3e8   : > { %10453 = vst [vmem:[#allocation18_spill] sm:$0xff] %v8915_v63  ;;  %v3029_v15 = vmax.f32 %v2997_v52, 0.0  ;;  %v3027_v47 = vmax.f32 %v2995_v37, 0.0  ;;  %v3266_v62 = vsel %vm834_vm5, %v3264_v48, %v3265_v36  ;;  %v2996_v16 = vadd.f32 %v8889_v45, %v2844_v24 }
 0x3e9   : > { %v3268_v3 = vsel %vm834_vm5, %v3265_v36, %v3267_v18  ;;  %v3832_v57 = vsel %vm1393_vm7, %v3830_v21, %v3831_v19  ;;  %v3834_v58 = vsel %vm1393_vm7, %v3831_v19, %v3833_v14  ;;  %v3030_v28 = vmax.f32 %v2998_v6, 0.0 }
 0x3ea   : > { %v8922_v50 = vpack.c.bf16 %v3268_v3, %v3266_v62  ;;  %v3096_v53 = vrot.slane %v3029_v15, 7  ;;  %v3093_v34 = vrot.slane %v3027_v47, 7  ;;  %v8928_v8 = vpack.c.bf16 %v3834_v58, %v3832_v57 }
 0x3eb   : > { %v3028_v22 = vmax.f32 %v2996_v16, 0.0  ;;  %v6810_v12 = vpop.f32.mrb[24].mxu1  ;;  %v3271_v10 = vsel %vm834_vm5, %v3269_v1, %v3270_v23  ;;  %v3273_v42 = vsel %vm834_vm5, %v3270_v23, %v3272_v30  ;;  %v3097_v61 = vrot.slane %v3030_v28, 7 }
 0x3ec   : > { %10454 = vst [vmem:[#allocation19_spill] sm:$0xff] %v8922_v50  ;;  %10455 = vst [vmem:[#allocation2_spill] sm:$0xff] %v8928_v8  ;;  %v8932_v51 = vsel %vm650_vm2, 0.0, %v3096_v53  ;;  %v8935_v59 = vsel %vm650_vm2, 0.0, %v3093_v34  ;;  %v3001_v39 = vadd.f32 %v6810_v12, %v8889_v45  ;;  %6837 = vmatmul.mubr.msk.bf16.vlgmr.msra.gmra.mrb[16].mxu0 %vm3401_vm8, %v8922_v50  ;;  %v2857_v38 = vpop.f32.mrb[25].mxu1  ;;  %v8952_v1 = vpack.c.bf16 %v3273_v42, %v3271_v10 }
 0x3ed   : > { %v3279_v2 = vrot.slane %v8932_v51, 1  ;;  %v3274_v25 = vrot.slane %v8935_v59, 1  ;;  %6869 = vmatpush3.bf16.msra.mxu0 %v8881_v7  ;;  %v6811_v27 = vpop.f32.mrb[26].mxu1  ;;  %v3094_v60 = vrot.slane %v3028_v22, 7  ;;  %v2999_v0 = vadd.f32 %v8889_v45, %v2857_v38 }
 0x3ee   : > { %v3033_v20 = vmax.f32 %v3001_v39, 0.0  ;;  %v2860_v43 = vpop.f32.mrb[27].mxu1  ;;  %6870 = vmatprep.subr.bf16.mxu0 %v7716_v29  ;;  %10457 = vst [vmem:[#allocation8_spill] sm:$0xff] %v8952_v1  ;;  %v3002_v11 = vadd.f32 %v6811_v27, %v8889_v45  ;;  %v8958_v7 = vpack.c.bf16 %v8902_v35, %v8896_v46  ;;  %v8961_v49 = vsel %vm650_vm2, %v3096_v53, %v3097_v61 }
 0x3ef   : > { %v3000_v5 = vadd.f32 %v8889_v45, %v2860_v43  ;;  %v8964_v48 = vsel %vm650_vm2, %v3097_v61, 0.0  ;;  %v8967_v21 = vsel %vm650_vm2, %v3093_v34, %v3094_v60  ;;  %v8970_v44 = vsel %vm650_vm2, %v3094_v60, 0.0  ;;  %6840 = vmatprep.mubr.msk.bf16.mxu0 %vm3401_vm8, %v8952_v1 }
 0x3f0   : > { %10458 = vst [vmem:[#allocation28_spill] sm:$0xff] %v8958_v7  ;;  %v3280_v23 = vrot.slane %v8961_v49, 1  ;;  %v3282_v30 = vrot.slane %v8964_v48, 1  ;;  %v3275_v32 = vrot.slane %v8967_v21, 1  ;;  %v3277_v52 = vrot.slane %v8970_v44, 1 }
 0x3f1   : > { %6871 = vmatpush3.bf16.msra.mxu0 %v7716_v29  ;;  %v3102_v36 = vrot.slane %v3033_v20, 7  ;;  %v3031_v18 = vmax.f32 %v2999_v0, 0.0  ;;  %v3034_v19 = vmax.f32 %v3002_v11, 0.0  ;;  %v3032_v14 = vmax.f32 %v3000_v5, 0.0 }
 0x3f2   : > { %6904 = vmatprep.subr.bf16.mxu0 %v8950_v54  ;;  %v3276_v6 = vsel %vm834_vm5, %v3274_v25, %v3275_v32  ;;  %v3278_v62 = vsel %vm834_vm5, %v3275_v32, %v3277_v52  ;;  %v3281_v57 = vsel %vm834_vm5, %v3279_v2, %v3280_v23 }
 0x3f3   : > { %v6814_v15 = vpop.f32.mrb[28].mxu1  ;;  %v8988_v16 = vsel %vm650_vm2, 0.0, %v3102_v36  ;;  %v3099_v58 = vrot.slane %v3031_v18, 7  ;;  %v3103_v53 = vrot.slane %v3034_v19, 7  ;;  %v3100_v34 = vrot.slane %v3032_v14, 7 }
 0x3f4   : > { %v3005_v47 = vadd.f32 %v6814_v15, %v8889_v45  ;;  %v2873_v3 = vpop.f32.mrb[29].mxu1  ;;  %v3289_v28 = vrot.slane %v8988_v16, 1  ;;  %v8992_v10 = vpack.c.bf16 %v3278_v62, %v3276_v6  ;;  %v3283_v14 = vsel %vm834_vm5, %v3280_v23, %v3282_v30 }
 0x3f5   : > { %v6815_v29 = vpop.f32.mrb[30].mxu1  ;;  %v8995_v38 = vsel %vm650_vm2, 0.0, %v3099_v58  ;;  %v8998_v42 = vsel %vm650_vm2, %v3102_v36, %v3103_v53  ;;  %v9001_v2 = vsel %vm650_vm2, %v3103_v53, 0.0  ;;  %v9004_v25 = vsel %vm650_vm2, %v3099_v58, %v3100_v34 }
 0x3f6   : > { %v3037_v12 = vmax.f32 %v3005_v47, 0.0  ;;  %10459 = vst [vmem:[#allocation29_spill] sm:$0xff] %v8992_v10  ;;  %v2876_v39 = vpop.f32.mrb[31].mxu1  ;;  %v3284_v27 = vrot.slane %v8995_v38, 1  ;;  %v3290_v60 = vrot.slane %v8998_v42, 1  ;;  %v3292_v20 = vrot.slane %v9001_v2, 1  ;;  %6841 = vmatmul.mubr.msk.bf16.gmra.mrb[20].mxu0 %vm3401_vm8, %v8992_v10 }
 0x3f7   : > { %v9015_v11 = vsel %vm650_vm2, %v3100_v34, 0.0  ;;  %v3285_v5 = vrot.slane %v9004_v25, 1  ;;  %v3003_v19 = vadd.f32 %v8889_v45, %v2873_v3  ;;  %v3006_v15 = vadd.f32 %v6815_v29, %v8889_v45 }
 0x3f8   : > { %v3287_v32 = vrot.slane %v9015_v11, 1  ;;  %v3108_v18 = vrot.slane %v3037_v12, 7  ;;  %v3004_v47 = vadd.f32 %v8889_v45, %v2876_v39  ;;  %v9028_v58 = vpack.c.bf16 %v3283_v14, %v3281_v57 }
 0x3f9   : > { %v3286_v34 = vsel %vm834_vm5, %v3284_v27, %v3285_v5  ;;  %v3035_v23 = vmax.f32 %v3003_v19, 0.0  ;;  %v3038_v30 = vmax.f32 %v3006_v15, 0.0  ;;  %v3291_v61 = vsel %vm834_vm5, %v3289_v28, %v3290_v60 }
 0x3fa   : > { %v9026_v62 = vsel %vm650_vm2, 0.0, %v3108_v18  ;;  %10460 = vst [vmem:[#allocation30_spill] sm:$0xff] %v9028_v58  ;;  %6844 = vmatprep.mubr.msk.bf16.mxu0 %vm3401_vm8, %v9028_v58  ;;  %v3036_v39 = vmax.f32 %v3004_v47, 0.0  ;;  %v3288_v57 = vsel %vm834_vm5, %v3285_v5, %v3287_v32  ;;  %v3293_v52 = vsel %vm834_vm5, %v3290_v60, %v3292_v20 }
 0x3fb   : > { %v6818_v6 = vpop.f32.mrb[32].mxu1  ;;  %v3299_v12 = vrot.slane %v9026_v62, 1  ;;  %v3105_v0 = vrot.slane %v3035_v23, 7  ;;  %v3109_v27 = vrot.slane %v3038_v30, 7  ;;  %v9038_v36 = vpack.c.bf16 %v3288_v57, %v3286_v34 }
 0x3fc   : > { %v3009_v53 = vadd.f32 %v6818_v6, %v8889_v45  ;;  %v2889_v43 = vpop.f32.mrb[33].mxu1  ;;  %v3106_v3 = vrot.slane %v3036_v39, 7  ;;  %v9053_v5 = vpack.c.bf16 %v3293_v52, %v3291_v61 }
 0x3fd   : > { %v6819_v29 = vpop.f32.mrb[34].mxu1  ;;  %v3007_v14 = vadd.f32 %v8889_v45, %v2889_v43  ;;  %10461 = vst [vmem:[#allocation31_spill] sm:$0xff] %v9038_v36  ;;  %v9043_v33 = vsel %vm650_vm2, 0.0, %v3105_v0  ;;  %v9046_v47 = vsel %vm650_vm2, %v3108_v18, %v3109_v27  ;;  %v9049_v43 = vsel %vm650_vm2, %v3109_v27, 0.0 }
 0x3fe   : > { %v3041_v22 = vmax.f32 %v3009_v53, 0.0  ;;  %v2892_v6 = vpop.f32.mrb[35].mxu1  ;;  %6845 = vmatmul.mubr.msk.bf16.gmra.mrb[24].mxu0 %vm3401_vm8, %v9038_v36  ;;  %10462 = vst [vmem:[#allocation32_spill] sm:$0xff] %v9053_v5  ;;  %v3294_v28 = vrot.slane %v9043_v33, 1  ;;  %v3300_v60 = vrot.slane %v9046_v47, 1  ;;  %v3302_v20 = vrot.slane %v9049_v43, 1 }
 0x3ff   : > { %v3039_v15 = vmax.f32 %v3007_v14, 0.0  ;;  %v9062_v53 = vsel %vm650_vm2, %v3105_v0, %v3106_v3  ;;  %v9065_v34 = vsel %vm650_vm2, %v3106_v3, 0.0  ;;  %6848 = vmatprep.mubr.msk.bf16.mxu0 %vm3401_vm8, %v9053_v5  ;;  %v3010_v3 = vadd.f32 %v6819_v29, %v8889_v45 }
 0x400   : > { %v3114_v19 = vrot.slane %v3041_v22, 7  ;;  %v3295_v52 = vrot.slane %v9062_v53, 1  ;;  %v3297_v23 = vrot.slane %v9065_v34, 1  ;;  %v3008_v27 = vadd.f32 %v8889_v45, %v2892_v6 }
 0x401   : > { %v3111_v0 = vrot.slane %v3039_v15, 7  ;;  %v3042_v24 = vmax.f32 %v3010_v3, 0.0  ;;  %v3303_v3 = vsel %vm834_vm5, %v3300_v60, %v3302_v20 }
 0x402   : > { %v9074_v14 = vsel %vm650_vm2, 0.0, %v3114_v19  ;;  %v3296_v30 = vsel %vm834_vm5, %v3294_v28, %v3295_v52  ;;  %v3040_v13 = vmax.f32 %v3008_v27, 0.0  ;;  %v3298_v15 = vsel %vm834_vm5, %v3295_v52, %v3297_v23 }
 0x403   : > { %v6822_v61 = vpop.f32.mrb[36].mxu1  ;;  %v3309_v32 = vrot.slane %v9074_v14, 1  ;;  %v9083_v39 = vsel %vm650_vm2, 0.0, %v3111_v0  ;;  %v9088_v26 = vpack.c.bf16 %v3298_v15, %v3296_v30  ;;  %v3115_v22 = vrot.slane %v3042_v24, 7 }
 0x404   : > { %v2905_v57 = vpop.f32.mrb[37].mxu1  ;;  %v3013_v41 = vadd.f32 %v6822_v61, %v8889_v45  ;;  %v3304_v29 = vrot.slane %v9083_v39, 1  ;;  %v3112_v31 = vrot.slane %v3040_v13, 7  ;;  %v3301_v28 = vsel %vm834_vm5, %v3299_v12, %v3300_v60 }
 0x405   : > { %v6823_v18 = vpop.f32.mrb[38].mxu1  ;;  %10463 = vst [vmem:[#allocation4_spill] sm:$0xff] %v9088_v26  ;;  %v3011_v61 = vadd.f32 %v8889_v45, %v2905_v57  ;;  %v9101_v24 = vsel %vm650_vm2, %v3115_v22, 0.0  ;;  %v9120_v6 = vpack.c.bf16 %v3303_v3, %v3301_v28 }
 0x406   : > { %v2908_v56 = vpop.f32.mrb[39].mxu1  ;;  %v3045_v37 = vmax.f32 %v3013_v41, 0.0  ;;  %6849 = vmatmul.mubr.msk.bf16.gmra.mrb[28].mxu0 %vm3401_vm8, %v9088_v26  ;;  %v3014_v52 = vadd.f32 %v6823_v18, %v8889_v45  ;;  %v9098_v41 = vsel %vm650_vm2, %v3114_v19, %v3115_v22  ;;  %v9104_v13 = vsel %vm650_vm2, %v3111_v0, %v3112_v31 }
 0x407   : > { %v3012_v23 = vadd.f32 %v8889_v45, %v2908_v56  ;;  %v3310_v30 = vrot.slane %v9098_v41, 1  ;;  %v3312_v60 = vrot.slane %v9101_v24, 1  ;;  %v3305_v18 = vrot.slane %v9104_v13, 1  ;;  %10464 = vst [vmem:[#allocation3_spill] sm:$0xff] %v9120_v6  ;;  %6852 = vmatprep.mubr.msk.bf16.mxu0 %vm3401_vm8, %v9120_v6 }
 0x408   : > { %v3120_v9 = vrot.slane %v3045_v37, 7  ;;  %v9107_v37 = vsel %vm650_vm2, %v3112_v31, 0.0  ;;  %v3043_v15 = vmax.f32 %v3011_v61, 0.0  ;;  %v3046_v40 = vmax.f32 %v3014_v52, 0.0 }
 0x409   : > { %v3307_v22 = vrot.slane %v9107_v37, 1  ;;  %v3044_v5 = vmax.f32 %v3012_v23, 0.0  ;;  %v3306_v57 = vsel %vm834_vm5, %v3304_v29, %v3305_v18 }
 0x40a   : > { %v9118_v27 = vsel %vm650_vm2, 0.0, %v3120_v9  ;;  %v3117_v58 = vrot.slane %v3043_v15, 7  ;;  %v3121_v0 = vrot.slane %v3046_v40, 7  ;;  %v3311_v40 = vsel %vm834_vm5, %v3309_v32, %v3310_v30 }
 0x40b   : > { %v6826_v12 = vpop.f32.mrb[40].mxu1  ;;  %v3308_v61 = vsel %vm834_vm5, %v3305_v18, %v3307_v22  ;;  %v3118_v28 = vrot.slane %v3044_v5, 7  ;;  %v3313_v22 = vsel %vm834_vm5, %v3310_v30, %v3312_v60 }
 0x40c   : > { %v2921_v19 = vpop.f32.mrb[41].mxu1  ;;  %v3017_v36 = vadd.f32 %v6826_v12, %v8889_v45  ;;  %v9129_v52 = vpack.c.bf16 %v3308_v61, %v3306_v57  ;;  %v9133_v26 = vsel %vm650_vm2, 0.0, %v3117_v58  ;;  %v9136_v23 = vsel %vm650_vm2, %v3120_v9, %v3121_v0 }
 0x40d   : > { %v6827_v31 = vpop.f32.mrb[42].mxu1  ;;  %v3015_v56 = vadd.f32 %v8889_v45, %v2921_v19  ;;  %v9139_v12 = vsel %vm650_vm2, %v3121_v0, 0.0  ;;  %v3314_v29 = vrot.slane %v9133_v26, 1  ;;  %v9151_v57 = vsel %vm650_vm2, %v3117_v58, %v3118_v28 }
 0x40e   : > { %v2924_v20 = vpop.f32.mrb[43].mxu1  ;;  %v3049_v3 = vmax.f32 %v3017_v36, 0.0  ;;  %10465 = vst [vmem:[#allocation5_spill] sm:$0xff] %v9129_v52  ;;  %v3320_v36 = vrot.slane %v9136_v23, 1  ;;  %v3322_v18 = vrot.slane %v9139_v12, 1  ;;  %6853 = vmatmul.mubr.msk.bf16.gmra.mrb[32].mxu0 %vm3401_vm8, %v9129_v52  ;;  %v9154_v32 = vsel %vm650_vm2, %v3118_v28, 0.0 }
 0x40f   : > { %v3315_v15 = vrot.slane %v9151_v57, 1  ;;  %v3317_v61 = vrot.slane %v9154_v32, 1  ;;  %v3047_v9 = vmax.f32 %v3015_v56, 0.0  ;;  %v3018_v58 = vadd.f32 %v6827_v31, %v8889_v45 }
 0x410   : > { %v3126_v10 = vrot.slane %v3049_v3, 7  ;;  %v9162_v50 = vpack.c.bf16 %v3313_v22, %v3311_v40  ;;  %v3016_v28 = vadd.f32 %v8889_v45, %v2924_v20 }
 0x411   : > { %v3316_v4 = vsel %vm834_vm5, %v3314_v29, %v3315_v15  ;;  %v3123_v52 = vrot.slane %v3047_v9, 7  ;;  %v3050_v7 = vmax.f32 %v3018_v58, 0.0  ;;  %v3318_v56 = vsel %vm834_vm5, %v3315_v15, %v3317_v61 }
 0x412   : > { %10466 = vst [vmem:[#allocation33_spill] sm:$0xff] %v9162_v50  ;;  %v9168_v5 = vsel %vm650_vm2, 0.0, %v3126_v10  ;;  %6856 = vmatprep.mubr.msk.bf16.mxu0 %vm3401_vm8, %v9162_v50  ;;  %v3048_v31 = vmax.f32 %v3016_v28, 0.0  ;;  %v9178_v29 = vpack.c.bf16 %v3318_v56, %v3316_v4  ;;  %v10469_v4 = vrot.slane %v9118_v27, 1 }
 0x413   : > { %v6830_v19 = vpop.f32.mrb[44].mxu1  ;;  %v3329_v30 = vrot.slane %v9168_v5, 1  ;;  %v9176_v3 = vsel %vm650_vm2, 0.0, %v3123_v52  ;;  %v3127_v40 = vrot.slane %v3050_v7, 7 }
 0x414   : > { %v2937_v0 = vpop.f32.mrb[45].mxu1  ;;  %v3021_v8 = vadd.f32 %v6830_v19, %v8889_v45  ;;  %10467 = vst [vmem:[#allocation34_spill] sm:$0xff] %v9178_v29  ;;  %v3324_v9 = vrot.slane %v9176_v3, 1  ;;  %v3124_v15 = vrot.slane %v3048_v31, 7  ;;  %v3321_v7 = vsel %vm834_vm5, %v10469_v4, %v3320_v36 }
 0x415   : > { %v6831_v6 = vpop.f32.mrb[46].mxu1  ;;  %v3019_v19 = vadd.f32 %v8889_v45, %v2937_v0  ;;  %v9184_v58 = vsel %vm650_vm2, %v3126_v10, %v3127_v40  ;;  %v9187_v28 = vsel %vm650_vm2, %v3127_v40, 0.0 }
 0x416   : > { %v2940_v1 = vpop.f32.mrb[47].mxu1  ;;  %v3053_v20 = vmax.f32 %v3021_v8, 0.0  ;;  %10468 = vst [vmem:[#allocation7_spill] sm:$0xff] %v9187_v28  ;;  %6857 = vmatmul.mubr.msk.bf16.gmra.mrb[36].mxu0 %vm3401_vm8, %v9178_v29  ;;  %v3330_v0 = vrot.slane %v9184_v58, 1  ;;  %v3332_v56 = vrot.slane %v9187_v28, 1  ;;  %v9202_v40 = vsel %vm650_vm2, %v3124_v15, 0.0 }
 0x417   : > { %v3051_v8 = vmax.f32 %v3019_v19, 0.0  ;;  %v3327_v22 = vrot.slane %v9202_v40, 1  ;;  %v3022_v28 = vadd.f32 %v6831_v6, %v8889_v45  ;;  %v3020_v29 = vadd.f32 %v8889_v45, %v2940_v1 }
 0x418   : > { %v3132_v61 = vrot.slane %v3053_v20, 7  ;;  %v9199_v20 = vsel %vm650_vm2, %v3123_v52, %v3124_v15  ;;  %v3323_v15 = vsel %vm834_vm5, %v3320_v36, %v3322_v18  ;;  %v3331_v52 = vsel %vm834_vm5, %v3329_v30, %v3330_v0 }
 0x419   : > { %v3129_v60 = vrot.slane %v3051_v8, 7  ;;  %v3325_v4 = vrot.slane %v9199_v20, 1  ;;  %v9219_v63 = vpack.c.bf16 %v3323_v15, %v3321_v7  ;;  %v3054_v36 = vmax.f32 %v3022_v28, 0.0 }
 0x41a   : > { %v9205_v19 = vsel %vm650_vm2, 0.0, %v3132_v61  ;;  %v3333_v8 = vsel %vm834_vm5, %v3330_v0, %v3332_v56  ;;  %v9233_v7 = vpack.c.bf16 %v8967_v21, %v8935_v59  ;;  %v3052_v6 = vmax.f32 %v3020_v29, 0.0 }
 0x41b   : > { %v9214_v50 = vsel %vm650_vm2, 0.0, %v3129_v60  ;;  %10470 = vst [vmem:[#allocation35_spill] sm:$0xff] %v9219_v63  ;;  %v3326_v31 = vsel %vm834_vm5, %v3324_v9, %v3325_v4  ;;  %v3328_v10 = vsel %vm834_vm5, %v3325_v4, %v3327_v22  ;;  %6860 = vmatprep.mubr.msk.bf16.mxu0 %vm3401_vm8, %v9219_v63  ;;  %v9235_v45 = vpack.c.bf16 %v3333_v8, %v3331_v52 }
 0x41c   : > { %v3334_v54 = vrot.slane %v9214_v50, 1  ;;  %v9228_v18 = vpack.c.bf16 %v3328_v10, %v3326_v31  ;;  %v9239_v1 = vpack.c.bf16 %v8961_v49, %v8932_v51  ;;  %v9243_v30 = vpack.c.bf16 %v9004_v25, %v8995_v38 }
 0x41d   : > { %10472 = vst [vmem:[#allocation10_spill] sm:$0xff] %v9235_v45  ;;  %v3133_v9 = vrot.slane %v3054_v36, 7  ;;  %v9249_v22 = vpack.c.bf16 %v8998_v42, %v8988_v16  ;;  %v9253_v29 = vpack.c.bf16 %v9062_v53, %v9043_v33  ;;  %v9257_v28 = vpack.c.bf16 %v9046_v47, %v9026_v62 }
 0x41e   : > { %10471 = vst [vmem:[#allocation11_spill] sm:$0xff] %v9228_v18  ;;  %6861 = vmatmul.mubr.msk.bf16.gmra.mrb[40].mxu0 %vm3401_vm8, %v9228_v18  ;;  %v3130_v0 = vrot.slane %v3052_v6, 7  ;;  %v9263_v56 = vpack.c.bf16 %v9104_v13, %v9083_v39  ;;  %v9267_v31 = vpack.c.bf16 %v9098_v41, %v9074_v14  ;;  %v9271_v10 = vpack.c.bf16 %v9151_v57, %v9133_v26 }
 0x41f   : > { %10473 = vst [vmem:[#allocation12_spill] sm:$0xff] %v9253_v29  ;;  %10474 = vst [vmem:[#allocation14_spill] sm:$0xff] %v9257_v28  ;;  %6864 = vmatprep.mubr.msk.bf16.mxu0 %vm3401_vm8, %v9235_v45  ;;  %v9274_v4 = vsel %vm650_vm2, %v3132_v61, %v3133_v9  ;;  %v9277_v52 = vsel %vm650_vm2, %v3133_v9, 0.0  ;;  %v9281_v15 = vpack.c.bf16 %v9136_v23, %v9118_v27  ;;  %v10487_v29 = vrot.slane %v8935_v59, 2 }
 0x420   : > { %10475 = vst [vmem:[#allocation15_spill] sm:$0xff] %v9263_v56  ;;  %10476 = vst [vmem:[#allocation16_spill] sm:$0xff] %v9267_v31  ;;  %v9285_v8 = vpack.c.bf16 %v9199_v20, %v9176_v3  ;;  %v4426_v6 = vrot.slane %v9277_v52, 1  ;;  %v3131_v18 = vsel %vm650_vm2, %v3129_v60, %v3130_v0  ;;  %v3213_v9 = vsel %vm650_vm2, %v3130_v0, 0.0 }
 0x421   : > { %10477 = vst [vmem:[#allocation17_spill] sm:$0xff] %v9271_v10  ;;  %10478 = vst [vmem:[#allocation20_spill] sm:$0xff] %v9281_v15  ;;  %v9295_v63 = vpack.c.bf16 %v9184_v58, %v9168_v5  ;;  %v10481_v15 = vrot.slane %v8902_v35, 2  ;;  %v3335_v10 = vrot.slane %v3131_v18, 1  ;;  %v3337_v31 = vrot.slane %v3213_v9, 1 }
 0x422   : > { %10479 = vst [vmem:[#allocation21_spill] sm:$0xff] %v9285_v8  ;;  %v10482_v8 = vrot.slane %v8896_v46, 2  ;;  %v3901_v56 = vrot.slane %v3131_v18, 2  ;;  %v3903_v45 = vrot.slane %v3213_v9, 2  ;;  %v9303_v61 = vpack.c.bf16 %v3131_v18, %v9214_v50 }
 0x423   : > { %10480 = vst [vmem:[#allocation22_spill] sm:$0xff] %v9295_v63  ;;  %v10484_v60 = vrot.slane %v8905_v55, 2  ;;  %v10485_v0 = vmov %v10481_v15  ;;  %v10486_v63 = vrot.slane %v8967_v21, 2  ;;  %v3336_v18 = vsel %vm834_vm5, %v3334_v54, %v3335_v10 }
 0x424   : > { %v3837_v36 = vsel %vm1393_vm7, %v10482_v8, %v10481_v15  ;;  %10483 = vst [vmem:[#allocation23_spill] sm:$0xff] %v9303_v61  ;;  %v10488_v15 = vrot.slane %v8970_v44, 2  ;;  %v3338_v55 = vsel %vm834_vm5, %v3335_v10, %v3337_v31  ;;  %v10490_v59 = vrot.slane %v8961_v49, 2 }
 0x425   : > { %v3839_v28 = vsel %vm1393_vm7, %v10485_v0, %v10484_v60  ;;  %v3842_v46 = vsel %vm1393_vm7, %v10487_v29, %v10486_v63  ;;  %v10489_v8 = vmov %v10486_v63  ;;  %v9326_v60 = vpack.c.bf16 %v3338_v55, %v3336_v18 }
 0x426   : > { %v3844_v9 = vsel %vm1393_vm7, %v10489_v8, %v10488_v15  ;;  %v9322_v61 = vpack.c.bf16 %v3839_v28, %v3837_v36  ;;  %v10491_v63 = vrot.slane %v8932_v51, 2  ;;  %v10492_v21 = vrot.slane %v8964_v48, 2 }
 0x427   : > { %v9324_v35 = vpack.c.bf16 %v3844_v9, %v3842_v46  ;;  %v10493_v29 = vmov %v10490_v59  ;;  %v10494_v31 = vrot.slane %v9004_v25, 2  ;;  %v10495_v28 = vrot.slane %v8995_v38, 2  ;;  %6865 = vmatmul.mubr.msk.bf16.gmra.mrb[44].mxu0 %vm3401_vm8, %v9326_v60 }
 0x428   : > { %v3847_v44 = vsel %vm1393_vm7, %v10491_v63, %v10490_v59  ;;  %v3849_v54 = vsel %vm1393_vm7, %v10493_v29, %v10492_v21  ;;  %v10496_v0 = vrot.slane %v9015_v11, 2  ;;  %v10498_v48 = vrot.slane %v8998_v42, 2  ;;  %6872 = vmatprep.mubr.msk.bf16.mxu0 %vm3401_vm8, %v10394_v17 }
 0x429   : > { %v3852_v10 = vsel %vm1393_vm7, %v10495_v28, %v10494_v31  ;;  %v9343_v36 = vpack.c.bf16 %v3849_v54, %v3847_v44  ;;  %v10497_v51 = vmov %v10494_v31  ;;  %v10499_v49 = vrot.slane %v8988_v16, 2 }
 0x42a   : > { %v3854_v46 = vsel %vm1393_vm7, %v10497_v51, %v10496_v0  ;;  %v10500_v8 = vrot.slane %v9001_v2, 2  ;;  %v10501_v38 = vmov %v10498_v48  ;;  %v10502_v18 = vrot.slane %v9062_v53, 2 }
 0x42b   : > { %v3857_v15 = vsel %vm1393_vm7, %v10499_v49, %v10498_v48  ;;  %v9362_v11 = vpack.c.bf16 %v3854_v46, %v3852_v10  ;;  %v10503_v55 = vrot.slane %v9043_v33, 2  ;;  %v10504_v59 = vrot.slane %v9065_v34, 2 }
 0x42c   : > { %v3859_v9 = vsel %vm1393_vm7, %v10501_v38, %v10500_v8  ;;  %v10505_v2 = vmov %v10502_v18  ;;  %v10506_v44 = vrot.slane %v9046_v47, 2  ;;  %v10507_v21 = vrot.slane %v9026_v62, 2 }
 0x42d   : > { %v9364_v25 = vpack.c.bf16 %v3859_v9, %v3857_v15  ;;  %v3862_v16 = vsel %vm1393_vm7, %v10503_v55, %v10502_v18  ;;  %v3864_v42 = vsel %vm1393_vm7, %v10505_v2, %v10504_v59  ;;  %v10508_v33 = vrot.slane %v9049_v43, 2 }
 0x42e   : > { %v9378_v63 = vpack.c.bf16 %v3864_v42, %v3862_v16  ;;  %v3867_v29 = vsel %vm1393_vm7, %v10507_v21, %v10506_v44  ;;  %v10509_v54 = vmov %v10506_v44  ;;  %v10510_v53 = vrot.slane %v9104_v13, 2 }
 0x42f   : > { %v3869_v34 = vsel %vm1393_vm7, %v10509_v54, %v10508_v33  ;;  %v10511_v31 = vrot.slane %v9083_v39, 2  ;;  %v10512_v0 = vrot.slane %v9107_v37, 2  ;;  %v10514_v43 = vrot.slane %v9098_v41, 2  ;;  %v10532_v54 = vld [vmem:[#allocation7_spill] sm:$0xff] }
 0x430   : > { %v9395_v10 = vpack.c.bf16 %v3869_v34, %v3867_v29  ;;  %v10513_v62 = vmov %v10510_v53  ;;  %v10515_v47 = vrot.slane %v9074_v14, 2  ;;  %v10516_v48 = vrot.slane %v9101_v24, 2 }
 0x431   : > { %v3872_v28 = vsel %vm1393_vm7, %v10511_v31, %v10510_v53  ;;  %v3874_v51 = vsel %vm1393_vm7, %v10513_v62, %v10512_v0  ;;  %v10517_v39 = vmov %v10514_v43  ;;  %v10518_v13 = vrot.slane %v9151_v57, 2 }
 0x432   : > { %v3877_v46 = vsel %vm1393_vm7, %v10515_v47, %v10514_v43  ;;  %v3879_v49 = vsel %vm1393_vm7, %v10517_v39, %v10516_v48  ;;  %v9412_v15 = vpack.c.bf16 %v3874_v51, %v3872_v28  ;;  %v10519_v37 = vrot.slane %v9133_v26, 2  ;;  %v10539_v48 = vld [vmem:[#allocation18_spill] sm:$0xff] }
 0x433   : > { %v9414_v8 = vpack.c.bf16 %v3879_v49, %v3877_v46  ;;  %v10520_v14 = vrot.slane %v9154_v32, 2  ;;  %v10521_v9 = vmov %v10518_v13  ;;  %v10522_v41 = vrot.slane %v9136_v23, 2  ;;  %6873 = vmatmul.mubr.msk.bf16.vlgmr.msra.gmra.mrb[16].mxu0 %vm3401_vm8, %v10539_v48 }
 0x434   : > { %v3882_v38 = vsel %vm1393_vm7, %v10519_v37, %v10518_v13  ;;  %v10523_v55 = vrot.slane %v9118_v27, 2  ;;  %v10524_v59 = vrot.slane %v9139_v12, 2  ;;  %v10526_v32 = vrot.slane %v9199_v20, 2 }
 0x435   : > { %v3884_v24 = vsel %vm1393_vm7, %v10521_v9, %v10520_v14  ;;  %v10525_v26 = vmov %v10522_v41  ;;  %v10527_v57 = vrot.slane %v9176_v3, 2  ;;  %v10528_v21 = vrot.slane %v9202_v40, 2  ;;  %v7718_v40 = vld [vmem:[%s10233_s5 + $0x28] sm:$0xff]   ;;  %v10544_v14 = vld [vmem:[#allocation9_spill] sm:$0xff] }
 0x436   : > { %v9426_v18 = vpack.c.bf16 %v3884_v24, %v3882_v38  ;;  %v3887_v16 = vsel %vm1393_vm7, %v10523_v55, %v10522_v41  ;;  %v3889_v2 = vsel %vm1393_vm7, %v10525_v26, %v10524_v59  ;;  %v10529_v27 = vmov %v10526_v32  ;;  %6905 = vmatpush3.bf16.msra.mxu0 %v10544_v14  ;;  %v10548_v24 = vld [vmem:[#allocation15_spill] sm:$0xff]  ;;  %v10549_v41 = vld [vmem:[#allocation16_spill] sm:$0xff]  ;;  %v10550_v55 = vld [vmem:[#allocation17_spill] sm:$0xff] }
 0x437   : > { %v3892_v42 = vsel %vm1393_vm7, %v10527_v57, %v10526_v32  ;;  %v9443_v44 = vpack.c.bf16 %v3889_v2, %v3887_v16  ;;  %v3894_v29 = vsel %vm1393_vm7, %v10529_v27, %v10528_v21  ;;  %v10530_v12 = vrot.slane %v9184_v58, 2  ;;  %6906 = vmatprep.subr.bf16.mxu0 %v7718_v40  ;;  %v10551_v16 = vld [vmem:[#allocation20_spill] sm:$0xff]  ;;  %v10552_v59 = vld [vmem:[#allocation21_spill] sm:$0xff]  ;;  %v10553_v26 = vld [vmem:[#allocation22_spill] sm:$0xff] }
 0x438   : > { %v10531_v23 = vrot.slane %v9168_v5, 2  ;;  %v10533_v34 = vrot.slane %v10532_v54, 2  ;;  %v9463_v31 = vpack.c.bf16 %v3894_v29, %v3892_v42  ;;  %v10535_v28 = vrot.slane %v9214_v50, 2  ;;  %v10554_v2 = vld [vmem:[#allocation23_spill] sm:$0xff]  ;;  %v10555_v32 = vld [vmem:[#allocation13_spill] sm:$0xff]  ;;  %v10556_v42 = vld [vmem:[#allocation2_spill] sm:$0xff] }
 0x439   : > { %v10534_v3 = vmov %v10530_v12  ;;  %v3904_v0 = vsel %vm1393_vm7, %v3901_v56, %v3903_v45  ;;  %v9475_v58 = vpack.c.bf16 %v9274_v4, %v9205_v19  ;;  %v10536_v51 = vrot.slane %v9274_v4, 1  ;;  %v7720_v57 = vld [vmem:[%s10233_s5 + $0x38] sm:$0xff]   ;;  %v7721_v21 = vld [vmem:[%s10233_s5 + $0x40] sm:$0xff]   ;;  %v7722_v27 = vld [vmem:[%s10233_s5 + $0x48] sm:$0xff]  }
 0x43a   : > { %v3897_v33 = vsel %vm1393_vm7, %v10531_v23, %v10530_v12  ;;  %v3899_v53 = vsel %vm1393_vm7, %v10534_v3, %v10533_v34  ;;  %v3902_v5 = vsel %vm1393_vm7, %v10535_v28, %v3901_v56  ;;  %v10537_v43 = vrot.slane %v9205_v19, 1  ;;  %6907 = vmatpush3.bf16.msra.mxu0 %v7718_v40  ;;  %v7723_v29 = vld [vmem:[%s10233_s5 + $0x50] sm:$0xff]   ;;  %v10557_v12 = vld [vmem:[#allocation19_spill] sm:$0xff]  ;;  %v7724_v23 = vld [vmem:[%s10233_s5 + $0x58] sm:$0xff]  }
 0x43b   : > { %v9465_v20 = vpack.c.bf16 %v3899_v53, %v3897_v33  ;;  %v9471_v62 = vpack.c.bf16 %v3904_v0, %v3902_v5  ;;  %v10538_v46 = vmov %v10536_v51  ;;  %v10540_v56 = vrot.slane %v9274_v4, 2  ;;  %v10546_v4 = vld [vmem:[#allocation12_spill] sm:$0xff]  ;;  %v10559_v54 = vld [vmem:[#allocation29_spill] sm:$0xff]  ;;  %v7725_v34 = vld [vmem:[%s10233_s5 + $0x60] sm:$0xff]  }
 0x43c   : > { %v4425_v47 = vsel %vm834_vm5, %v10537_v43, %v10536_v51  ;;  %v4427_v50 = vsel %vm834_vm5, %v10538_v46, %v4426_v6  ;;  %v10541_v39 = vrot.slane %v9205_v19, 2  ;;  %v10542_v13 = vrot.slane %v9277_v52, 2  ;;  %v10545_v6 = vld [vmem:[#allocation28_spill] sm:$0xff]  ;;  %v10547_v52 = vld [vmem:[#allocation14_spill] sm:$0xff]  ;;  %v10561_v53 = vld [vmem:[#allocation31_spill] sm:$0xff] }
 0x43d   : > { %v9487_v45 = vpack.c.bf16 %v4427_v50, %v4425_v47  ;;  %v10543_v37 = vmov %v10540_v56  ;;  %6876 = vmatprep.mubr.msk.bf16.mxu0 %vm3401_vm8, %v10545_v6  ;;  %v7719_v19 = vld [vmem:[%s10233_s5 + $0x30] sm:$0xff]   ;;  %v10560_v3 = vld [vmem:[#allocation30_spill] sm:$0xff]  ;;  %v10564_v5 = vld [vmem:[#allocation3_spill] sm:$0xff] }
 0x43e   : > { %v4646_v49 = vsel %vm1393_vm7, %v10541_v39, %v10540_v56  ;;  %v4648_v38 = vsel %vm1393_vm7, %v10543_v37, %v10542_v13  ;;  %6940 = vmatprep.subr.bf16.mxu0 %v7719_v19  ;;  %6877 = vmatmul.mubr.msk.bf16.gmra.mrb[20].mxu0 %vm3401_vm8, %v9233_v7  ;;  %v10558_v33 = vld [vmem:[#allocation8_spill] sm:$0xff]  ;;  %v10565_v0 = vld [vmem:[#allocation5_spill] sm:$0xff]  ;;  %v10567_v43 = vld [vmem:[#allocation34_spill] sm:$0xff] }
 0x43f   : > { %v9502_v9 = vpack.c.bf16 %v4648_v38, %v4646_v49  ;;  %6880 = vmatprep.mubr.msk.bf16.mxu0 %vm3401_vm8, %v9239_v1  ;;  %v10562_v40 = vld [vmem:[#allocation32_spill] sm:$0xff]  ;;  %v10566_v51 = vld [vmem:[#allocation33_spill] sm:$0xff]  ;;  %v10568_v47 = vld [vmem:[#allocation35_spill] sm:$0xff] }
 0x440   : > { %v10563_v28 = vld [vmem:[#allocation4_spill] sm:$0xff]  ;;  %v10569_v46 = vld [vmem:[#allocation11_spill] sm:$0xff]  ;;  %v10570_v50 = vld [vmem:[#allocation10_spill] sm:$0xff] }
 0x441   : > { %v7727_v56 = vld [vmem:[%s10233_s5 + $0x70] sm:$0xff]   ;;  %v7728_v39 = vld [vmem:[%s10233_s5 + $0x78] sm:$0xff]   ;;  %v7729_v49 = vld [vmem:[%s10233_s5 + $0x80] sm:$0xff]  }
 0x446   : > { %6881 = vmatmul.mubr.msk.bf16.gmra.mrb[24].mxu0 %vm3401_vm8, %v9243_v30 }
 0x447   : > { %6884 = vmatprep.mubr.msk.bf16.mxu0 %vm3401_vm8, %v9249_v22 }
 0x44e   : > { %6885 = vmatmul.mubr.msk.bf16.gmra.mrb[28].mxu0 %vm3401_vm8, %v10546_v4 }
 0x44f   : > { %6888 = vmatprep.mubr.msk.bf16.mxu0 %vm3401_vm8, %v10547_v52 }
 0x456   : > { %6889 = vmatmul.mubr.msk.bf16.gmra.mrb[32].mxu0 %vm3401_vm8, %v10548_v24 }
 0x457   : > { %6892 = vmatprep.mubr.msk.bf16.mxu0 %vm3401_vm8, %v10549_v41 }
 0x45e   : > { %6893 = vmatmul.mubr.msk.bf16.gmra.mrb[36].mxu0 %vm3401_vm8, %v10550_v55 }
 0x45f   : > { %6896 = vmatprep.mubr.msk.bf16.mxu0 %vm3401_vm8, %v10551_v16 }
 0x466   : > { %6897 = vmatmul.mubr.msk.bf16.gmra.mrb[40].mxu0 %vm3401_vm8, %v10552_v59 }
 0x467   : > { %6900 = vmatprep.mubr.msk.bf16.mxu0 %vm3401_vm8, %v10553_v26 }
 0x46e   : > { %6901 = vmatmul.mubr.msk.bf16.gmra.mrb[44].mxu0 %vm3401_vm8, %v10554_v2 }
 0x46f   : > { %6908 = vmatprep.mubr.msk.bf16.mxu0 %vm3401_vm8, %v10555_v32 }
 0x476   : > { %6909 = vmatmul.mubr.msk.bf16.vlgmr.msra.gmra.mrb[16].mxu0 %vm3401_vm8, %v10556_v42 }
 0x477   : > { %6941 = vmatpush3.bf16.msra.mxu0 %v7719_v19  ;;  %6912 = vmatprep.mubr.msk.bf16.mxu0 %vm3401_vm8, %v9322_v61 }
 0x478   : > { %6942 = vmatprep.subr.bf16.mxu0 %v7720_v57 }
 0x47b   : > { %6943 = vmatpush3.bf16.msra.mxu0 %v7720_v57 }
 0x47c   : > { %6976 = vmatprep.subr.bf16.mxu0 %v7721_v21 }
 0x47e   : > { %6913 = vmatmul.mubr.msk.bf16.gmra.mrb[20].mxu0 %vm3401_vm8, %v9324_v35 }
 0x47f   : > { %6916 = vmatprep.mubr.msk.bf16.mxu0 %vm3401_vm8, %v9343_v36 }
 0x486   : > { %6917 = vmatmul.mubr.msk.bf16.gmra.mrb[24].mxu0 %vm3401_vm8, %v9362_v11 }
 0x487   : > { %6920 = vmatprep.mubr.msk.bf16.mxu0 %vm3401_vm8, %v9364_v25 }
 0x48e   : > { %6921 = vmatmul.mubr.msk.bf16.gmra.mrb[28].mxu0 %vm3401_vm8, %v9378_v63 }
 0x48f   : > { %6924 = vmatprep.mubr.msk.bf16.mxu0 %vm3401_vm8, %v9395_v10 }
 0x496   : > { %6925 = vmatmul.mubr.msk.bf16.gmra.mrb[32].mxu0 %vm3401_vm8, %v9412_v15 }
 0x497   : > { %6928 = vmatprep.mubr.msk.bf16.mxu0 %vm3401_vm8, %v9414_v8 }
 0x49e   : > { %6929 = vmatmul.mubr.msk.bf16.gmra.mrb[36].mxu0 %vm3401_vm8, %v9426_v18 }
 0x49f   : > { %6932 = vmatprep.mubr.msk.bf16.mxu0 %vm3401_vm8, %v9443_v44 }
 0x4a6   : > { %6933 = vmatmul.mubr.msk.bf16.gmra.mrb[40].mxu0 %vm3401_vm8, %v9463_v31 }
 0x4a7   : > { %6936 = vmatprep.mubr.msk.bf16.mxu0 %vm3401_vm8, %v9465_v20 }
 0x4ae   : > { %6937 = vmatmul.mubr.msk.bf16.gmra.mrb[44].mxu0 %vm3401_vm8, %v9471_v62 }
 0x4af   : > { %6944 = vmatprep.mubr.msk.bf16.mxu0 %vm3401_vm8, %v10539_v48  ;;  %v7726_v48 = vld [vmem:[%s10233_s5 + $0x68] sm:$0xff]  }
 0x4b6   : > { %6945 = vmatmul.mubr.msk.bf16.vlgmr.msra.gmra.mrb[16].mxu0 %vm3401_vm8, %v10545_v6 }
 0x4b7   : > { %6977 = vmatpush3.bf16.msra.mxu0 %v7721_v21  ;;  %6948 = vmatprep.mubr.msk.bf16.mxu0 %vm3401_vm8, %v9233_v7 }
 0x4b8   : > { %6978 = vmatprep.subr.bf16.mxu0 %v7722_v27 }
 0x4bb   : > { %6979 = vmatpush3.bf16.msra.mxu0 %v7722_v27 }
 0x4bc   : > { %7012 = vmatprep.subr.bf16.mxu0 %v7723_v29 }
 0x4be   : > { %6949 = vmatmul.mubr.msk.bf16.gmra.mrb[20].mxu0 %vm3401_vm8, %v9239_v1 }
 0x4bf   : > { %6952 = vmatprep.mubr.msk.bf16.mxu0 %vm3401_vm8, %v9243_v30 }
 0x4c6   : > { %6953 = vmatmul.mubr.msk.bf16.gmra.mrb[24].mxu0 %vm3401_vm8, %v9249_v22 }
 0x4c7   : > { %6956 = vmatprep.mubr.msk.bf16.mxu0 %vm3401_vm8, %v10546_v4 }
 0x4ce   : > { %6957 = vmatmul.mubr.msk.bf16.gmra.mrb[28].mxu0 %vm3401_vm8, %v10547_v52 }
 0x4cf   : > { %6960 = vmatprep.mubr.msk.bf16.mxu0 %vm3401_vm8, %v10548_v24 }
 0x4d6   : > { %6961 = vmatmul.mubr.msk.bf16.gmra.mrb[32].mxu0 %vm3401_vm8, %v10549_v41 }
 0x4d7   : > { %6964 = vmatprep.mubr.msk.bf16.mxu0 %vm3401_vm8, %v10550_v55 }
 0x4de   : > { %6965 = vmatmul.mubr.msk.bf16.gmra.mrb[36].mxu0 %vm3401_vm8, %v10551_v16 }
 0x4df   : > { %6968 = vmatprep.mubr.msk.bf16.mxu0 %vm3401_vm8, %v10552_v59 }
 0x4e6   : > { %6969 = vmatmul.mubr.msk.bf16.gmra.mrb[40].mxu0 %vm3401_vm8, %v10553_v26 }
 0x4e7   : > { %6972 = vmatprep.mubr.msk.bf16.mxu0 %vm3401_vm8, %v10554_v2 }
 0x4ee   : > { %6973 = vmatmul.mubr.msk.bf16.gmra.mrb[44].mxu0 %vm3401_vm8, %v9475_v58 }
 0x4ef   : > { %6980 = vmatprep.mubr.msk.bf16.mxu0 %vm3401_vm8, %v10557_v12 }
 0x4f6   : > { %6981 = vmatmul.mubr.msk.bf16.vlgmr.msra.gmra.mrb[16].mxu0 %vm3401_vm8, %v10558_v33 }
 0x4f7   : > { %7013 = vmatpush3.bf16.msra.mxu0 %v7723_v29  ;;  %6984 = vmatprep.mubr.msk.bf16.mxu0 %vm3401_vm8, %v10559_v54 }
 0x4f8   : > { %7014 = vmatprep.subr.bf16.mxu0 %v7724_v23 }
 0x4fb   : > { %7015 = vmatpush3.bf16.msra.mxu0 %v7724_v23 }
 0x4fc   : > { %7048 = vmatprep.subr.bf16.mxu0 %v7725_v34 }
 0x4fe   : > { %6985 = vmatmul.mubr.msk.bf16.gmra.mrb[20].mxu0 %vm3401_vm8, %v10560_v3 }
 0x4ff   : > { %6988 = vmatprep.mubr.msk.bf16.mxu0 %vm3401_vm8, %v10561_v53 }
 0x506   : > { %6989 = vmatmul.mubr.msk.bf16.gmra.mrb[24].mxu0 %vm3401_vm8, %v10562_v40 }
 0x507   : > { %6992 = vmatprep.mubr.msk.bf16.mxu0 %vm3401_vm8, %v10563_v28 }
 0x50e   : > { %6993 = vmatmul.mubr.msk.bf16.gmra.mrb[28].mxu0 %vm3401_vm8, %v10564_v5 }
 0x50f   : > { %6996 = vmatprep.mubr.msk.bf16.mxu0 %vm3401_vm8, %v10565_v0 }
 0x516   : > { %6997 = vmatmul.mubr.msk.bf16.gmra.mrb[32].mxu0 %vm3401_vm8, %v10566_v51 }
 0x517   : > { %7000 = vmatprep.mubr.msk.bf16.mxu0 %vm3401_vm8, %v10567_v43 }
 0x51e   : > { %7001 = vmatmul.mubr.msk.bf16.gmra.mrb[36].mxu0 %vm3401_vm8, %v10568_v47 }
 0x51f   : > { %7004 = vmatprep.mubr.msk.bf16.mxu0 %vm3401_vm8, %v10569_v46 }
 0x526   : > { %7005 = vmatmul.mubr.msk.bf16.gmra.mrb[40].mxu0 %vm3401_vm8, %v10570_v50 }
 0x527   : > { %7008 = vmatprep.mubr.msk.bf16.mxu0 %vm3401_vm8, %v9326_v60 }
 0x52e   : > { %7009 = vmatmul.mubr.msk.bf16.gmra.mrb[44].mxu0 %vm3401_vm8, %v9487_v45 }
 0x52f   : > { %7016 = vmatprep.mubr.msk.bf16.mxu0 %vm3401_vm8, %v10556_v42 }
 0x536   : > { %7017 = vmatmul.mubr.msk.bf16.vlgmr.msra.gmra.mrb[16].mxu0 %vm3401_vm8, %v9322_v61 }
 0x537   : > { %7049 = vmatpush3.bf16.msra.mxu0 %v7725_v34  ;;  %7020 = vmatprep.mubr.msk.bf16.mxu0 %vm3401_vm8, %v9324_v35 }
 0x538   : > { %7050 = vmatprep.subr.bf16.mxu0 %v7726_v48 }
 0x53b   : > { %7051 = vmatpush3.bf16.msra.mxu0 %v7726_v48 }
 0x53c   : > { %7084 = vmatprep.subr.bf16.mxu0 %v7727_v56 }
 0x53e   : > { %7021 = vmatmul.mubr.msk.bf16.gmra.mrb[20].mxu0 %vm3401_vm8, %v9343_v36 }
 0x53f   : > { %7024 = vmatprep.mubr.msk.bf16.mxu0 %vm3401_vm8, %v9362_v11 }
 0x546   : > { %7025 = vmatmul.mubr.msk.bf16.gmra.mrb[24].mxu0 %vm3401_vm8, %v9364_v25 }
 0x547   : > { %7028 = vmatprep.mubr.msk.bf16.mxu0 %vm3401_vm8, %v9378_v63 }
 0x54e   : > { %7029 = vmatmul.mubr.msk.bf16.gmra.mrb[28].mxu0 %vm3401_vm8, %v9395_v10 }
 0x54f   : > { %7032 = vmatprep.mubr.msk.bf16.mxu0 %vm3401_vm8, %v9412_v15 }
 0x556   : > { %7033 = vmatmul.mubr.msk.bf16.gmra.mrb[32].mxu0 %vm3401_vm8, %v9414_v8 }
 0x557   : > { %7036 = vmatprep.mubr.msk.bf16.mxu0 %vm3401_vm8, %v9426_v18 }
 0x55e   : > { %7037 = vmatmul.mubr.msk.bf16.gmra.mrb[36].mxu0 %vm3401_vm8, %v9443_v44 }
 0x55f   : > { %7040 = vmatprep.mubr.msk.bf16.mxu0 %vm3401_vm8, %v9463_v31 }
 0x566   : > { %7041 = vmatmul.mubr.msk.bf16.gmra.mrb[40].mxu0 %vm3401_vm8, %v9465_v20 }
 0x567   : > { %7044 = vmatprep.mubr.msk.bf16.mxu0 %vm3401_vm8, %v9471_v62 }
 0x56e   : > { %7045 = vmatmul.mubr.msk.bf16.gmra.mrb[44].mxu0 %vm3401_vm8, %v9502_v9 }
 0x56f   : > { %7052 = vmatprep.mubr.msk.bf16.mxu0 %vm3401_vm8, %v10545_v6 }
 0x576   : > { %7053 = vmatmul.mubr.msk.bf16.vlgmr.msra.gmra.mrb[16].mxu0 %vm3401_vm8, %v9233_v7  ;;  %v7730_v7 = vld [vmem:[%s10233_s5 + $0x88] sm:$0xff]  }
 0x577   : > { %7085 = vmatpush3.bf16.msra.mxu0 %v7727_v56  ;;  %7056 = vmatprep.mubr.msk.bf16.mxu0 %vm3401_vm8, %v9239_v1  ;;  %v9793_v1 = vld [vmem:[%s10234_s6] ss:$0 sm:$0xff] }
 0x578   : > { %7086 = vmatprep.subr.bf16.mxu0 %v7728_v39 }
 0x57b   : > { %7087 = vmatpush3.bf16.msra.mxu0 %v7728_v39 }
 0x57c   : > { %7120 = vmatprep.subr.bf16.mxu0 %v7729_v49 }
 0x57e   : > { %7057 = vmatmul.mubr.msk.bf16.gmra.mrb[20].mxu0 %vm3401_vm8, %v9243_v30 }
 0x57f   : > { %7060 = vmatprep.mubr.msk.bf16.mxu0 %vm3401_vm8, %v9249_v22 }
 0x586   : > { %7061 = vmatmul.mubr.msk.bf16.gmra.mrb[24].mxu0 %vm3401_vm8, %v10546_v4 }
 0x587   : > { %7064 = vmatprep.mubr.msk.bf16.mxu0 %vm3401_vm8, %v10547_v52 }
 0x58e   : > { %7065 = vmatmul.mubr.msk.bf16.gmra.mrb[28].mxu0 %vm3401_vm8, %v10548_v24 }
 0x58f   : > { %7068 = vmatprep.mubr.msk.bf16.mxu0 %vm3401_vm8, %v10549_v41 }
 0x596   : > { %7069 = vmatmul.mubr.msk.bf16.gmra.mrb[32].mxu0 %vm3401_vm8, %v10550_v55 }
 0x597   : > { %7072 = vmatprep.mubr.msk.bf16.mxu0 %vm3401_vm8, %v10551_v16 }
 0x59e   : > { %7073 = vmatmul.mubr.msk.bf16.gmra.mrb[36].mxu0 %vm3401_vm8, %v10552_v59 }
 0x59f   : > { %7076 = vmatprep.mubr.msk.bf16.mxu0 %vm3401_vm8, %v10553_v26 }
 0x5a6   : > { %7077 = vmatmul.mubr.msk.bf16.gmra.mrb[40].mxu0 %vm3401_vm8, %v10554_v2 }
 0x5a7   : > { %7080 = vmatprep.mubr.msk.bf16.mxu0 %vm3401_vm8, %v9475_v58 }
 0x5ae   : > { %7081 = vmatmul.mubr.msk.bf16.gmra.mrb[44].mxu0 %vm3401_vm8, %v10394_v17  ;;  %v10571_v17 = vld [vmem:[#allocation6_spill] sm:$0xff] }
 0x5af   : > { %7088 = vmatprep.mubr.msk.bf16.mxu0 %vm3401_vm8, %v10558_v33 }
 0x5b6   : > { %7089 = vmatmul.mubr.msk.bf16.vlgmr.msra.gmra.mrb[16].mxu0 %vm3401_vm8, %v10559_v54 }
 0x5b7   : > { %7121 = vmatpush3.bf16.msra.mxu0 %v7729_v49  ;;  %7092 = vmatprep.mubr.msk.bf16.mxu0 %vm3401_vm8, %v10560_v3 }
 0x5b8   : > { %7122 = vmatprep.subr.bf16.mxu0 %v7730_v7 }
 0x5bb   : > { %7123 = vmatpush3.bf16.msra.mxu0 %v7730_v7 }
 0x5be   : > { %7093 = vmatmul.mubr.msk.bf16.gmra.mrb[20].mxu0 %vm3401_vm8, %v10561_v53 }
 0x5bf   : > { %7096 = vmatprep.mubr.msk.bf16.mxu0 %vm3401_vm8, %v10562_v40 }
 0x5c6   : > { %7097 = vmatmul.mubr.msk.bf16.gmra.mrb[24].mxu0 %vm3401_vm8, %v10563_v28 }
 0x5c7   : > { %7100 = vmatprep.mubr.msk.bf16.mxu0 %vm3401_vm8, %v10564_v5 }
 0x5ce   : > { %7101 = vmatmul.mubr.msk.bf16.gmra.mrb[28].mxu0 %vm3401_vm8, %v10565_v0 }
 0x5cf   : > { %7104 = vmatprep.mubr.msk.bf16.mxu0 %vm3401_vm8, %v10566_v51 }
 0x5d6   : > { %7105 = vmatmul.mubr.msk.bf16.gmra.mrb[32].mxu0 %vm3401_vm8, %v10567_v43 }
 0x5d7   : > { %7108 = vmatprep.mubr.msk.bf16.mxu0 %vm3401_vm8, %v10568_v47 }
 0x5de   : > { %7109 = vmatmul.mubr.msk.bf16.gmra.mrb[36].mxu0 %vm3401_vm8, %v10569_v46 }
 0x5df   : > { %7112 = vmatprep.mubr.msk.bf16.mxu0 %vm3401_vm8, %v10570_v50 }
 0x5e6   : > { %7113 = vmatmul.mubr.msk.bf16.gmra.mrb[40].mxu0 %vm3401_vm8, %v9326_v60 }
 0x5e7   : > { %7116 = vmatprep.mubr.msk.bf16.mxu0 %vm3401_vm8, %v9487_v45 }
 0x5ee   : > { %7117 = vmatmul.mubr.msk.bf16.gmra.mrb[44].mxu0 %vm3401_vm8, %v10571_v17 }
 0x5ef   : > { %7124 = vmatprep.mubr.msk.bf16.mxu0 %vm3401_vm8, %v9322_v61 }
 0x5f6   : > { %7125 = vmatmul.mubr.msk.bf16.vlgmr.msra.gmra.mrb[16].mxu0 %vm3401_vm8, %v9324_v35 }
 0x5f7   : > { %7128 = vmatprep.mubr.msk.bf16.mxu0 %vm3401_vm8, %v9343_v36 }
 0x5fe   : > { %7129 = vmatmul.mubr.msk.bf16.gmra.mrb[20].mxu0 %vm3401_vm8, %v9362_v11 }
 0x5ff   : > { %7132 = vmatprep.mubr.msk.bf16.mxu0 %vm3401_vm8, %v9364_v25 }
 0x606   : > { %7133 = vmatmul.mubr.msk.bf16.gmra.mrb[24].mxu0 %vm3401_vm8, %v9378_v63 }
 0x607   : > { %7136 = vmatprep.mubr.msk.bf16.mxu0 %vm3401_vm8, %v9395_v10 }
 0x60e   : > { %7137 = vmatmul.mubr.msk.bf16.gmra.mrb[28].mxu0 %vm3401_vm8, %v9412_v15 }
 0x60f   : > { %7140 = vmatprep.mubr.msk.bf16.mxu0 %vm3401_vm8, %v9414_v8 }
 0x616   : > { %7141 = vmatmul.mubr.msk.bf16.gmra.mrb[32].mxu0 %vm3401_vm8, %v9426_v18 }
 0x617   : > { %7144 = vmatprep.mubr.msk.bf16.mxu0 %vm3401_vm8, %v9443_v44 }
 0x61e   : > { %7145 = vmatmul.mubr.msk.bf16.gmra.mrb[36].mxu0 %vm3401_vm8, %v9463_v31 }
 0x61f   : > { %7148 = vmatprep.mubr.msk.bf16.mxu0 %vm3401_vm8, %v9465_v20 }
 0x626   : > { %7149 = vmatmul.mubr.msk.bf16.gmra.mrb[40].mxu0 %vm3401_vm8, %v9471_v62 }
 0x627   : > { %7152 = vmatprep.mubr.msk.bf16.mxu0 %vm3401_vm8, %v9502_v9 }
 0x62e   : > { %7153 = vmatmul.mubr.msk.bf16.gmra.mrb[44].mxu0 %vm3401_vm8, %v10555_v32 }
 0x6c9   : > { %v7126_v30 = vpop.f32.mrb[16].mxu0 }
 0x6ca   : > { %v9796_v22 = vadd.f32 %v7126_v30, %v9793_v1  ;;  %v5336_v61 = vpop.f32.mrb[17].mxu0 }
 0x6cb   : > { %v9799_v35 = vadd.f32 %v9793_v1, %v5336_v61  ;;  %v7127_v60 = vpop.f32.mrb[18].mxu0 }
 0x6cc   : > { %v5536_v36 = vmax.f32 %v9796_v22, 0.0  ;;  %v9803_v11 = vadd.f32 %v7127_v60, %v9793_v1  ;;  %v5339_v25 = vpop.f32.mrb[19].mxu0 }
 0x6cd   : > { %v5534_v63 = vmax.f32 %v9799_v35, 0.0  ;;  %v9807_v10 = vadd.f32 %v9793_v1, %v5339_v25 }
 0x6ce   : > { %v5537_v15 = vmax.f32 %v9803_v11, 0.0  ;;  %5573 = vst.msk [vmem:[%s7860_s18 + $0x10] sm:$0xff] (!%p6155_p7), %vm5570_vm9, %v5536_v36 }
 0x6cf   : > { %v5535_v8 = vmax.f32 %v9807_v10, 0.0  ;;  %5571 = vst.msk [vmem:[%s7860_s18] sm:$0xff] (!%p6155_p7), %vm5570_vm9, %v5534_v63 }
 0x6d0   : > { %5574 = vst.msk [vmem:[%s7860_s18 + $0x18] sm:$0xff] (!%p6155_p7), %vm5570_vm9, %v5537_v15 }
 0x6d1   : > { %v7130_v18 = vpop.f32.mrb[20].mxu0  ;;  %5572 = vst.msk [vmem:[%s7860_s18 + $0x8] sm:$0xff] (!%p6155_p7), %vm5570_vm9, %v5535_v8 }
 0x6d2   : > { %v9812_v44 = vadd.f32 %v7130_v18, %v9793_v1  ;;  %v5352_v31 = vpop.f32.mrb[21].mxu0 }
 0x6d3   : > { %v9815_v20 = vadd.f32 %v9793_v1, %v5352_v31  ;;  %v7131_v62 = vpop.f32.mrb[22].mxu0 }
 0x6d4   : > { %v5540_v58 = vmax.f32 %v9812_v44, 0.0  ;;  %v9819_v45 = vadd.f32 %v7131_v62, %v9793_v1  ;;  %v5355_v13 = vpop.f32.mrb[23].mxu0 }
 0x6d5   : > { %v5538_v37 = vmax.f32 %v9815_v20, 0.0  ;;  %v9823_v38 = vadd.f32 %v9793_v1, %v5355_v13 }
 0x6d6   : > { %v5541_v14 = vmax.f32 %v9819_v45, 0.0  ;;  %5577 = vst.msk [vmem:[%s7860_s18 + $0x30] sm:$0xff] (!%p6155_p7), %vm5570_vm9, %v5540_v58 }
 0x6d7   : > { %v5539_v6 = vmax.f32 %v9823_v38, 0.0  ;;  %5575 = vst.msk [vmem:[%s7860_s18 + $0x20] sm:$0xff] (!%p6155_p7), %vm5570_vm9, %v5538_v37 }
 0x6d8   : > { %5578 = vst.msk [vmem:[%s7860_s18 + $0x38] sm:$0xff] (!%p6155_p7), %vm5570_vm9, %v5541_v14 }
 0x6d9   : > { %v7134_v9 = vpop.f32.mrb[24].mxu0  ;;  %5576 = vst.msk [vmem:[%s7860_s18 + $0x28] sm:$0xff] (!%p6155_p7), %vm5570_vm9, %v5539_v6 }
 0x6da   : > { %v9828_v19 = vadd.f32 %v7134_v9, %v9793_v1  ;;  %v5368_v4 = vpop.f32.mrb[25].mxu0 }
 0x6db   : > { %v9831_v52 = vadd.f32 %v9793_v1, %v5368_v4  ;;  %v7135_v24 = vpop.f32.mrb[26].mxu0 }
 0x6dc   : > { %v5544_v41 = vmax.f32 %v9828_v19, 0.0  ;;  %v9835_v55 = vadd.f32 %v7135_v24, %v9793_v1  ;;  %v5371_v16 = vpop.f32.mrb[27].mxu0 }
 0x6dd   : > { %v5542_v59 = vmax.f32 %v9831_v52, 0.0  ;;  %v9839_v26 = vadd.f32 %v9793_v1, %v5371_v16 }
 0x6de   : > { %v5545_v2 = vmax.f32 %v9835_v55, 0.0  ;;  %5581 = vst.msk [vmem:[%s7860_s18 + $0x50] sm:$0xff] (!%p6155_p7), %vm5570_vm9, %v5544_v41 }
 0x6df   : > { %v5543_v32 = vmax.f32 %v9839_v26, 0.0  ;;  %5579 = vst.msk [vmem:[%s7860_s18 + $0x40] sm:$0xff] (!%p6155_p7), %vm5570_vm9, %v5542_v59 }
 0x6e0   : > { %5582 = vst.msk [vmem:[%s7860_s18 + $0x58] sm:$0xff] (!%p6155_p7), %vm5570_vm9, %v5545_v2 }
 0x6e1   : > { %v7138_v57 = vpop.f32.mrb[28].mxu0  ;;  %5580 = vst.msk [vmem:[%s7860_s18 + $0x48] sm:$0xff] (!%p6155_p7), %vm5570_vm9, %v5543_v32 }
 0x6e2   : > { %v9844_v42 = vadd.f32 %v7138_v57, %v9793_v1  ;;  %v5384_v21 = vpop.f32.mrb[29].mxu0 }
 0x6e3   : > { %v9847_v27 = vadd.f32 %v9793_v1, %v5384_v21  ;;  %v7139_v29 = vpop.f32.mrb[30].mxu0 }
 0x6e4   : > { %v5548_v12 = vmax.f32 %v9844_v42, 0.0  ;;  %v9851_v23 = vadd.f32 %v7139_v29, %v9793_v1  ;;  %v5387_v33 = vpop.f32.mrb[31].mxu0 }
 0x6e5   : > { %v5546_v54 = vmax.f32 %v9847_v27, 0.0  ;;  %v9855_v34 = vadd.f32 %v9793_v1, %v5387_v33 }
 0x6e6   : > { %v5549_v3 = vmax.f32 %v9851_v23, 0.0  ;;  %5585 = vst.msk [vmem:[%s7860_s18 + $0x70] sm:$0xff] (!%p6155_p7), %vm5570_vm9, %v5548_v12 }
 0x6e7   : > { %v5547_v53 = vmax.f32 %v9855_v34, 0.0  ;;  %5583 = vst.msk [vmem:[%s7860_s18 + $0x60] sm:$0xff] (!%p6155_p7), %vm5570_vm9, %v5546_v54 }
 0x6e8   : > { %5586 = vst.msk [vmem:[%s7860_s18 + $0x78] sm:$0xff] (!%p6155_p7), %vm5570_vm9, %v5549_v3 }
 0x6e9   : > { %v7142_v40 = vpop.f32.mrb[32].mxu0  ;;  %5584 = vst.msk [vmem:[%s7860_s18 + $0x68] sm:$0xff] (!%p6155_p7), %vm5570_vm9, %v5547_v53 }
 0x6ea   : > { %v9860_v28 = vadd.f32 %v7142_v40, %v9793_v1  ;;  %v5400_v5 = vpop.f32.mrb[33].mxu0 }
 0x6eb   : > { %v9863_v0 = vadd.f32 %v9793_v1, %v5400_v5  ;;  %v7143_v51 = vpop.f32.mrb[34].mxu0 }
 0x6ec   : > { %v5552_v43 = vmax.f32 %v9860_v28, 0.0  ;;  %v9867_v47 = vadd.f32 %v7143_v51, %v9793_v1  ;;  %v5403_v46 = vpop.f32.mrb[35].mxu0 }
 0x6ed   : > { %v5550_v50 = vmax.f32 %v9863_v0, 0.0  ;;  %v9871_v48 = vadd.f32 %v9793_v1, %v5403_v46 }
 0x6ee   : > { %v5553_v56 = vmax.f32 %v9867_v47, 0.0  ;;  %5589 = vst.msk [vmem:[%s7860_s18 + $0x90] sm:$0xff] (!%p6155_p7), %vm5570_vm9, %v5552_v43 }
 0x6ef   : > { %v5551_v39 = vmax.f32 %v9871_v48, 0.0  ;;  %5587 = vst.msk [vmem:[%s7860_s18 + $0x80] sm:$0xff] (!%p6155_p7), %vm5570_vm9, %v5550_v50 }
 0x6f0   : > { %5590 = vst.msk [vmem:[%s7860_s18 + $0x98] sm:$0xff] (!%p6155_p7), %vm5570_vm9, %v5553_v56 }
 0x6f1   : > { %v7146_v49 = vpop.f32.mrb[36].mxu0  ;;  %5588 = vst.msk [vmem:[%s7860_s18 + $0x88] sm:$0xff] (!%p6155_p7), %vm5570_vm9, %v5551_v39 }
 0x6f2   : > { %v9876_v7 = vadd.f32 %v7146_v49, %v9793_v1  ;;  %v5416_v17 = vpop.f32.mrb[37].mxu0 }
 0x6f3   : > { %v9879_v30 = vadd.f32 %v9793_v1, %v5416_v17  ;;  %v7147_v61 = vpop.f32.mrb[38].mxu0 }
 0x6f4   : > { %v10334_v60 = vmax.f32 %v9876_v7, 0.0  ;;  %v9883_v25 = vadd.f32 %v7147_v61, %v9793_v1  ;;  %v5419_v18 = vpop.f32.mrb[39].mxu0 }
 0x6f5   : > { %v5554_v31 = vmax.f32 %v9879_v30, 0.0  ;;  %v9887_v62 = vadd.f32 %v9793_v1, %v5419_v18 }
 0x6f6   : > { %v10333_v13 = vmax.f32 %v9883_v25, 0.0  ;;  %5593 = vst.msk [vmem:[%s7860_s18 + $0xb0] sm:$0xff] (!%p6155_p7), %vm5570_vm9, %v10334_v60 }
 0x6f7   : > { %v5555_v9 = vmax.f32 %v9887_v62, 0.0  ;;  %5591 = vst.msk [vmem:[%s7860_s18 + $0xa0] sm:$0xff] (!%p6155_p7), %vm5570_vm9, %v5554_v31 }
 0x6f8   : > { %5594 = vst.msk [vmem:[%s7860_s18 + $0xb8] sm:$0xff] (!%p6155_p7), %vm5570_vm9, %v10333_v13 }
 0x6f9   : > { %v7150_v4 = vpop.f32.mrb[40].mxu0  ;;  %5592 = vst.msk [vmem:[%s7860_s18 + $0xa8] sm:$0xff] (!%p6155_p7), %vm5570_vm9, %v5555_v9 }
 0x6fa   : > { %v9892_v24 = vadd.f32 %v7150_v4, %v9793_v1  ;;  %v5432_v16 = vpop.f32.mrb[41].mxu0 }
 0x6fb   : > { %v9895_v57 = vadd.f32 %v9793_v1, %v5432_v16  ;;  %v7151_v21 = vpop.f32.mrb[42].mxu0 }
 0x6fc   : > { %v9899_v33 = vadd.f32 %v7151_v21, %v9793_v1  ;;  %v5435_v40 = vpop.f32.mrb[43].mxu0 }
 0x6fd   : > { %v9903_v51 = vadd.f32 %v9793_v1, %v5435_v40 }
 0x701   : > { %v7154_v17 = vpop.f32.mrb[44].mxu0  ;;  %5569 = sbr.rel (%p6155_p7) target bundleno = 1802 (0x70a), region = 52 }
 0x702   : > { %v9908_v61 = vadd.f32 %v7154_v17, %v9793_v1  ;;  %v5448_v18 = vpop.f32.mrb[45].mxu0 }
 0x703   : > { %v9911_v4 = vadd.f32 %v9793_v1, %v5448_v18  ;;  %v7155_v16 = vpop.f32.mrb[46].mxu0  ;;  %v10573_v18 = vmax.f32 (!%p6155_p7), %v9903_v51, 0.0 }
 0x704   : > { %v10330_v21 = vmax.f32 %v9908_v61, 0.0  ;;  %v9915_v29 = vadd.f32 %v7155_v16, %v9793_v1  ;;  %v5451_v40 = vpop.f32.mrb[47].mxu0  ;;  %v10574_v16 = vmax.f32 (!%p6155_p7), %v9892_v24, 0.0 }
 0x705   : > { %v10332_v5 = vmax.f32 %v9911_v4, 0.0  ;;  %v9919_v46 = vadd.f32 %v9793_v1, %v5451_v40  ;;  %v10572_v1 = vmax.f32 (!%p6155_p7), %v9895_v57, 0.0  ;;  %5596 = vst.msk [vmem:[%s7860_s18 + $0xc8] sm:$0xff] (!%p6155_p7), %vm5570_vm9, %v10573_v18  ;;  %v10575_v40 = vmax.f32 (!%p6155_p7), %v9899_v33, 0.0 }
 0x706   : > { %v10329_v49 = vmax.f32 %v9915_v29, 0.0  ;;  %5597 = vst.msk [vmem:[%s7860_s18 + $0xd0] sm:$0xff] (!%p6155_p7), %vm5570_vm9, %v10574_v16  ;;  %5601 = vst.msk [vmem:[%s7860_s18 + $0xf0] sm:$0xff] (!%p6155_p7), %vm5570_vm9, %v10330_v21 }
 0x707   : > { %v10331_v17 = vmax.f32 %v9919_v46, 0.0  ;;  %5595 = vst.msk [vmem:[%s7860_s18 + $0xc0] sm:$0xff] (!%p6155_p7), %vm5570_vm9, %v10572_v1  ;;  %5598 = vst.msk [vmem:[%s7860_s18 + $0xd8] sm:$0xff] (!%p6155_p7), %vm5570_vm9, %v10575_v40 }
 0x708   : > { %5599 = vst.msk [vmem:[%s7860_s18 + $0xe0] sm:$0xff] %vm5570_vm9, %v10332_v5  ;;  %5602 = vst.msk [vmem:[%s7860_s18 + $0xf8] sm:$0xff] %vm5570_vm9, %v10329_v49 }
 0x709   : > { %5600 = vst.msk [vmem:[%s7860_s18 + $0xe8] sm:$0xff] %vm5570_vm9, %v10331_v17 }
 0x70a PF: > { %p6156_p8 = scmp.eq.s32.totalorder %s7753_s24, 0 }
 0x70b   : > { %v5607_v1 = vld [vmem:[%s7860_s18] sm:$0xff] (!%p6156_p8)  ;;  %vm5671_vm10 = vcmask (!%p6156_p8), 523264   ;;  %v5608_v18 = vld [vmem:[%s7860_s18 + $0x8] sm:$0xff] (!%p6156_p8)  ;;  %v5609_v16 = vld [vmem:[%s7860_s18 + $0x10] sm:$0xff] (!%p6156_p8) }
 0x70c   : > { %5606 = sbr.rel (%p6156_p8) target bundleno = 1822 (0x71e), region = 56  ;;  %v5639_v40 = vmax.f32 (!%p6156_p8), %v5607_v1, %v5534_v63  ;;  %v5640_v49 = vmax.f32 (!%p6156_p8), %v5608_v18, %v5535_v8  ;;  %v5641_v21 = vmax.f32 (!%p6156_p8), %v5609_v16, %v5536_v36  ;;  %v5610_v17 = vld [vmem:[%s7860_s18 + $0x18] sm:$0xff] (!%p6156_p8)  ;;  %v5611_v5 = vld [vmem:[%s7860_s18 + $0x20] sm:$0xff] (!%p6156_p8)  ;;  %v5612_v13 = vld [vmem:[%s7860_s18 + $0x28] sm:$0xff] (!%p6156_p8)  ;;  %v10583_v18 = vmax.f32 (!%p6156_p8), %v9919_v46, 0.0 }
 0x70d   : > { %v5642_v60 = vmax.f32 (!%p6156_p8), %v5610_v17, %v5537_v15  ;;  %v5643_v35 = vmax.f32 (!%p6156_p8), %v5611_v5, %v5538_v37  ;;  %v5644_v63 = vmax.f32 (!%p6156_p8), %v5612_v13, %v5539_v6  ;;  %v5613_v22 = vld [vmem:[%s7860_s18 + $0x30] sm:$0xff] (!%p6156_p8)  ;;  %v5614_v36 = vld [vmem:[%s7860_s18 + $0x38] sm:$0xff] (!%p6156_p8)  ;;  %v5615_v10 = vld [vmem:[%s7860_s18 + $0x40] sm:$0xff] (!%p6156_p8) }
 0x70e   : > { %5672 = vst.msk [vmem:[%s7860_s18] sm:$0xff] (!%p6156_p8), %vm5671_vm10, %v5639_v40  ;;  %5673 = vst.msk [vmem:[%s7860_s18 + $0x8] sm:$0xff] (!%p6156_p8), %vm5671_vm10, %v5640_v49  ;;  %v5645_v11 = vmax.f32 (!%p6156_p8), %v5613_v22, %v5540_v58  ;;  %v5646_v15 = vmax.f32 (!%p6156_p8), %v5614_v36, %v5541_v14  ;;  %v5647_v8 = vmax.f32 (!%p6156_p8), %v5615_v10, %v5542_v59  ;;  %v5616_v20 = vld [vmem:[%s7860_s18 + $0x48] sm:$0xff] (!%p6156_p8)  ;;  %v5617_v37 = vld [vmem:[%s7860_s18 + $0x50] sm:$0xff] (!%p6156_p8) }
 0x70f   : > { %5674 = vst.msk [vmem:[%s7860_s18 + $0x10] sm:$0xff] (!%p6156_p8), %vm5671_vm10, %v5641_v21  ;;  %v5618_v38 = vld [vmem:[%s7860_s18 + $0x58] sm:$0xff] (!%p6156_p8)  ;;  %5675 = vst.msk [vmem:[%s7860_s18 + $0x18] sm:$0xff] (!%p6156_p8), %vm5671_vm10, %v5642_v60  ;;  %v5648_v44 = vmax.f32 (!%p6156_p8), %v5616_v20, %v5543_v32  ;;  %v5649_v58 = vmax.f32 (!%p6156_p8), %v5617_v37, %v5544_v41  ;;  %v5619_v14 = vld [vmem:[%s7860_s18 + $0x60] sm:$0xff] (!%p6156_p8) }
 0x710   : > { %5676 = vst.msk [vmem:[%s7860_s18 + $0x20] sm:$0xff] (!%p6156_p8), %vm5671_vm10, %v5643_v35  ;;  %5677 = vst.msk [vmem:[%s7860_s18 + $0x28] sm:$0xff] (!%p6156_p8), %vm5671_vm10, %v5644_v63  ;;  %v5650_v45 = vmax.f32 (!%p6156_p8), %v5618_v38, %v5545_v2  ;;  %v5620_v6 = vld [vmem:[%s7860_s18 + $0x68] sm:$0xff] (!%p6156_p8)  ;;  %v5621_v52 = vld [vmem:[%s7860_s18 + $0x70] sm:$0xff] (!%p6156_p8)  ;;  %v5651_v19 = vmax.f32 (!%p6156_p8), %v5619_v14, %v5546_v54  ;;  %v10584_v63 = vmax.f32 (!%p6156_p8), %v9908_v61, 0.0 }
 0x711   : > { %5678 = vst.msk [vmem:[%s7860_s18 + $0x30] sm:$0xff] (!%p6156_p8), %vm5671_vm10, %v5645_v11  ;;  %5679 = vst.msk [vmem:[%s7860_s18 + $0x38] sm:$0xff] (!%p6156_p8), %vm5671_vm10, %v5646_v15  ;;  %v5652_v41 = vmax.f32 (!%p6156_p8), %v5620_v6, %v5547_v53  ;;  %v5653_v55 = vmax.f32 (!%p6156_p8), %v5621_v52, %v5548_v12  ;;  %v5622_v59 = vld [vmem:[%s7860_s18 + $0x78] sm:$0xff] (!%p6156_p8)  ;;  %v5623_v26 = vld [vmem:[%s7860_s18 + $0x80] sm:$0xff] (!%p6156_p8) }
 0x712   : > { %5680 = vst.msk [vmem:[%s7860_s18 + $0x40] sm:$0xff] (!%p6156_p8), %vm5671_vm10, %v5647_v8  ;;  %v5624_v2 = vld [vmem:[%s7860_s18 + $0x88] sm:$0xff] (!%p6156_p8)  ;;  %5681 = vst.msk [vmem:[%s7860_s18 + $0x48] sm:$0xff] (!%p6156_p8), %vm5671_vm10, %v5648_v44  ;;  %v5654_v32 = vmax.f32 (!%p6156_p8), %v5622_v59, %v5549_v3  ;;  %v5655_v42 = vmax.f32 (!%p6156_p8), %v5623_v26, %v5550_v50  ;;  %v5625_v12 = vld [vmem:[%s7860_s18 + $0x90] sm:$0xff] (!%p6156_p8) }
 0x713   : > { %5682 = vst.msk [vmem:[%s7860_s18 + $0x50] sm:$0xff] %vm5671_vm10, %v5649_v58  ;;  %5683 = vst.msk [vmem:[%s7860_s18 + $0x58] sm:$0xff] %vm5671_vm10, %v5650_v45  ;;  %v5656_v27 = vmax.f32 %v5624_v2, %v5551_v39  ;;  %v5626_v54 = vld [vmem:[%s7860_s18 + $0x98] sm:$0xff]  ;;  %v5627_v34 = vld [vmem:[%s7860_s18 + $0xa0] sm:$0xff]  ;;  %v5657_v23 = vmax.f32 %v5625_v12, %v5552_v43  ;;  %v10576_v43 = vmax.f32 %v9876_v7, 0.0  ;;  %v10578_v7 = vmax.f32 %v9895_v57, 0.0 }
 0x714   : > { %5684 = vst.msk [vmem:[%s7860_s18 + $0x60] sm:$0xff] %vm5671_vm10, %v5651_v19  ;;  %5685 = vst.msk [vmem:[%s7860_s18 + $0x68] sm:$0xff] %vm5671_vm10, %v5652_v41  ;;  %v5658_v3 = vmax.f32 %v5626_v54, %v5553_v56  ;;  %v5659_v53 = vmax.f32 %v5627_v34, %v5554_v31  ;;  %v5628_v0 = vld [vmem:[%s7860_s18 + $0xa8] sm:$0xff]  ;;  %v5629_v50 = vld [vmem:[%s7860_s18 + $0xb0] sm:$0xff]  ;;  %v10577_v56 = vmax.f32 %v9883_v25, 0.0  ;;  %v10579_v25 = vmax.f32 %v9903_v51, 0.0 }
 0x715   : > { %5686 = vst.msk [vmem:[%s7860_s18 + $0x70] sm:$0xff] %vm5671_vm10, %v5653_v55  ;;  %v5630_v48 = vld [vmem:[%s7860_s18 + $0xb8] sm:$0xff]  ;;  %5687 = vst.msk [vmem:[%s7860_s18 + $0x78] sm:$0xff] %vm5671_vm10, %v5654_v32  ;;  %v5660_v28 = vmax.f32 %v5628_v0, %v5555_v9  ;;  %v5661_v47 = vmax.f32 %v5629_v50, %v10576_v43  ;;  %v5631_v30 = vld [vmem:[%s7860_s18 + $0xc0] sm:$0xff]  ;;  %v10580_v9 = vmax.f32 %v9892_v24, 0.0  ;;  %v10581_v57 = vmax.f32 %v9899_v33, 0.0 }
 0x716   : > { %5688 = vst.msk [vmem:[%s7860_s18 + $0x80] sm:$0xff] %vm5671_vm10, %v5655_v42  ;;  %5689 = vst.msk [vmem:[%s7860_s18 + $0x88] sm:$0xff] %vm5671_vm10, %v5656_v27  ;;  %v5662_v39 = vmax.f32 %v5630_v48, %v10577_v56  ;;  %v5632_v60 = vld [vmem:[%s7860_s18 + $0xc8] sm:$0xff]  ;;  %v5633_v31 = vld [vmem:[%s7860_s18 + $0xd0] sm:$0xff]  ;;  %v5663_v62 = vmax.f32 %v5631_v30, %v10578_v7  ;;  %v10582_v24 = vmax.f32 %v9911_v4, 0.0  ;;  %v10585_v33 = vmax.f32 %v9915_v29, 0.0 }
 0x717   : > { %5690 = vst.msk [vmem:[%s7860_s18 + $0x90] sm:$0xff] %vm5671_vm10, %v5657_v23  ;;  %5691 = vst.msk [vmem:[%s7860_s18 + $0x98] sm:$0xff] %vm5671_vm10, %v5658_v3  ;;  %v5664_v13 = vmax.f32 %v5632_v60, %v10579_v25  ;;  %v5665_v5 = vmax.f32 %v5633_v31, %v10580_v9  ;;  %v5634_v49 = vld [vmem:[%s7860_s18 + $0xd8] sm:$0xff]  ;;  %v5635_v21 = vld [vmem:[%s7860_s18 + $0xe0] sm:$0xff] }
 0x718   : > { %5692 = vst.msk [vmem:[%s7860_s18 + $0xa0] sm:$0xff] %vm5671_vm10, %v5659_v53  ;;  %v5636_v17 = vld [vmem:[%s7860_s18 + $0xe8] sm:$0xff]  ;;  %5693 = vst.msk [vmem:[%s7860_s18 + $0xa8] sm:$0xff] %vm5671_vm10, %v5660_v28  ;;  %v5666_v51 = vmax.f32 %v5634_v49, %v10581_v57  ;;  %v5667_v1 = vmax.f32 %v5635_v21, %v10582_v24  ;;  %v5637_v40 = vld [vmem:[%s7860_s18 + $0xf0] sm:$0xff] }
 0x719   : > { %5694 = vst.msk [vmem:[%s7860_s18 + $0xb0] sm:$0xff] %vm5671_vm10, %v5661_v47  ;;  %5695 = vst.msk [vmem:[%s7860_s18 + $0xb8] sm:$0xff] %vm5671_vm10, %v5662_v39  ;;  %v5668_v16 = vmax.f32 %v5636_v17, %v10583_v18  ;;  %v5638_v35 = vld [vmem:[%s7860_s18 + $0xf8] sm:$0xff]  ;;  %v5669_v22 = vmax.f32 %v5637_v40, %v10584_v63 }
 0x71a   : > { %5696 = vst.msk [vmem:[%s7860_s18 + $0xc0] sm:$0xff] %vm5671_vm10, %v5663_v62  ;;  %5697 = vst.msk [vmem:[%s7860_s18 + $0xc8] sm:$0xff] %vm5671_vm10, %v5664_v13  ;;  %v5670_v36 = vmax.f32 %v5638_v35, %v10585_v33 }
 0x71b   : > { %5698 = vst.msk [vmem:[%s7860_s18 + $0xd0] sm:$0xff] %vm5671_vm10, %v5665_v5  ;;  %5699 = vst.msk [vmem:[%s7860_s18 + $0xd8] sm:$0xff] %vm5671_vm10, %v5666_v51 }
 0x71c   : > { %5700 = vst.msk [vmem:[%s7860_s18 + $0xe0] sm:$0xff] %vm5671_vm10, %v5667_v1  ;;  %5701 = vst.msk [vmem:[%s7860_s18 + $0xe8] sm:$0xff] %vm5671_vm10, %v5668_v16 }
 0x71d   : > { %5702 = vst.msk [vmem:[%s7860_s18 + $0xf0] sm:$0xff] %vm5671_vm10, %v5669_v22  ;;  %5703 = vst.msk [vmem:[%s7860_s18 + $0xf8] sm:$0xff] %vm5671_vm10, %v5670_v36 }
 0x71e PF: > { %s17_s28 = sadd.s32 1, %s7769_s28   ;;  %s10586_s24 = smov %s7761_s26 }
 0x71f   : > { %p14_p9 = scmp.ge.s32.totalorder %s17_s28, 10   ;;  %s10587_s25 = smov %s7765_s27 }
 0x720   : > { %s10588_s26 = smov %s10591_s29  ;;  %s10589_s27 = smov %s10595_s30 }
 0x721   :  { %16 = sbr.rel (!%p14_p9) target bundleno = 3 (0x3), region = 102 }

</bundles_post_ra>
